<compile_context>
chip_gen: v6e
topology: v6e:2x2x1
jax: 0.10.0
libtpu: 0.0.40
codegen_flags: <defaults>
</compile_context>

<pallas_src>
import functools

import jax
import jax.numpy as jnp
from jax.experimental import pallas as pl
from jax.experimental.pallas import tpu as pltpu

EPS = 1e-5


# ------------------------------ fused kernel ---------------------------------
def _make_fused_kernel(layer_num, T, B, D, H):
    f32 = jnp.float32
    bf16 = jnp.bfloat16

    def kernel(*refs):
        (x_ref, p_ref, gamma_ref, beta_ref,
         wih0_ref, whh0_ref, bias0_ref) = refs[:7]
        n_extra = 2 * (layer_num - 1)
        layer_refs = refs[7:7 + n_extra]
        fcw_ref = refs[7 + n_extra]
        fcb_ref = refs[8 + n_extra]
        o_ref = refs[9 + n_extra]
        xw_ref = refs[10 + n_extra]            # VMEM scratch (T*B, 4H) f32

        # ---- BatchNorm1d(T): per-channel(=t) batch stats, lane-dense layout --
        x = x_ref[...].astype(f32)                         # (T*B, D)
        p = p_ref[...]                                     # (T*B, T*B) blk-avg
        mean = jnp.sum(jnp.dot(p, x, preferred_element_type=f32),
                       axis=-1, keepdims=True)             # (T*B, 1)
        d = x - mean
        var = jnp.sum(jnp.dot(p, d * d, preferred_element_type=f32),
                      axis=-1, keepdims=True)              # biased variance
        xn = d * (jax.lax.rsqrt(var + EPS) * gamma_ref[...]) + beta_ref[...]

        # ---- batched layer-0 input projection: one (T*B,D)@(D,4H) matmul -----
        xw_ref[...] = (jnp.dot(xn.astype(bf16), wih0_ref[...],
                               preferred_element_type=f32)
                       + bias0_ref[...])

        # ---- hoisted constants / weights (stay resident in vregs) ------------
        lane = jax.lax.broadcasted_iota(jnp.int32, (B, 4 * H), 1)
        is_g = (lane >= 2 * H) & (lane < 3 * H)
        gate_scale = jnp.where(is_g, 1.0, 0.5).astype(f32)   # 0.5 on i/f/o, 1 on g
        gate_shift = jnp.where(is_g, 0.0, 0.5).astype(f32)

        whh0 = whh0_ref[...]                                        # (H, 4H) bf16
        wcats = [layer_refs[2 * i][...] for i in range(layer_num - 1)]   # (2H,4H) bf16
        bias_b = [jnp.broadcast_to(layer_refs[2 * i + 1][...], (B, 4 * H))
                  for i in range(layer_num - 1)]

        def gate_update(gates, c):
            # single tanh pass: sigmoid(x) = 0.5*tanh(0.5*x)+0.5 on i/f/o lanes
            a = jnp.tanh(gates * gate_scale) * gate_scale + gate_shift
            i_g = a[:, 0 * H:1 * H]
            f_g = a[:, 1 * H:2 * H]
            g_g = a[:, 2 * H:3 * H]
            o_g = a[:, 3 * H:4 * H]
            c_new = f_g * c + i_g * g_g
            h_new = o_g * jnp.tanh(c_new)
            return h_new, c_new

        hs = [jnp.zeros((B, H), f32) for _ in range(layer_num)]
        cs = [jnp.zeros((B, H), f32) for _ in range(layer_num)]

        # ---- wavefront-interleaved recurrence, fully unrolled (T static) -----
        for t in range(T):
            # layer 0: xW (from scratch) + h @ W_hh
            g0 = (xw_ref[pl.ds(t * B, B), :]
                  + jnp.dot(hs[0].astype(bf16), whh0,
                            preferred_element_type=f32))
            hs[0], cs[0] = gate_update(g0, cs[0])
            # layers >=1: fused [h_in, h_prev] @ [W_ih; W_hh]  (K = 2H)
            for l in range(1, layer_num):
                inp = jnp.concatenate([hs[l - 1], hs[l]], axis=1).astype(bf16)
                gl = (jnp.dot(inp, wcats[l - 1], preferred_element_type=f32)
                      + bias_b[l - 1])
                hs[l], cs[l] = gate_update(gl, cs[l])

        # ---- FC on the last timestep of the last layer ------------------------
        out = (jnp.dot(hs[-1].astype(bf16), fcw_ref[...],
                       preferred_element_type=f32) + fcb_ref[...])
        o_ref[...] = out.astype(o_ref.dtype)

    return kernel


# ------------------------------- full model -----------------------------------
def init_params(key, input_dim, hidden_dim, output_dim, layer_num):
    params = {}
    k_lstm = 1.0 / jnp.sqrt(hidden_dim)
    keys = jax.random.split(key, 4 * layer_num + 2)
    for l in range(layer_num):
        din = input_dim if l == 0 else hidden_dim
        params[f"w_ih_{l}"] = jax.random.uniform(
            keys[4 * l + 0], (4 * hidden_dim, din), jnp.float32, -k_lstm, k_lstm)
        params[f"w_hh_{l}"] = jax.random.uniform(
            keys[4 * l + 1], (4 * hidden_dim, hidden_dim), jnp.float32, -k_lstm, k_lstm)
        params[f"b_ih_{l}"] = jax.random.uniform(
            keys[4 * l + 2], (4 * hidden_dim,), jnp.float32, -k_lstm, k_lstm)
        params[f"b_hh_{l}"] = jax.random.uniform(
            keys[4 * l + 3], (4 * hidden_dim,), jnp.float32, -k_lstm, k_lstm)
    k_fc = 1.0 / jnp.sqrt(hidden_dim)
    params["fc_w"] = jax.random.uniform(
        keys[-2], (output_dim, hidden_dim), jnp.float32, -k_fc, k_fc)
    params["fc_b"] = jax.random.uniform(
        keys[-1], (output_dim,), jnp.float32, -k_fc, k_fc)
    params["bn_gamma"] = jnp.ones((16,), jnp.float32)
    params["bn_beta"] = jnp.zeros((16,), jnp.float32)
    return params


@functools.partial(jax.jit, static_argnames=("layer_num",))
def lstm_forward(x, params, layer_num):
    # x: (B, seq=16, input_dim); seq must be 16 because of nn.BatchNorm1d(16).
    B, T, D = x.shape
    assert T == 16, "nn.BatchNorm1d(16) requires seq_len == 16"
    H = params["w_hh_0"].shape[1]
    O = params["fc_w"].shape[0]

    # One-time layout prep (outside the serial recurrence, fused by XLA):
    # time-major stacked rows, bf16 transposed weights, combined biases.
    x_rows = jnp.transpose(x, (1, 0, 2)).reshape(T * B, D)          # (T*B, D)

    # Block-averaging matrix: P[r, s] = 1/(B*D) iff rows r, s share a timestep.
    grp = jnp.arange(T * B) // B
    pmat = (grp[:, None] == grp[None, :]).astype(jnp.float32) / float(B * D)

    gamma_rows = jnp.repeat(params["bn_gamma"], B).reshape(T * B, 1)
    beta_rows = jnp.repeat(params["bn_beta"], B).reshape(T * B, 1)

    inputs = [x_rows, pmat, gamma_rows, beta_rows]
    # layer 0: separate W_ih (batched input projection) + W_hh (recurrent)
    inputs.append(jnp.transpose(params["w_ih_0"]).astype(jnp.bfloat16))  # (D, 4H)
    inputs.append(jnp.transpose(params["w_hh_0"]).astype(jnp.bfloat16))  # (H, 4H)
    inputs.append((params["b_ih_0"] + params["b_hh_0"]).reshape(1, 4 * H))
    # layers >=1: concatenated [W_ih^T; W_hh^T] for the fused (B,2H) matmul
    for l in range(1, layer_num):
        w_cat = jnp.concatenate([jnp.transpose(params[f"w_ih_{l}"]),
                                 jnp.transpose(params[f"w_hh_{l}"])], axis=0)
        inputs.append(w_cat.astype(jnp.bfloat16))                        # (2H, 4H)
        inputs.append((params[f"b_ih_{l}"] + params[f"b_hh_{l}"]).reshape(1, 4 * H))
    inputs.append(jnp.transpose(params["fc_w"]).astype(jnp.bfloat16))    # (H, O)
    inputs.append(params["fc_b"].reshape(1, O))                          # (1, O)

    kernel = _make_fused_kernel(layer_num, T, B, D, H)
    return pl.pallas_call(
        kernel,
        out_shape=jax.ShapeDtypeStruct((B, O), x.dtype),
        in_specs=[pl.BlockSpec(memory_space=pltpu.MemorySpace.VMEM)
                  for _ in inputs],
        out_specs=pl.BlockSpec(memory_space=pltpu.MemorySpace.VMEM),
        scratch_shapes=[pltpu.VMEM((T * B, 4 * H), jnp.float32)],
    )(*inputs)


if __name__ == "__main__":
    input_dim, hidden_dim, output_dim, layer_num = 8, 32, 8, 2
    batch, seq = 8, 16                     # seq must equal 16 (BatchNorm1d(16))

    key = jax.random.PRNGKey(0)
    k_x, k_p = jax.random.split(key)
    x = jax.random.normal(k_x, (batch, seq, input_dim), dtype=jnp.float32)
    params = init_params(k_p, input_dim, hidden_dim, output_dim, layer_num)

    out = lstm_forward(x, params, layer_num)
    jax.block_until_ready(out)
    assert out.shape == (batch, output_dim), out.shape
    assert bool(jnp.all(jnp.isfinite(out)))
    print("KERNEL_OK")
</pallas_src>

<mosaic_0001>
module attributes {stable_mosaic.version = 11 : i64} {
  func.func @kernel(%arg0: memref<128x8xf32, #tpu.memory_space<vmem>>, %arg1: memref<128x128xf32, #tpu.memory_space<vmem>>, %arg2: memref<128x1xf32, #tpu.memory_space<vmem>>, %arg3: memref<128x1xf32, #tpu.memory_space<vmem>>, %arg4: memref<8x128xbf16, #tpu.memory_space<vmem>>, %arg5: memref<32x128xbf16, #tpu.memory_space<vmem>>, %arg6: memref<1x128xf32, #tpu.memory_space<vmem>>, %arg7: memref<64x128xbf16, #tpu.memory_space<vmem>>, %arg8: memref<1x128xf32, #tpu.memory_space<vmem>>, %arg9: memref<32x8xbf16, #tpu.memory_space<vmem>>, %arg10: memref<1x8xf32, #tpu.memory_space<vmem>>, %arg11: memref<8x8xf32, #tpu.memory_space<vmem>>, %arg12: memref<128x128xf32, #tpu.memory_space<vmem>>) attributes {dimension_semantics = [], scalar_prefetch = 0 : i64, scratch_operands = 1 : i64, tpu.core_type = #tpu.core_type<tc>} {
    %c0 = arith.constant 0 : index
    %c0_0 = arith.constant 0 : index
    %0 = vector.load %arg0[%c0, %c0_0] : memref<128x8xf32, #tpu.memory_space<vmem>>, vector<128x8xf32>
    %c0_1 = arith.constant 0 : index
    %c0_2 = arith.constant 0 : index
    %1 = vector.load %arg1[%c0_1, %c0_2] : memref<128x128xf32, #tpu.memory_space<vmem>>, vector<128x128xf32>
    %cst = arith.constant dense<0.000000e+00> : vector<128x8xf32>
    %2 = tpu.matmul %1, %0, %cst {dimension_numbers = #tpu.dot_dimension_numbers<[1], [0], [0], [1], [0, 0, 1, 1], [], []>} : vector<128x128xf32>, vector<128x8xf32>, vector<128x8xf32> -> vector<128x8xf32>
    %cst_3 = arith.constant dense<0.000000e+00> : vector<128xf32>
    %3 = vector.multi_reduction <add>, %2, %cst_3 [1] : vector<128x8xf32> to vector<128xf32>
    %4 = vector.shape_cast %3 : vector<128xf32> to vector<128x1xf32>
    %5 = vector.broadcast %4 : vector<128x1xf32> to vector<128x8xf32>
    %6 = arith.subf %0, %5 : vector<128x8xf32>
    %7 = arith.mulf %6, %6 : vector<128x8xf32>
    %cst_4 = arith.constant dense<0.000000e+00> : vector<128x8xf32>
    %8 = tpu.matmul %1, %7, %cst_4 {dimension_numbers = #tpu.dot_dimension_numbers<[1], [0], [0], [1], [0, 0, 1, 1], [], []>} : vector<128x128xf32>, vector<128x8xf32>, vector<128x8xf32> -> vector<128x8xf32>
    %cst_5 = arith.constant dense<0.000000e+00> : vector<128xf32>
    %9 = vector.multi_reduction <add>, %8, %cst_5 [1] : vector<128x8xf32> to vector<128xf32>
    %10 = vector.shape_cast %9 : vector<128xf32> to vector<128x1xf32>
    %cst_6 = arith.constant 9.99999974E-6 : f32
    %11 = vector.broadcast %cst_6 : f32 to vector<128x1xf32>
    %12 = arith.addf %10, %11 : vector<128x1xf32>
    %13 = math.rsqrt %12 : vector<128x1xf32>
    %c0_7 = arith.constant 0 : index
    %c0_8 = arith.constant 0 : index
    %14 = vector.load %arg2[%c0_7, %c0_8] : memref<128x1xf32, #tpu.memory_space<vmem>>, vector<128x1xf32>
    %15 = arith.mulf %13, %14 : vector<128x1xf32>
    %16 = vector.broadcast %15 : vector<128x1xf32> to vector<128x8xf32>
    %17 = arith.mulf %6, %16 : vector<128x8xf32>
    %c0_9 = arith.constant 0 : index
    %c0_10 = arith.constant 0 : index
    %18 = vector.load %arg3[%c0_9, %c0_10] : memref<128x1xf32, #tpu.memory_space<vmem>>, vector<128x1xf32>
    %19 = vector.broadcast %18 : vector<128x1xf32> to vector<128x8xf32>
    %20 = arith.addf %17, %19 : vector<128x8xf32>
    %21 = arith.truncf %20 : vector<128x8xf32> to vector<128x8xbf16>
    %c0_11 = arith.constant 0 : index
    %c0_12 = arith.constant 0 : index
    %22 = vector.load %arg4[%c0_11, %c0_12] : memref<8x128xbf16, #tpu.memory_space<vmem>>, vector<8x128xbf16>
    %cst_13 = arith.constant dense<0.000000e+00> : vector<128x128xf32>
    %23 = tpu.matmul %21, %22, %cst_13 {dimension_numbers = #tpu.dot_dimension_numbers<[1], [0], [0], [1], [0, 0, 1, 1], [], []>} : vector<128x8xbf16>, vector<8x128xbf16>, vector<128x128xf32> -> vector<128x128xf32>
    %c0_14 = arith.constant 0 : index
    %c0_15 = arith.constant 0 : index
    %24 = vector.load %arg6[%c0_14, %c0_15] : memref<1x128xf32, #tpu.memory_space<vmem>>, vector<1x128xf32>
    %25 = vector.broadcast %24 : vector<1x128xf32> to vector<128x128xf32>
    %26 = arith.addf %23, %25 : vector<128x128xf32>
    %c0_16 = arith.constant 0 : index
    %c0_17 = arith.constant 0 : index
    %27 = vector.load %arg12[%c0_16, %c0_17] : memref<128x128xf32, #tpu.memory_space<vmem>>, vector<128x128xf32>
    tpu.vector_store %arg12[%c0_16, %c0_17], %26 {strides = array<i32>} : memref<128x128xf32, #tpu.memory_space<vmem>>, vector<128x128xf32>,
    %28 = tpu.iota {dimensions = array<i32: 1>} : vector<8x128xi32>
    %c64_i32 = arith.constant 64 : i32
    %29 = vector.broadcast %c64_i32 : i32 to vector<8x128xi32>
    %30 = arith.cmpi sge, %28, %29 : vector<8x128xi32>
    %c96_i32 = arith.constant 96 : i32
    %31 = vector.broadcast %c96_i32 : i32 to vector<8x128xi32>
    %32 = arith.cmpi slt, %28, %31 : vector<8x128xi32>
    %33 = arith.andi %30, %32 : vector<8x128xi1>
    %cst_18 = arith.constant 1.000000e+00 : f32
    %cst_19 = arith.constant 5.000000e-01 : f32
    %34 = vector.broadcast %cst_18 : f32 to vector<8x128xf32>
    %35 = vector.broadcast %cst_19 : f32 to vector<8x128xf32>
    %36 = arith.select %33, %34, %35 : vector<8x128xi1>, vector<8x128xf32>
    %cst_20 = arith.constant 0.000000e+00 : f32
    %cst_21 = arith.constant 5.000000e-01 : f32
    %37 = vector.broadcast %cst_20 : f32 to vector<8x128xf32>
    %38 = vector.broadcast %cst_21 : f32 to vector<8x128xf32>
    %39 = arith.select %33, %37, %38 : vector<8x128xi1>, vector<8x128xf32>
    %c0_22 = arith.constant 0 : index
    %c0_23 = arith.constant 0 : index
    %40 = vector.load %arg5[%c0_22, %c0_23] : memref<32x128xbf16, #tpu.memory_space<vmem>>, vector<32x128xbf16>
    %c0_24 = arith.constant 0 : index
    %c0_25 = arith.constant 0 : index
    %41 = vector.load %arg7[%c0_24, %c0_25] : memref<64x128xbf16, #tpu.memory_space<vmem>>, vector<64x128xbf16>
    %c0_26 = arith.constant 0 : index
    %c0_27 = arith.constant 0 : index
    %42 = vector.load %arg8[%c0_26, %c0_27] : memref<1x128xf32, #tpu.memory_space<vmem>>, vector<1x128xf32>
    %43 = vector.shape_cast %42 : vector<1x128xf32> to vector<1x128xf32>
    %44 = vector.broadcast %43 : vector<1x128xf32> to vector<8x128xf32>
    %cst_28 = arith.constant 0.000000e+00 : f32
    %45 = vector.broadcast %cst_28 : f32 to vector<8x32xf32>
    %cst_29 = arith.constant 0.000000e+00 : f32
    %46 = vector.broadcast %cst_29 : f32 to vector<8x32xf32>
    %cst_30 = arith.constant 0.000000e+00 : f32
    %47 = vector.broadcast %cst_30 : f32 to vector<8x32xf32>
    %cst_31 = arith.constant 0.000000e+00 : f32
    %48 = vector.broadcast %cst_31 : f32 to vector<8x32xf32>
    %c0_32 = arith.constant 0 : index
    %c0_33 = arith.constant 0 : index
    %49 = vector.load %arg12[%c0_32, %c0_33] : memref<128x128xf32, #tpu.memory_space<vmem>>, vector<8x128xf32>
    %50 = arith.truncf %45 : vector<8x32xf32> to vector<8x32xbf16>
    %cst_34 = arith.constant dense<0.000000e+00> : vector<8x128xf32>
    %51 = tpu.matmul %50, %40, %cst_34 {dimension_numbers = #tpu.dot_dimension_numbers<[1], [0], [0], [1], [0, 0, 1, 1], [], []>} : vector<8x32xbf16>, vector<32x128xbf16>, vector<8x128xf32> -> vector<8x128xf32>
    %52 = arith.addf %49, %51 : vector<8x128xf32>
    %53 = arith.mulf %52, %36 : vector<8x128xf32>
    %54 = math.tanh %53 : vector<8x128xf32>
    %55 = arith.mulf %54, %36 : vector<8x128xf32>
    %56 = arith.addf %55, %39 : vector<8x128xf32>
    %57 = vector.extract_strided_slice %56 {offsets = [0, 0], sizes = [8, 32], strides = [1, 1]} : vector<8x128xf32> to vector<8x32xf32>
    %58 = vector.extract_strided_slice %56 {offsets = [0, 32], sizes = [8, 32], strides = [1, 1]} : vector<8x128xf32> to vector<8x32xf32>
    %59 = vector.extract_strided_slice %56 {offsets = [0, 64], sizes = [8, 32], strides = [1, 1]} : vector<8x128xf32> to vector<8x32xf32>
    %60 = vector.extract_strided_slice %56 {offsets = [0, 96], sizes = [8, 32], strides = [1, 1]} : vector<8x128xf32> to vector<8x32xf32>
    %61 = arith.mulf %58, %47 : vector<8x32xf32>
    %62 = arith.mulf %57, %59 : vector<8x32xf32>
    %63 = arith.addf %61, %62 : vector<8x32xf32>
    %64 = math.tanh %63 : vector<8x32xf32>
    %65 = arith.mulf %60, %64 : vector<8x32xf32>
    %66 = tpu.concatenate %65, %46 in 1 : vector<8x32xf32>, vector<8x32xf32> -> vector<8x64xf32>
    %67 = arith.truncf %66 : vector<8x64xf32> to vector<8x64xbf16>
    %cst_35 = arith.constant dense<0.000000e+00> : vector<8x128xf32>
    %68 = tpu.matmul %67, %41, %cst_35 {dimension_numbers = #tpu.dot_dimension_numbers<[1], [0], [0], [1], [0, 0, 1, 1], [], []>} : vector<8x64xbf16>, vector<64x128xbf16>, vector<8x128xf32> -> vector<8x128xf32>
    %69 = arith.addf %68, %44 : vector<8x128xf32>
    %70 = arith.mulf %69, %36 : vector<8x128xf32>
    %71 = math.tanh %70 : vector<8x128xf32>
    %72 = arith.mulf %71, %36 : vector<8x128xf32>
    %73 = arith.addf %72, %39 : vector<8x128xf32>
    %74 = vector.extract_strided_slice %73 {offsets = [0, 0], sizes = [8, 32], strides = [1, 1]} : vector<8x128xf32> to vector<8x32xf32>
    %75 = vector.extract_strided_slice %73 {offsets = [0, 32], sizes = [8, 32], strides = [1, 1]} : vector<8x128xf32> to vector<8x32xf32>
    %76 = vector.extract_strided_slice %73 {offsets = [0, 64], sizes = [8, 32], strides = [1, 1]} : vector<8x128xf32> to vector<8x32xf32>
    %77 = vector.extract_strided_slice %73 {offsets = [0, 96], sizes = [8, 32], strides = [1, 1]} : vector<8x128xf32> to vector<8x32xf32>
    %78 = arith.mulf %75, %48 : vector<8x32xf32>
    %79 = arith.mulf %74, %76 : vector<8x32xf32>
    %80 = arith.addf %78, %79 : vector<8x32xf32>
    %81 = math.tanh %80 : vector<8x32xf32>
    %82 = arith.mulf %77, %81 : vector<8x32xf32>
    %c8 = arith.constant 8 : index
    %c0_36 = arith.constant 0 : index
    %83 = vector.load %arg12[%c8, %c0_36] : memref<128x128xf32, #tpu.memory_space<vmem>>, vector<8x128xf32>
    %84 = arith.truncf %65 : vector<8x32xf32> to vector<8x32xbf16>
    %cst_37 = arith.constant dense<0.000000e+00> : vector<8x128xf32>
    %85 = tpu.matmul %84, %40, %cst_37 {dimension_numbers = #tpu.dot_dimension_numbers<[1], [0], [0], [1], [0, 0, 1, 1], [], []>} : vector<8x32xbf16>, vector<32x128xbf16>, vector<8x128xf32> -> vector<8x128xf32>
    %86 = arith.addf %83, %85 : vector<8x128xf32>
    %87 = arith.mulf %86, %36 : vector<8x128xf32>
    %88 = math.tanh %87 : vector<8x128xf32>
    %89 = arith.mulf %88, %36 : vector<8x128xf32>
    %90 = arith.addf %89, %39 : vector<8x128xf32>
    %91 = vector.extract_strided_slice %90 {offsets = [0, 0], sizes = [8, 32], strides = [1, 1]} : vector<8x128xf32> to vector<8x32xf32>
    %92 = vector.extract_strided_slice %90 {offsets = [0, 32], sizes = [8, 32], strides = [1, 1]} : vector<8x128xf32> to vector<8x32xf32>
    %93 = vector.extract_strided_slice %90 {offsets = [0, 64], sizes = [8, 32], strides = [1, 1]} : vector<8x128xf32> to vector<8x32xf32>
    %94 = vector.extract_strided_slice %90 {offsets = [0, 96], sizes = [8, 32], strides = [1, 1]} : vector<8x128xf32> to vector<8x32xf32>
    %95 = arith.mulf %92, %63 : vector<8x32xf32>
    %96 = arith.mulf %91, %93 : vector<8x32xf32>
    %97 = arith.addf %95, %96 : vector<8x32xf32>
    %98 = math.tanh %97 : vector<8x32xf32>
    %99 = arith.mulf %94, %98 : vector<8x32xf32>
    %100 = tpu.concatenate %99, %82 in 1 : vector<8x32xf32>, vector<8x32xf32> -> vector<8x64xf32>
    %101 = arith.truncf %100 : vector<8x64xf32> to vector<8x64xbf16>
    %cst_38 = arith.constant dense<0.000000e+00> : vector<8x128xf32>
    %102 = tpu.matmul %101, %41, %cst_38 {dimension_numbers = #tpu.dot_dimension_numbers<[1], [0], [0], [1], [0, 0, 1, 1], [], []>} : vector<8x64xbf16>, vector<64x128xbf16>, vector<8x128xf32> -> vector<8x128xf32>
    %103 = arith.addf %102, %44 : vector<8x128xf32>
    %104 = arith.mulf %103, %36 : vector<8x128xf32>
    %105 = math.tanh %104 : vector<8x128xf32>
    %106 = arith.mulf %105, %36 : vector<8x128xf32>
    %107 = arith.addf %106, %39 : vector<8x128xf32>
    %108 = vector.extract_strided_slice %107 {offsets = [0, 0], sizes = [8, 32], strides = [1, 1]} : vector<8x128xf32> to vector<8x32xf32>
    %109 = vector.extract_strided_slice %107 {offsets = [0, 32], sizes = [8, 32], strides = [1, 1]} : vector<8x128xf32> to vector<8x32xf32>
    %110 = vector.extract_strided_slice %107 {offsets = [0, 64], sizes = [8, 32], strides = [1, 1]} : vector<8x128xf32> to vector<8x32xf32>
    %111 = vector.extract_strided_slice %107 {offsets = [0, 96], sizes = [8, 32], strides = [1, 1]} : vector<8x128xf32> to vector<8x32xf32>
    %112 = arith.mulf %109, %80 : vector<8x32xf32>
    %113 = arith.mulf %108, %110 : vector<8x32xf32>
    %114 = arith.addf %112, %113 : vector<8x32xf32>
    %115 = math.tanh %114 : vector<8x32xf32>
    %116 = arith.mulf %111, %115 : vector<8x32xf32>
    %c16 = arith.constant 16 : index
    %c0_39 = arith.constant 0 : index
    %117 = vector.load %arg12[%c16, %c0_39] : memref<128x128xf32, #tpu.memory_space<vmem>>, vector<8x128xf32>
    %118 = arith.truncf %99 : vector<8x32xf32> to vector<8x32xbf16>
    %cst_40 = arith.constant dense<0.000000e+00> : vector<8x128xf32>
    %119 = tpu.matmul %118, %40, %cst_40 {dimension_numbers = #tpu.dot_dimension_numbers<[1], [0], [0], [1], [0, 0, 1, 1], [], []>} : vector<8x32xbf16>, vector<32x128xbf16>, vector<8x128xf32> -> vector<8x128xf32>
    %120 = arith.addf %117, %119 : vector<8x128xf32>
    %121 = arith.mulf %120, %36 : vector<8x128xf32>
    %122 = math.tanh %121 : vector<8x128xf32>
    %123 = arith.mulf %122, %36 : vector<8x128xf32>
    %124 = arith.addf %123, %39 : vector<8x128xf32>
    %125 = vector.extract_strided_slice %124 {offsets = [0, 0], sizes = [8, 32], strides = [1, 1]} : vector<8x128xf32> to vector<8x32xf32>
    %126 = vector.extract_strided_slice %124 {offsets = [0, 32], sizes = [8, 32], strides = [1, 1]} : vector<8x128xf32> to vector<8x32xf32>
    %127 = vector.extract_strided_slice %124 {offsets = [0, 64], sizes = [8, 32], strides = [1, 1]} : vector<8x128xf32> to vector<8x32xf32>
    %128 = vector.extract_strided_slice %124 {offsets = [0, 96], sizes = [8, 32], strides = [1, 1]} : vector<8x128xf32> to vector<8x32xf32>
    %129 = arith.mulf %126, %97 : vector<8x32xf32>
    %130 = arith.mulf %125, %127 : vector<8x32xf32>
    %131 = arith.addf %129, %130 : vector<8x32xf32>
    %132 = math.tanh %131 : vector<8x32xf32>
    %133 = arith.mulf %128, %132 : vector<8x32xf32>
    %134 = tpu.concatenate %133, %116 in 1 : vector<8x32xf32>, vector<8x32xf32> -> vector<8x64xf32>
    %135 = arith.truncf %134 : vector<8x64xf32> to vector<8x64xbf16>
    %cst_41 = arith.constant dense<0.000000e+00> : vector<8x128xf32>
    %136 = tpu.matmul %135, %41, %cst_41 {dimension_numbers = #tpu.dot_dimension_numbers<[1], [0], [0], [1], [0, 0, 1, 1], [], []>} : vector<8x64xbf16>, vector<64x128xbf16>, vector<8x128xf32> -> vector<8x128xf32>
    %137 = arith.addf %136, %44 : vector<8x128xf32>
    %138 = arith.mulf %137, %36 : vector<8x128xf32>
    %139 = math.tanh %138 : vector<8x128xf32>
    %140 = arith.mulf %139, %36 : vector<8x128xf32>
    %141 = arith.addf %140, %39 : vector<8x128xf32>
    %142 = vector.extract_strided_slice %141 {offsets = [0, 0], sizes = [8, 32], strides = [1, 1]} : vector<8x128xf32> to vector<8x32xf32>
    %143 = vector.extract_strided_slice %141 {offsets = [0, 32], sizes = [8, 32], strides = [1, 1]} : vector<8x128xf32> to vector<8x32xf32>
    %144 = vector.extract_strided_slice %141 {offsets = [0, 64], sizes = [8, 32], strides = [1, 1]} : vector<8x128xf32> to vector<8x32xf32>
    %145 = vector.extract_strided_slice %141 {offsets = [0, 96], sizes = [8, 32], strides = [1, 1]} : vector<8x128xf32> to vector<8x32xf32>
    %146 = arith.mulf %143, %114 : vector<8x32xf32>
    %147 = arith.mulf %142, %144 : vector<8x32xf32>
    %148 = arith.addf %146, %147 : vector<8x32xf32>
    %149 = math.tanh %148 : vector<8x32xf32>
    %150 = arith.mulf %145, %149 : vector<8x32xf32>
    %c24 = arith.constant 24 : index
    %c0_42 = arith.constant 0 : index
    %151 = vector.load %arg12[%c24, %c0_42] : memref<128x128xf32, #tpu.memory_space<vmem>>, vector<8x128xf32>
    %152 = arith.truncf %133 : vector<8x32xf32> to vector<8x32xbf16>
    %cst_43 = arith.constant dense<0.000000e+00> : vector<8x128xf32>
    %153 = tpu.matmul %152, %40, %cst_43 {dimension_numbers = #tpu.dot_dimension_numbers<[1], [0], [0], [1], [0, 0, 1, 1], [], []>} : vector<8x32xbf16>, vector<32x128xbf16>, vector<8x128xf32> -> vector<8x128xf32>
    %154 = arith.addf %151, %153 : vector<8x128xf32>
    %155 = arith.mulf %154, %36 : vector<8x128xf32>
    %156 = math.tanh %155 : vector<8x128xf32>
    %157 = arith.mulf %156, %36 : vector<8x128xf32>
    %158 = arith.addf %157, %39 : vector<8x128xf32>
    %159 = vector.extract_strided_slice %158 {offsets = [0, 0], sizes = [8, 32], strides = [1, 1]} : vector<8x128xf32> to vector<8x32xf32>
    %160 = vector.extract_strided_slice %158 {offsets = [0, 32], sizes = [8, 32], strides = [1, 1]} : vector<8x128xf32> to vector<8x32xf32>
    %161 = vector.extract_strided_slice %158 {offsets = [0, 64], sizes = [8, 32], strides = [1, 1]} : vector<8x128xf32> to vector<8x32xf32>
    %162 = vector.extract_strided_slice %158 {offsets = [0, 96], sizes = [8, 32], strides = [1, 1]} : vector<8x128xf32> to vector<8x32xf32>
    %163 = arith.mulf %160, %131 : vector<8x32xf32>
    %164 = arith.mulf %159, %161 : vector<8x32xf32>
    %165 = arith.addf %163, %164 : vector<8x32xf32>
    %166 = math.tanh %165 : vector<8x32xf32>
    %167 = arith.mulf %162, %166 : vector<8x32xf32>
    %168 = tpu.concatenate %167, %150 in 1 : vector<8x32xf32>, vector<8x32xf32> -> vector<8x64xf32>
    %169 = arith.truncf %168 : vector<8x64xf32> to vector<8x64xbf16>
    %cst_44 = arith.constant dense<0.000000e+00> : vector<8x128xf32>
    %170 = tpu.matmul %169, %41, %cst_44 {dimension_numbers = #tpu.dot_dimension_numbers<[1], [0], [0], [1], [0, 0, 1, 1], [], []>} : vector<8x64xbf16>, vector<64x128xbf16>, vector<8x128xf32> -> vector<8x128xf32>
    %171 = arith.addf %170, %44 : vector<8x128xf32>
    %172 = arith.mulf %171, %36 : vector<8x128xf32>
    %173 = math.tanh %172 : vector<8x128xf32>
    %174 = arith.mulf %173, %36 : vector<8x128xf32>
    %175 = arith.addf %174, %39 : vector<8x128xf32>
    %176 = vector.extract_strided_slice %175 {offsets = [0, 0], sizes = [8, 32], strides = [1, 1]} : vector<8x128xf32> to vector<8x32xf32>
    %177 = vector.extract_strided_slice %175 {offsets = [0, 32], sizes = [8, 32], strides = [1, 1]} : vector<8x128xf32> to vector<8x32xf32>
    %178 = vector.extract_strided_slice %175 {offsets = [0, 64], sizes = [8, 32], strides = [1, 1]} : vector<8x128xf32> to vector<8x32xf32>
    %179 = vector.extract_strided_slice %175 {offsets = [0, 96], sizes = [8, 32], strides = [1, 1]} : vector<8x128xf32> to vector<8x32xf32>
    %180 = arith.mulf %177, %148 : vector<8x32xf32>
    %181 = arith.mulf %176, %178 : vector<8x32xf32>
    %182 = arith.addf %180, %181 : vector<8x32xf32>
    %183 = math.tanh %182 : vector<8x32xf32>
    %184 = arith.mulf %179, %183 : vector<8x32xf32>
    %c32 = arith.constant 32 : index
    %c0_45 = arith.constant 0 : index
    %185 = vector.load %arg12[%c32, %c0_45] : memref<128x128xf32, #tpu.memory_space<vmem>>, vector<8x128xf32>
    %186 = arith.truncf %167 : vector<8x32xf32> to vector<8x32xbf16>
    %cst_46 = arith.constant dense<0.000000e+00> : vector<8x128xf32>
    %187 = tpu.matmul %186, %40, %cst_46 {dimension_numbers = #tpu.dot_dimension_numbers<[1], [0], [0], [1], [0, 0, 1, 1], [], []>} : vector<8x32xbf16>, vector<32x128xbf16>, vector<8x128xf32> -> vector<8x128xf32>
    %188 = arith.addf %185, %187 : vector<8x128xf32>
    %189 = arith.mulf %188, %36 : vector<8x128xf32>
    %190 = math.tanh %189 : vector<8x128xf32>
    %191 = arith.mulf %190, %36 : vector<8x128xf32>
    %192 = arith.addf %191, %39 : vector<8x128xf32>
    %193 = vector.extract_strided_slice %192 {offsets = [0, 0], sizes = [8, 32], strides = [1, 1]} : vector<8x128xf32> to vector<8x32xf32>
    %194 = vector.extract_strided_slice %192 {offsets = [0, 32], sizes = [8, 32], strides = [1, 1]} : vector<8x128xf32> to vector<8x32xf32>
    %195 = vector.extract_strided_slice %192 {offsets = [0, 64], sizes = [8, 32], strides = [1, 1]} : vector<8x128xf32> to vector<8x32xf32>
    %196 = vector.extract_strided_slice %192 {offsets = [0, 96], sizes = [8, 32], strides = [1, 1]} : vector<8x128xf32> to vector<8x32xf32>
    %197 = arith.mulf %194, %165 : vector<8x32xf32>
    %198 = arith.mulf %193, %195 : vector<8x32xf32>
    %199 = arith.addf %197, %198 : vector<8x32xf32>
    %200 = math.tanh %199 : vector<8x32xf32>
    %201 = arith.mulf %196, %200 : vector<8x32xf32>
    %202 = tpu.concatenate %201, %184 in 1 : vector<8x32xf32>, vector<8x32xf32> -> vector<8x64xf32>
    %203 = arith.truncf %202 : vector<8x64xf32> to vector<8x64xbf16>
    %cst_47 = arith.constant dense<0.000000e+00> : vector<8x128xf32>
    %204 = tpu.matmul %203, %41, %cst_47 {dimension_numbers = #tpu.dot_dimension_numbers<[1], [0], [0], [1], [0, 0, 1, 1], [], []>} : vector<8x64xbf16>, vector<64x128xbf16>, vector<8x128xf32> -> vector<8x128xf32>
    %205 = arith.addf %204, %44 : vector<8x128xf32>
    %206 = arith.mulf %205, %36 : vector<8x128xf32>
    %207 = math.tanh %206 : vector<8x128xf32>
    %208 = arith.mulf %207, %36 : vector<8x128xf32>
    %209 = arith.addf %208, %39 : vector<8x128xf32>
    %210 = vector.extract_strided_slice %209 {offsets = [0, 0], sizes = [8, 32], strides = [1, 1]} : vector<8x128xf32> to vector<8x32xf32>
    %211 = vector.extract_strided_slice %209 {offsets = [0, 32], sizes = [8, 32], strides = [1, 1]} : vector<8x128xf32> to vector<8x32xf32>
    %212 = vector.extract_strided_slice %209 {offsets = [0, 64], sizes = [8, 32], strides = [1, 1]} : vector<8x128xf32> to vector<8x32xf32>
    %213 = vector.extract_strided_slice %209 {offsets = [0, 96], sizes = [8, 32], strides = [1, 1]} : vector<8x128xf32> to vector<8x32xf32>
    %214 = arith.mulf %211, %182 : vector<8x32xf32>
    %215 = arith.mulf %210, %212 : vector<8x32xf32>
    %216 = arith.addf %214, %215 : vector<8x32xf32>
    %217 = math.tanh %216 : vector<8x32xf32>
    %218 = arith.mulf %213, %217 : vector<8x32xf32>
    %c40 = arith.constant 40 : index
    %c0_48 = arith.constant 0 : index
    %219 = vector.load %arg12[%c40, %c0_48] : memref<128x128xf32, #tpu.memory_space<vmem>>, vector<8x128xf32>
    %220 = arith.truncf %201 : vector<8x32xf32> to vector<8x32xbf16>
    %cst_49 = arith.constant dense<0.000000e+00> : vector<8x128xf32>
    %221 = tpu.matmul %220, %40, %cst_49 {dimension_numbers = #tpu.dot_dimension_numbers<[1], [0], [0], [1], [0, 0, 1, 1], [], []>} : vector<8x32xbf16>, vector<32x128xbf16>, vector<8x128xf32> -> vector<8x128xf32>
    %222 = arith.addf %219, %221 : vector<8x128xf32>
    %223 = arith.mulf %222, %36 : vector<8x128xf32>
    %224 = math.tanh %223 : vector<8x128xf32>
    %225 = arith.mulf %224, %36 : vector<8x128xf32>
    %226 = arith.addf %225, %39 : vector<8x128xf32>
    %227 = vector.extract_strided_slice %226 {offsets = [0, 0], sizes = [8, 32], strides = [1, 1]} : vector<8x128xf32> to vector<8x32xf32>
    %228 = vector.extract_strided_slice %226 {offsets = [0, 32], sizes = [8, 32], strides = [1, 1]} : vector<8x128xf32> to vector<8x32xf32>
    %229 = vector.extract_strided_slice %226 {offsets = [0, 64], sizes = [8, 32], strides = [1, 1]} : vector<8x128xf32> to vector<8x32xf32>
    %230 = vector.extract_strided_slice %226 {offsets = [0, 96], sizes = [8, 32], strides = [1, 1]} : vector<8x128xf32> to vector<8x32xf32>
    %231 = arith.mulf %228, %199 : vector<8x32xf32>
    %232 = arith.mulf %227, %229 : vector<8x32xf32>
    %233 = arith.addf %231, %232 : vector<8x32xf32>
    %234 = math.tanh %233 : vector<8x32xf32>
    %235 = arith.mulf %230, %234 : vector<8x32xf32>
    %236 = tpu.concatenate %235, %218 in 1 : vector<8x32xf32>, vector<8x32xf32> -> vector<8x64xf32>
    %237 = arith.truncf %236 : vector<8x64xf32> to vector<8x64xbf16>
    %cst_50 = arith.constant dense<0.000000e+00> : vector<8x128xf32>
    %238 = tpu.matmul %237, %41, %cst_50 {dimension_numbers = #tpu.dot_dimension_numbers<[1], [0], [0], [1], [0, 0, 1, 1], [], []>} : vector<8x64xbf16>, vector<64x128xbf16>, vector<8x128xf32> -> vector<8x128xf32>
    %239 = arith.addf %238, %44 : vector<8x128xf32>
    %240 = arith.mulf %239, %36 : vector<8x128xf32>
    %241 = math.tanh %240 : vector<8x128xf32>
    %242 = arith.mulf %241, %36 : vector<8x128xf32>
    %243 = arith.addf %242, %39 : vector<8x128xf32>
    %244 = vector.extract_strided_slice %243 {offsets = [0, 0], sizes = [8, 32], strides = [1, 1]} : vector<8x128xf32> to vector<8x32xf32>
    %245 = vector.extract_strided_slice %243 {offsets = [0, 32], sizes = [8, 32], strides = [1, 1]} : vector<8x128xf32> to vector<8x32xf32>
    %246 = vector.extract_strided_slice %243 {offsets = [0, 64], sizes = [8, 32], strides = [1, 1]} : vector<8x128xf32> to vector<8x32xf32>
    %247 = vector.extract_strided_slice %243 {offsets = [0, 96], sizes = [8, 32], strides = [1, 1]} : vector<8x128xf32> to vector<8x32xf32>
    %248 = arith.mulf %245, %216 : vector<8x32xf32>
    %249 = arith.mulf %244, %246 : vector<8x32xf32>
    %250 = arith.addf %248, %249 : vector<8x32xf32>
    %251 = math.tanh %250 : vector<8x32xf32>
    %252 = arith.mulf %247, %251 : vector<8x32xf32>
    %c48 = arith.constant 48 : index
    %c0_51 = arith.constant 0 : index
    %253 = vector.load %arg12[%c48, %c0_51] : memref<128x128xf32, #tpu.memory_space<vmem>>, vector<8x128xf32>
    %254 = arith.truncf %235 : vector<8x32xf32> to vector<8x32xbf16>
    %cst_52 = arith.constant dense<0.000000e+00> : vector<8x128xf32>
    %255 = tpu.matmul %254, %40, %cst_52 {dimension_numbers = #tpu.dot_dimension_numbers<[1], [0], [0], [1], [0, 0, 1, 1], [], []>} : vector<8x32xbf16>, vector<32x128xbf16>, vector<8x128xf32> -> vector<8x128xf32>
    %256 = arith.addf %253, %255 : vector<8x128xf32>
    %257 = arith.mulf %256, %36 : vector<8x128xf32>
    %258 = math.tanh %257 : vector<8x128xf32>
    %259 = arith.mulf %258, %36 : vector<8x128xf32>
    %260 = arith.addf %259, %39 : vector<8x128xf32>
    %261 = vector.extract_strided_slice %260 {offsets = [0, 0], sizes = [8, 32], strides = [1, 1]} : vector<8x128xf32> to vector<8x32xf32>
    %262 = vector.extract_strided_slice %260 {offsets = [0, 32], sizes = [8, 32], strides = [1, 1]} : vector<8x128xf32> to vector<8x32xf32>
    %263 = vector.extract_strided_slice %260 {offsets = [0, 64], sizes = [8, 32], strides = [1, 1]} : vector<8x128xf32> to vector<8x32xf32>
    %264 = vector.extract_strided_slice %260 {offsets = [0, 96], sizes = [8, 32], strides = [1, 1]} : vector<8x128xf32> to vector<8x32xf32>
    %265 = arith.mulf %262, %233 : vector<8x32xf32>
    %266 = arith.mulf %261, %263 : vector<8x32xf32>
    %267 = arith.addf %265, %266 : vector<8x32xf32>
    %268 = math.tanh %267 : vector<8x32xf32>
    %269 = arith.mulf %264, %268 : vector<8x32xf32>
    %270 = tpu.concatenate %269, %252 in 1 : vector<8x32xf32>, vector<8x32xf32> -> vector<8x64xf32>
    %271 = arith.truncf %270 : vector<8x64xf32> to vector<8x64xbf16>
    %cst_53 = arith.constant dense<0.000000e+00> : vector<8x128xf32>
    %272 = tpu.matmul %271, %41, %cst_53 {dimension_numbers = #tpu.dot_dimension_numbers<[1], [0], [0], [1], [0, 0, 1, 1], [], []>} : vector<8x64xbf16>, vector<64x128xbf16>, vector<8x128xf32> -> vector<8x128xf32>
    %273 = arith.addf %272, %44 : vector<8x128xf32>
    %274 = arith.mulf %273, %36 : vector<8x128xf32>
    %275 = math.tanh %274 : vector<8x128xf32>
    %276 = arith.mulf %275, %36 : vector<8x128xf32>
    %277 = arith.addf %276, %39 : vector<8x128xf32>
    %278 = vector.extract_strided_slice %277 {offsets = [0, 0], sizes = [8, 32], strides = [1, 1]} : vector<8x128xf32> to vector<8x32xf32>
    %279 = vector.extract_strided_slice %277 {offsets = [0, 32], sizes = [8, 32], strides = [1, 1]} : vector<8x128xf32> to vector<8x32xf32>
    %280 = vector.extract_strided_slice %277 {offsets = [0, 64], sizes = [8, 32], strides = [1, 1]} : vector<8x128xf32> to vector<8x32xf32>
    %281 = vector.extract_strided_slice %277 {offsets = [0, 96], sizes = [8, 32], strides = [1, 1]} : vector<8x128xf32> to vector<8x32xf32>
    %282 = arith.mulf %279, %250 : vector<8x32xf32>
    %283 = arith.mulf %278, %280 : vector<8x32xf32>
    %284 = arith.addf %282, %283 : vector<8x32xf32>
    %285 = math.tanh %284 : vector<8x32xf32>
    %286 = arith.mulf %281, %285 : vector<8x32xf32>
    %c56 = arith.constant 56 : index
    %c0_54 = arith.constant 0 : index
    %287 = vector.load %arg12[%c56, %c0_54] : memref<128x128xf32, #tpu.memory_space<vmem>>, vector<8x128xf32>
    %288 = arith.truncf %269 : vector<8x32xf32> to vector<8x32xbf16>
    %cst_55 = arith.constant dense<0.000000e+00> : vector<8x128xf32>
    %289 = tpu.matmul %288, %40, %cst_55 {dimension_numbers = #tpu.dot_dimension_numbers<[1], [0], [0], [1], [0, 0, 1, 1], [], []>} : vector<8x32xbf16>, vector<32x128xbf16>, vector<8x128xf32> -> vector<8x128xf32>
    %290 = arith.addf %287, %289 : vector<8x128xf32>
    %291 = arith.mulf %290, %36 : vector<8x128xf32>
    %292 = math.tanh %291 : vector<8x128xf32>
    %293 = arith.mulf %292, %36 : vector<8x128xf32>
    %294 = arith.addf %293, %39 : vector<8x128xf32>
    %295 = vector.extract_strided_slice %294 {offsets = [0, 0], sizes = [8, 32], strides = [1, 1]} : vector<8x128xf32> to vector<8x32xf32>
    %296 = vector.extract_strided_slice %294 {offsets = [0, 32], sizes = [8, 32], strides = [1, 1]} : vector<8x128xf32> to vector<8x32xf32>
    %297 = vector.extract_strided_slice %294 {offsets = [0, 64], sizes = [8, 32], strides = [1, 1]} : vector<8x128xf32> to vector<8x32xf32>
    %298 = vector.extract_strided_slice %294 {offsets = [0, 96], sizes = [8, 32], strides = [1, 1]} : vector<8x128xf32> to vector<8x32xf32>
    %299 = arith.mulf %296, %267 : vector<8x32xf32>
    %300 = arith.mulf %295, %297 : vector<8x32xf32>
    %301 = arith.addf %299, %300 : vector<8x32xf32>
    %302 = math.tanh %301 : vector<8x32xf32>
    %303 = arith.mulf %298, %302 : vector<8x32xf32>
    %304 = tpu.concatenate %303, %286 in 1 : vector<8x32xf32>, vector<8x32xf32> -> vector<8x64xf32>
    %305 = arith.truncf %304 : vector<8x64xf32> to vector<8x64xbf16>
    %cst_56 = arith.constant dense<0.000000e+00> : vector<8x128xf32>
    %306 = tpu.matmul %305, %41, %cst_56 {dimension_numbers = #tpu.dot_dimension_numbers<[1], [0], [0], [1], [0, 0, 1, 1], [], []>} : vector<8x64xbf16>, vector<64x128xbf16>, vector<8x128xf32> -> vector<8x128xf32>
    %307 = arith.addf %306, %44 : vector<8x128xf32>
    %308 = arith.mulf %307, %36 : vector<8x128xf32>
    %309 = math.tanh %308 : vector<8x128xf32>
    %310 = arith.mulf %309, %36 : vector<8x128xf32>
    %311 = arith.addf %310, %39 : vector<8x128xf32>
    %312 = vector.extract_strided_slice %311 {offsets = [0, 0], sizes = [8, 32], strides = [1, 1]} : vector<8x128xf32> to vector<8x32xf32>
    %313 = vector.extract_strided_slice %311 {offsets = [0, 32], sizes = [8, 32], strides = [1, 1]} : vector<8x128xf32> to vector<8x32xf32>
    %314 = vector.extract_strided_slice %311 {offsets = [0, 64], sizes = [8, 32], strides = [1, 1]} : vector<8x128xf32> to vector<8x32xf32>
    %315 = vector.extract_strided_slice %311 {offsets = [0, 96], sizes = [8, 32], strides = [1, 1]} : vector<8x128xf32> to vector<8x32xf32>
    %316 = arith.mulf %313, %284 : vector<8x32xf32>
    %317 = arith.mulf %312, %314 : vector<8x32xf32>
    %318 = arith.addf %316, %317 : vector<8x32xf32>
    %319 = math.tanh %318 : vector<8x32xf32>
    %320 = arith.mulf %315, %319 : vector<8x32xf32>
    %c64 = arith.constant 64 : index
    %c0_57 = arith.constant 0 : index
    %321 = vector.load %arg12[%c64, %c0_57] : memref<128x128xf32, #tpu.memory_space<vmem>>, vector<8x128xf32>
    %322 = arith.truncf %303 : vector<8x32xf32> to vector<8x32xbf16>
    %cst_58 = arith.constant dense<0.000000e+00> : vector<8x128xf32>
    %323 = tpu.matmul %322, %40, %cst_58 {dimension_numbers = #tpu.dot_dimension_numbers<[1], [0], [0], [1], [0, 0, 1, 1], [], []>} : vector<8x32xbf16>, vector<32x128xbf16>, vector<8x128xf32> -> vector<8x128xf32>
    %324 = arith.addf %321, %323 : vector<8x128xf32>
    %325 = arith.mulf %324, %36 : vector<8x128xf32>
    %326 = math.tanh %325 : vector<8x128xf32>
    %327 = arith.mulf %326, %36 : vector<8x128xf32>
    %328 = arith.addf %327, %39 : vector<8x128xf32>
    %329 = vector.extract_strided_slice %328 {offsets = [0, 0], sizes = [8, 32], strides = [1, 1]} : vector<8x128xf32> to vector<8x32xf32>
    %330 = vector.extract_strided_slice %328 {offsets = [0, 32], sizes = [8, 32], strides = [1, 1]} : vector<8x128xf32> to vector<8x32xf32>
    %331 = vector.extract_strided_slice %328 {offsets = [0, 64], sizes = [8, 32], strides = [1, 1]} : vector<8x128xf32> to vector<8x32xf32>
    %332 = vector.extract_strided_slice %328 {offsets = [0, 96], sizes = [8, 32], strides = [1, 1]} : vector<8x128xf32> to vector<8x32xf32>
    %333 = arith.mulf %330, %301 : vector<8x32xf32>
    %334 = arith.mulf %329, %331 : vector<8x32xf32>
    %335 = arith.addf %333, %334 : vector<8x32xf32>
    %336 = math.tanh %335 : vector<8x32xf32>
    %337 = arith.mulf %332, %336 : vector<8x32xf32>
    %338 = tpu.concatenate %337, %320 in 1 : vector<8x32xf32>, vector<8x32xf32> -> vector<8x64xf32>
    %339 = arith.truncf %338 : vector<8x64xf32> to vector<8x64xbf16>
    %cst_59 = arith.constant dense<0.000000e+00> : vector<8x128xf32>
    %340 = tpu.matmul %339, %41, %cst_59 {dimension_numbers = #tpu.dot_dimension_numbers<[1], [0], [0], [1], [0, 0, 1, 1], [], []>} : vector<8x64xbf16>, vector<64x128xbf16>, vector<8x128xf32> -> vector<8x128xf32>
    %341 = arith.addf %340, %44 : vector<8x128xf32>
    %342 = arith.mulf %341, %36 : vector<8x128xf32>
    %343 = math.tanh %342 : vector<8x128xf32>
    %344 = arith.mulf %343, %36 : vector<8x128xf32>
    %345 = arith.addf %344, %39 : vector<8x128xf32>
    %346 = vector.extract_strided_slice %345 {offsets = [0, 0], sizes = [8, 32], strides = [1, 1]} : vector<8x128xf32> to vector<8x32xf32>
    %347 = vector.extract_strided_slice %345 {offsets = [0, 32], sizes = [8, 32], strides = [1, 1]} : vector<8x128xf32> to vector<8x32xf32>
    %348 = vector.extract_strided_slice %345 {offsets = [0, 64], sizes = [8, 32], strides = [1, 1]} : vector<8x128xf32> to vector<8x32xf32>
    %349 = vector.extract_strided_slice %345 {offsets = [0, 96], sizes = [8, 32], strides = [1, 1]} : vector<8x128xf32> to vector<8x32xf32>
    %350 = arith.mulf %347, %318 : vector<8x32xf32>
    %351 = arith.mulf %346, %348 : vector<8x32xf32>
    %352 = arith.addf %350, %351 : vector<8x32xf32>
    %353 = math.tanh %352 : vector<8x32xf32>
    %354 = arith.mulf %349, %353 : vector<8x32xf32>
    %c72 = arith.constant 72 : index
    %c0_60 = arith.constant 0 : index
    %355 = vector.load %arg12[%c72, %c0_60] : memref<128x128xf32, #tpu.memory_space<vmem>>, vector<8x128xf32>
    %356 = arith.truncf %337 : vector<8x32xf32> to vector<8x32xbf16>
    %cst_61 = arith.constant dense<0.000000e+00> : vector<8x128xf32>
    %357 = tpu.matmul %356, %40, %cst_61 {dimension_numbers = #tpu.dot_dimension_numbers<[1], [0], [0], [1], [0, 0, 1, 1], [], []>} : vector<8x32xbf16>, vector<32x128xbf16>, vector<8x128xf32> -> vector<8x128xf32>
    %358 = arith.addf %355, %357 : vector<8x128xf32>
    %359 = arith.mulf %358, %36 : vector<8x128xf32>
    %360 = math.tanh %359 : vector<8x128xf32>
    %361 = arith.mulf %360, %36 : vector<8x128xf32>
    %362 = arith.addf %361, %39 : vector<8x128xf32>
    %363 = vector.extract_strided_slice %362 {offsets = [0, 0], sizes = [8, 32], strides = [1, 1]} : vector<8x128xf32> to vector<8x32xf32>
    %364 = vector.extract_strided_slice %362 {offsets = [0, 32], sizes = [8, 32], strides = [1, 1]} : vector<8x128xf32> to vector<8x32xf32>
    %365 = vector.extract_strided_slice %362 {offsets = [0, 64], sizes = [8, 32], strides = [1, 1]} : vector<8x128xf32> to vector<8x32xf32>
    %366 = vector.extract_strided_slice %362 {offsets = [0, 96], sizes = [8, 32], strides = [1, 1]} : vector<8x128xf32> to vector<8x32xf32>
    %367 = arith.mulf %364, %335 : vector<8x32xf32>
    %368 = arith.mulf %363, %365 : vector<8x32xf32>
    %369 = arith.addf %367, %368 : vector<8x32xf32>
    %370 = math.tanh %369 : vector<8x32xf32>
    %371 = arith.mulf %366, %370 : vector<8x32xf32>
    %372 = tpu.concatenate %371, %354 in 1 : vector<8x32xf32>, vector<8x32xf32> -> vector<8x64xf32>
    %373 = arith.truncf %372 : vector<8x64xf32> to vector<8x64xbf16>
    %cst_62 = arith.constant dense<0.000000e+00> : vector<8x128xf32>
    %374 = tpu.matmul %373, %41, %cst_62 {dimension_numbers = #tpu.dot_dimension_numbers<[1], [0], [0], [1], [0, 0, 1, 1], [], []>} : vector<8x64xbf16>, vector<64x128xbf16>, vector<8x128xf32> -> vector<8x128xf32>
    %375 = arith.addf %374, %44 : vector<8x128xf32>
    %376 = arith.mulf %375, %36 : vector<8x128xf32>
    %377 = math.tanh %376 : vector<8x128xf32>
    %378 = arith.mulf %377, %36 : vector<8x128xf32>
    %379 = arith.addf %378, %39 : vector<8x128xf32>
    %380 = vector.extract_strided_slice %379 {offsets = [0, 0], sizes = [8, 32], strides = [1, 1]} : vector<8x128xf32> to vector<8x32xf32>
    %381 = vector.extract_strided_slice %379 {offsets = [0, 32], sizes = [8, 32], strides = [1, 1]} : vector<8x128xf32> to vector<8x32xf32>
    %382 = vector.extract_strided_slice %379 {offsets = [0, 64], sizes = [8, 32], strides = [1, 1]} : vector<8x128xf32> to vector<8x32xf32>
    %383 = vector.extract_strided_slice %379 {offsets = [0, 96], sizes = [8, 32], strides = [1, 1]} : vector<8x128xf32> to vector<8x32xf32>
    %384 = arith.mulf %381, %352 : vector<8x32xf32>
    %385 = arith.mulf %380, %382 : vector<8x32xf32>
    %386 = arith.addf %384, %385 : vector<8x32xf32>
    %387 = math.tanh %386 : vector<8x32xf32>
    %388 = arith.mulf %383, %387 : vector<8x32xf32>
    %c80 = arith.constant 80 : index
    %c0_63 = arith.constant 0 : index
    %389 = vector.load %arg12[%c80, %c0_63] : memref<128x128xf32, #tpu.memory_space<vmem>>, vector<8x128xf32>
    %390 = arith.truncf %371 : vector<8x32xf32> to vector<8x32xbf16>
    %cst_64 = arith.constant dense<0.000000e+00> : vector<8x128xf32>
    %391 = tpu.matmul %390, %40, %cst_64 {dimension_numbers = #tpu.dot_dimension_numbers<[1], [0], [0], [1], [0, 0, 1, 1], [], []>} : vector<8x32xbf16>, vector<32x128xbf16>, vector<8x128xf32> -> vector<8x128xf32>
    %392 = arith.addf %389, %391 : vector<8x128xf32>
    %393 = arith.mulf %392, %36 : vector<8x128xf32>
    %394 = math.tanh %393 : vector<8x128xf32>
    %395 = arith.mulf %394, %36 : vector<8x128xf32>
    %396 = arith.addf %395, %39 : vector<8x128xf32>
    %397 = vector.extract_strided_slice %396 {offsets = [0, 0], sizes = [8, 32], strides = [1, 1]} : vector<8x128xf32> to vector<8x32xf32>
    %398 = vector.extract_strided_slice %396 {offsets = [0, 32], sizes = [8, 32], strides = [1, 1]} : vector<8x128xf32> to vector<8x32xf32>
    %399 = vector.extract_strided_slice %396 {offsets = [0, 64], sizes = [8, 32], strides = [1, 1]} : vector<8x128xf32> to vector<8x32xf32>
    %400 = vector.extract_strided_slice %396 {offsets = [0, 96], sizes = [8, 32], strides = [1, 1]} : vector<8x128xf32> to vector<8x32xf32>
    %401 = arith.mulf %398, %369 : vector<8x32xf32>
    %402 = arith.mulf %397, %399 : vector<8x32xf32>
    %403 = arith.addf %401, %402 : vector<8x32xf32>
    %404 = math.tanh %403 : vector<8x32xf32>
    %405 = arith.mulf %400, %404 : vector<8x32xf32>
    %406 = tpu.concatenate %405, %388 in 1 : vector<8x32xf32>, vector<8x32xf32> -> vector<8x64xf32>
    %407 = arith.truncf %406 : vector<8x64xf32> to vector<8x64xbf16>
    %cst_65 = arith.constant dense<0.000000e+00> : vector<8x128xf32>
    %408 = tpu.matmul %407, %41, %cst_65 {dimension_numbers = #tpu.dot_dimension_numbers<[1], [0], [0], [1], [0, 0, 1, 1], [], []>} : vector<8x64xbf16>, vector<64x128xbf16>, vector<8x128xf32> -> vector<8x128xf32>
    %409 = arith.addf %408, %44 : vector<8x128xf32>
    %410 = arith.mulf %409, %36 : vector<8x128xf32>
    %411 = math.tanh %410 : vector<8x128xf32>
    %412 = arith.mulf %411, %36 : vector<8x128xf32>
    %413 = arith.addf %412, %39 : vector<8x128xf32>
    %414 = vector.extract_strided_slice %413 {offsets = [0, 0], sizes = [8, 32], strides = [1, 1]} : vector<8x128xf32> to vector<8x32xf32>
    %415 = vector.extract_strided_slice %413 {offsets = [0, 32], sizes = [8, 32], strides = [1, 1]} : vector<8x128xf32> to vector<8x32xf32>
    %416 = vector.extract_strided_slice %413 {offsets = [0, 64], sizes = [8, 32], strides = [1, 1]} : vector<8x128xf32> to vector<8x32xf32>
    %417 = vector.extract_strided_slice %413 {offsets = [0, 96], sizes = [8, 32], strides = [1, 1]} : vector<8x128xf32> to vector<8x32xf32>
    %418 = arith.mulf %415, %386 : vector<8x32xf32>
    %419 = arith.mulf %414, %416 : vector<8x32xf32>
    %420 = arith.addf %418, %419 : vector<8x32xf32>
    %421 = math.tanh %420 : vector<8x32xf32>
    %422 = arith.mulf %417, %421 : vector<8x32xf32>
    %c88 = arith.constant 88 : index
    %c0_66 = arith.constant 0 : index
    %423 = vector.load %arg12[%c88, %c0_66] : memref<128x128xf32, #tpu.memory_space<vmem>>, vector<8x128xf32>
    %424 = arith.truncf %405 : vector<8x32xf32> to vector<8x32xbf16>
    %cst_67 = arith.constant dense<0.000000e+00> : vector<8x128xf32>
    %425 = tpu.matmul %424, %40, %cst_67 {dimension_numbers = #tpu.dot_dimension_numbers<[1], [0], [0], [1], [0, 0, 1, 1], [], []>} : vector<8x32xbf16>, vector<32x128xbf16>, vector<8x128xf32> -> vector<8x128xf32>
    %426 = arith.addf %423, %425 : vector<8x128xf32>
    %427 = arith.mulf %426, %36 : vector<8x128xf32>
    %428 = math.tanh %427 : vector<8x128xf32>
    %429 = arith.mulf %428, %36 : vector<8x128xf32>
    %430 = arith.addf %429, %39 : vector<8x128xf32>
    %431 = vector.extract_strided_slice %430 {offsets = [0, 0], sizes = [8, 32], strides = [1, 1]} : vector<8x128xf32> to vector<8x32xf32>
    %432 = vector.extract_strided_slice %430 {offsets = [0, 32], sizes = [8, 32], strides = [1, 1]} : vector<8x128xf32> to vector<8x32xf32>
    %433 = vector.extract_strided_slice %430 {offsets = [0, 64], sizes = [8, 32], strides = [1, 1]} : vector<8x128xf32> to vector<8x32xf32>
    %434 = vector.extract_strided_slice %430 {offsets = [0, 96], sizes = [8, 32], strides = [1, 1]} : vector<8x128xf32> to vector<8x32xf32>
    %435 = arith.mulf %432, %403 : vector<8x32xf32>
    %436 = arith.mulf %431, %433 : vector<8x32xf32>
    %437 = arith.addf %435, %436 : vector<8x32xf32>
    %438 = math.tanh %437 : vector<8x32xf32>
    %439 = arith.mulf %434, %438 : vector<8x32xf32>
    %440 = tpu.concatenate %439, %422 in 1 : vector<8x32xf32>, vector<8x32xf32> -> vector<8x64xf32>
    %441 = arith.truncf %440 : vector<8x64xf32> to vector<8x64xbf16>
    %cst_68 = arith.constant dense<0.000000e+00> : vector<8x128xf32>
    %442 = tpu.matmul %441, %41, %cst_68 {dimension_numbers = #tpu.dot_dimension_numbers<[1], [0], [0], [1], [0, 0, 1, 1], [], []>} : vector<8x64xbf16>, vector<64x128xbf16>, vector<8x128xf32> -> vector<8x128xf32>
    %443 = arith.addf %442, %44 : vector<8x128xf32>
    %444 = arith.mulf %443, %36 : vector<8x128xf32>
    %445 = math.tanh %444 : vector<8x128xf32>
    %446 = arith.mulf %445, %36 : vector<8x128xf32>
    %447 = arith.addf %446, %39 : vector<8x128xf32>
    %448 = vector.extract_strided_slice %447 {offsets = [0, 0], sizes = [8, 32], strides = [1, 1]} : vector<8x128xf32> to vector<8x32xf32>
    %449 = vector.extract_strided_slice %447 {offsets = [0, 32], sizes = [8, 32], strides = [1, 1]} : vector<8x128xf32> to vector<8x32xf32>
    %450 = vector.extract_strided_slice %447 {offsets = [0, 64], sizes = [8, 32], strides = [1, 1]} : vector<8x128xf32> to vector<8x32xf32>
    %451 = vector.extract_strided_slice %447 {offsets = [0, 96], sizes = [8, 32], strides = [1, 1]} : vector<8x128xf32> to vector<8x32xf32>
    %452 = arith.mulf %449, %420 : vector<8x32xf32>
    %453 = arith.mulf %448, %450 : vector<8x32xf32>
    %454 = arith.addf %452, %453 : vector<8x32xf32>
    %455 = math.tanh %454 : vector<8x32xf32>
    %456 = arith.mulf %451, %455 : vector<8x32xf32>
    %c96 = arith.constant 96 : index
    %c0_69 = arith.constant 0 : index
    %457 = vector.load %arg12[%c96, %c0_69] : memref<128x128xf32, #tpu.memory_space<vmem>>, vector<8x128xf32>
    %458 = arith.truncf %439 : vector<8x32xf32> to vector<8x32xbf16>
    %cst_70 = arith.constant dense<0.000000e+00> : vector<8x128xf32>
    %459 = tpu.matmul %458, %40, %cst_70 {dimension_numbers = #tpu.dot_dimension_numbers<[1], [0], [0], [1], [0, 0, 1, 1], [], []>} : vector<8x32xbf16>, vector<32x128xbf16>, vector<8x128xf32> -> vector<8x128xf32>
    %460 = arith.addf %457, %459 : vector<8x128xf32>
    %461 = arith.mulf %460, %36 : vector<8x128xf32>
    %462 = math.tanh %461 : vector<8x128xf32>
    %463 = arith.mulf %462, %36 : vector<8x128xf32>
    %464 = arith.addf %463, %39 : vector<8x128xf32>
    %465 = vector.extract_strided_slice %464 {offsets = [0, 0], sizes = [8, 32], strides = [1, 1]} : vector<8x128xf32> to vector<8x32xf32>
    %466 = vector.extract_strided_slice %464 {offsets = [0, 32], sizes = [8, 32], strides = [1, 1]} : vector<8x128xf32> to vector<8x32xf32>
    %467 = vector.extract_strided_slice %464 {offsets = [0, 64], sizes = [8, 32], strides = [1, 1]} : vector<8x128xf32> to vector<8x32xf32>
    %468 = vector.extract_strided_slice %464 {offsets = [0, 96], sizes = [8, 32], strides = [1, 1]} : vector<8x128xf32> to vector<8x32xf32>
    %469 = arith.mulf %466, %437 : vector<8x32xf32>
    %470 = arith.mulf %465, %467 : vector<8x32xf32>
    %471 = arith.addf %469, %470 : vector<8x32xf32>
    %472 = math.tanh %471 : vector<8x32xf32>
    %473 = arith.mulf %468, %472 : vector<8x32xf32>
    %474 = tpu.concatenate %473, %456 in 1 : vector<8x32xf32>, vector<8x32xf32> -> vector<8x64xf32>
    %475 = arith.truncf %474 : vector<8x64xf32> to vector<8x64xbf16>
    %cst_71 = arith.constant dense<0.000000e+00> : vector<8x128xf32>
    %476 = tpu.matmul %475, %41, %cst_71 {dimension_numbers = #tpu.dot_dimension_numbers<[1], [0], [0], [1], [0, 0, 1, 1], [], []>} : vector<8x64xbf16>, vector<64x128xbf16>, vector<8x128xf32> -> vector<8x128xf32>
    %477 = arith.addf %476, %44 : vector<8x128xf32>
    %478 = arith.mulf %477, %36 : vector<8x128xf32>
    %479 = math.tanh %478 : vector<8x128xf32>
    %480 = arith.mulf %479, %36 : vector<8x128xf32>
    %481 = arith.addf %480, %39 : vector<8x128xf32>
    %482 = vector.extract_strided_slice %481 {offsets = [0, 0], sizes = [8, 32], strides = [1, 1]} : vector<8x128xf32> to vector<8x32xf32>
    %483 = vector.extract_strided_slice %481 {offsets = [0, 32], sizes = [8, 32], strides = [1, 1]} : vector<8x128xf32> to vector<8x32xf32>
    %484 = vector.extract_strided_slice %481 {offsets = [0, 64], sizes = [8, 32], strides = [1, 1]} : vector<8x128xf32> to vector<8x32xf32>
    %485 = vector.extract_strided_slice %481 {offsets = [0, 96], sizes = [8, 32], strides = [1, 1]} : vector<8x128xf32> to vector<8x32xf32>
    %486 = arith.mulf %483, %454 : vector<8x32xf32>
    %487 = arith.mulf %482, %484 : vector<8x32xf32>
    %488 = arith.addf %486, %487 : vector<8x32xf32>
    %489 = math.tanh %488 : vector<8x32xf32>
    %490 = arith.mulf %485, %489 : vector<8x32xf32>
    %c104 = arith.constant 104 : index
    %c0_72 = arith.constant 0 : index
    %491 = vector.load %arg12[%c104, %c0_72] : memref<128x128xf32, #tpu.memory_space<vmem>>, vector<8x128xf32>
    %492 = arith.truncf %473 : vector<8x32xf32> to vector<8x32xbf16>
    %cst_73 = arith.constant dense<0.000000e+00> : vector<8x128xf32>
    %493 = tpu.matmul %492, %40, %cst_73 {dimension_numbers = #tpu.dot_dimension_numbers<[1], [0], [0], [1], [0, 0, 1, 1], [], []>} : vector<8x32xbf16>, vector<32x128xbf16>, vector<8x128xf32> -> vector<8x128xf32>
    %494 = arith.addf %491, %493 : vector<8x128xf32>
    %495 = arith.mulf %494, %36 : vector<8x128xf32>
    %496 = math.tanh %495 : vector<8x128xf32>
    %497 = arith.mulf %496, %36 : vector<8x128xf32>
    %498 = arith.addf %497, %39 : vector<8x128xf32>
    %499 = vector.extract_strided_slice %498 {offsets = [0, 0], sizes = [8, 32], strides = [1, 1]} : vector<8x128xf32> to vector<8x32xf32>
    %500 = vector.extract_strided_slice %498 {offsets = [0, 32], sizes = [8, 32], strides = [1, 1]} : vector<8x128xf32> to vector<8x32xf32>
    %501 = vector.extract_strided_slice %498 {offsets = [0, 64], sizes = [8, 32], strides = [1, 1]} : vector<8x128xf32> to vector<8x32xf32>
    %502 = vector.extract_strided_slice %498 {offsets = [0, 96], sizes = [8, 32], strides = [1, 1]} : vector<8x128xf32> to vector<8x32xf32>
    %503 = arith.mulf %500, %471 : vector<8x32xf32>
    %504 = arith.mulf %499, %501 : vector<8x32xf32>
    %505 = arith.addf %503, %504 : vector<8x32xf32>
    %506 = math.tanh %505 : vector<8x32xf32>
    %507 = arith.mulf %502, %506 : vector<8x32xf32>
    %508 = tpu.concatenate %507, %490 in 1 : vector<8x32xf32>, vector<8x32xf32> -> vector<8x64xf32>
    %509 = arith.truncf %508 : vector<8x64xf32> to vector<8x64xbf16>
    %cst_74 = arith.constant dense<0.000000e+00> : vector<8x128xf32>
    %510 = tpu.matmul %509, %41, %cst_74 {dimension_numbers = #tpu.dot_dimension_numbers<[1], [0], [0], [1], [0, 0, 1, 1], [], []>} : vector<8x64xbf16>, vector<64x128xbf16>, vector<8x128xf32> -> vector<8x128xf32>
    %511 = arith.addf %510, %44 : vector<8x128xf32>
    %512 = arith.mulf %511, %36 : vector<8x128xf32>
    %513 = math.tanh %512 : vector<8x128xf32>
    %514 = arith.mulf %513, %36 : vector<8x128xf32>
    %515 = arith.addf %514, %39 : vector<8x128xf32>
    %516 = vector.extract_strided_slice %515 {offsets = [0, 0], sizes = [8, 32], strides = [1, 1]} : vector<8x128xf32> to vector<8x32xf32>
    %517 = vector.extract_strided_slice %515 {offsets = [0, 32], sizes = [8, 32], strides = [1, 1]} : vector<8x128xf32> to vector<8x32xf32>
    %518 = vector.extract_strided_slice %515 {offsets = [0, 64], sizes = [8, 32], strides = [1, 1]} : vector<8x128xf32> to vector<8x32xf32>
    %519 = vector.extract_strided_slice %515 {offsets = [0, 96], sizes = [8, 32], strides = [1, 1]} : vector<8x128xf32> to vector<8x32xf32>
    %520 = arith.mulf %517, %488 : vector<8x32xf32>
    %521 = arith.mulf %516, %518 : vector<8x32xf32>
    %522 = arith.addf %520, %521 : vector<8x32xf32>
    %523 = math.tanh %522 : vector<8x32xf32>
    %524 = arith.mulf %519, %523 : vector<8x32xf32>
    %c112 = arith.constant 112 : index
    %c0_75 = arith.constant 0 : index
    %525 = vector.load %arg12[%c112, %c0_75] : memref<128x128xf32, #tpu.memory_space<vmem>>, vector<8x128xf32>
    %526 = arith.truncf %507 : vector<8x32xf32> to vector<8x32xbf16>
    %cst_76 = arith.constant dense<0.000000e+00> : vector<8x128xf32>
    %527 = tpu.matmul %526, %40, %cst_76 {dimension_numbers = #tpu.dot_dimension_numbers<[1], [0], [0], [1], [0, 0, 1, 1], [], []>} : vector<8x32xbf16>, vector<32x128xbf16>, vector<8x128xf32> -> vector<8x128xf32>
    %528 = arith.addf %525, %527 : vector<8x128xf32>
    %529 = arith.mulf %528, %36 : vector<8x128xf32>
    %530 = math.tanh %529 : vector<8x128xf32>
    %531 = arith.mulf %530, %36 : vector<8x128xf32>
    %532 = arith.addf %531, %39 : vector<8x128xf32>
    %533 = vector.extract_strided_slice %532 {offsets = [0, 0], sizes = [8, 32], strides = [1, 1]} : vector<8x128xf32> to vector<8x32xf32>
    %534 = vector.extract_strided_slice %532 {offsets = [0, 32], sizes = [8, 32], strides = [1, 1]} : vector<8x128xf32> to vector<8x32xf32>
    %535 = vector.extract_strided_slice %532 {offsets = [0, 64], sizes = [8, 32], strides = [1, 1]} : vector<8x128xf32> to vector<8x32xf32>
    %536 = vector.extract_strided_slice %532 {offsets = [0, 96], sizes = [8, 32], strides = [1, 1]} : vector<8x128xf32> to vector<8x32xf32>
    %537 = arith.mulf %534, %505 : vector<8x32xf32>
    %538 = arith.mulf %533, %535 : vector<8x32xf32>
    %539 = arith.addf %537, %538 : vector<8x32xf32>
    %540 = math.tanh %539 : vector<8x32xf32>
    %541 = arith.mulf %536, %540 : vector<8x32xf32>
    %542 = tpu.concatenate %541, %524 in 1 : vector<8x32xf32>, vector<8x32xf32> -> vector<8x64xf32>
    %543 = arith.truncf %542 : vector<8x64xf32> to vector<8x64xbf16>
    %cst_77 = arith.constant dense<0.000000e+00> : vector<8x128xf32>
    %544 = tpu.matmul %543, %41, %cst_77 {dimension_numbers = #tpu.dot_dimension_numbers<[1], [0], [0], [1], [0, 0, 1, 1], [], []>} : vector<8x64xbf16>, vector<64x128xbf16>, vector<8x128xf32> -> vector<8x128xf32>
    %545 = arith.addf %544, %44 : vector<8x128xf32>
    %546 = arith.mulf %545, %36 : vector<8x128xf32>
    %547 = math.tanh %546 : vector<8x128xf32>
    %548 = arith.mulf %547, %36 : vector<8x128xf32>
    %549 = arith.addf %548, %39 : vector<8x128xf32>
    %550 = vector.extract_strided_slice %549 {offsets = [0, 0], sizes = [8, 32], strides = [1, 1]} : vector<8x128xf32> to vector<8x32xf32>
    %551 = vector.extract_strided_slice %549 {offsets = [0, 32], sizes = [8, 32], strides = [1, 1]} : vector<8x128xf32> to vector<8x32xf32>
    %552 = vector.extract_strided_slice %549 {offsets = [0, 64], sizes = [8, 32], strides = [1, 1]} : vector<8x128xf32> to vector<8x32xf32>
    %553 = vector.extract_strided_slice %549 {offsets = [0, 96], sizes = [8, 32], strides = [1, 1]} : vector<8x128xf32> to vector<8x32xf32>
    %554 = arith.mulf %551, %522 : vector<8x32xf32>
    %555 = arith.mulf %550, %552 : vector<8x32xf32>
    %556 = arith.addf %554, %555 : vector<8x32xf32>
    %557 = math.tanh %556 : vector<8x32xf32>
    %558 = arith.mulf %553, %557 : vector<8x32xf32>
    %c120 = arith.constant 120 : index
    %c0_78 = arith.constant 0 : index
    %559 = vector.load %arg12[%c120, %c0_78] : memref<128x128xf32, #tpu.memory_space<vmem>>, vector<8x128xf32>
    %560 = arith.truncf %541 : vector<8x32xf32> to vector<8x32xbf16>
    %cst_79 = arith.constant dense<0.000000e+00> : vector<8x128xf32>
    %561 = tpu.matmul %560, %40, %cst_79 {dimension_numbers = #tpu.dot_dimension_numbers<[1], [0], [0], [1], [0, 0, 1, 1], [], []>} : vector<8x32xbf16>, vector<32x128xbf16>, vector<8x128xf32> -> vector<8x128xf32>
    %562 = arith.addf %559, %561 : vector<8x128xf32>
    %563 = arith.mulf %562, %36 : vector<8x128xf32>
    %564 = math.tanh %563 : vector<8x128xf32>
    %565 = arith.mulf %564, %36 : vector<8x128xf32>
    %566 = arith.addf %565, %39 : vector<8x128xf32>
    %567 = vector.extract_strided_slice %566 {offsets = [0, 0], sizes = [8, 32], strides = [1, 1]} : vector<8x128xf32> to vector<8x32xf32>
    %568 = vector.extract_strided_slice %566 {offsets = [0, 32], sizes = [8, 32], strides = [1, 1]} : vector<8x128xf32> to vector<8x32xf32>
    %569 = vector.extract_strided_slice %566 {offsets = [0, 64], sizes = [8, 32], strides = [1, 1]} : vector<8x128xf32> to vector<8x32xf32>
    %570 = vector.extract_strided_slice %566 {offsets = [0, 96], sizes = [8, 32], strides = [1, 1]} : vector<8x128xf32> to vector<8x32xf32>
    %571 = arith.mulf %568, %539 : vector<8x32xf32>
    %572 = arith.mulf %567, %569 : vector<8x32xf32>
    %573 = arith.addf %571, %572 : vector<8x32xf32>
    %574 = math.tanh %573 : vector<8x32xf32>
    %575 = arith.mulf %570, %574 : vector<8x32xf32>
    %576 = tpu.concatenate %575, %558 in 1 : vector<8x32xf32>, vector<8x32xf32> -> vector<8x64xf32>
    %577 = arith.truncf %576 : vector<8x64xf32> to vector<8x64xbf16>
    %cst_80 = arith.constant dense<0.000000e+00> : vector<8x128xf32>
    %578 = tpu.matmul %577, %41, %cst_80 {dimension_numbers = #tpu.dot_dimension_numbers<[1], [0], [0], [1], [0, 0, 1, 1], [], []>} : vector<8x64xbf16>, vector<64x128xbf16>, vector<8x128xf32> -> vector<8x128xf32>
    %579 = arith.addf %578, %44 : vector<8x128xf32>
    %580 = arith.mulf %579, %36 : vector<8x128xf32>
    %581 = math.tanh %580 : vector<8x128xf32>
    %582 = arith.mulf %581, %36 : vector<8x128xf32>
    %583 = arith.addf %582, %39 : vector<8x128xf32>
    %584 = vector.extract_strided_slice %583 {offsets = [0, 0], sizes = [8, 32], strides = [1, 1]} : vector<8x128xf32> to vector<8x32xf32>
    %585 = vector.extract_strided_slice %583 {offsets = [0, 32], sizes = [8, 32], strides = [1, 1]} : vector<8x128xf32> to vector<8x32xf32>
    %586 = vector.extract_strided_slice %583 {offsets = [0, 64], sizes = [8, 32], strides = [1, 1]} : vector<8x128xf32> to vector<8x32xf32>
    %587 = vector.extract_strided_slice %583 {offsets = [0, 96], sizes = [8, 32], strides = [1, 1]} : vector<8x128xf32> to vector<8x32xf32>
    %588 = arith.mulf %585, %556 : vector<8x32xf32>
    %589 = arith.mulf %584, %586 : vector<8x32xf32>
    %590 = arith.addf %588, %589 : vector<8x32xf32>
    %591 = math.tanh %590 : vector<8x32xf32>
    %592 = arith.mulf %587, %591 : vector<8x32xf32>
    %593 = arith.truncf %592 : vector<8x32xf32> to vector<8x32xbf16>
    %c0_81 = arith.constant 0 : index
    %c0_82 = arith.constant 0 : index
    %594 = vector.load %arg9[%c0_81, %c0_82] : memref<32x8xbf16, #tpu.memory_space<vmem>>, vector<32x8xbf16>
    %cst_83 = arith.constant dense<0.000000e+00> : vector<8x8xf32>
    %595 = tpu.matmul %593, %594, %cst_83 {dimension_numbers = #tpu.dot_dimension_numbers<[1], [0], [0], [1], [0, 0, 1, 1], [], []>} : vector<8x32xbf16>, vector<32x8xbf16>, vector<8x8xf32> -> vector<8x8xf32>
    %c0_84 = arith.constant 0 : index
    %c0_85 = arith.constant 0 : index
    %596 = vector.load %arg10[%c0_84, %c0_85] : memref<1x8xf32, #tpu.memory_space<vmem>>, vector<1x8xf32>
    %597 = vector.broadcast %596 : vector<1x8xf32> to vector<8x8xf32>
    %598 = arith.addf %595, %597 : vector<8x8xf32>
    %c0_86 = arith.constant 0 : index
    %c0_87 = arith.constant 0 : index
    %599 = vector.load %arg11[%c0_86, %c0_87] : memref<8x8xf32, #tpu.memory_space<vmem>>, vector<8x8xf32>
    tpu.vector_store %arg11[%c0_86, %c0_87], %598 {strides = array<i32>} : memref<8x8xf32, #tpu.memory_space<vmem>>, vector<8x8xf32>,
    return
  }
}

</mosaic_0001>

<bundles_post_ra>
// kernel: lstm_forward.1
= control target key start
LH: loop header
LB: loop body
LE: loop exit
PB: predicated region body
PF: predicated region fallthrough
CT: control target
= control target key end

     0   :  { %s5730_s0 = inlined_call_operand.vmem [shape: f32[128,8], index: 0, kind: input, shape index: {}]   ;;  %s5731_s1 = inlined_call_operand.vmem [shape: f32[128,128], index: 1, kind: input, shape index: {}]   ;;  %s5732_s2 = inlined_call_operand.vmem [shape: f32[128,1], index: 2, kind: input, shape index: {}]   ;;  %s5733_s3 = inlined_call_operand.vmem [shape: f32[128,1], index: 3, kind: input, shape index: {}]   ;;  %s5734_s4 = inlined_call_operand.vmem [shape: bf16[8,128], index: 4, kind: input, shape index: {}]   ;;  %s5735_s5 = inlined_call_operand.vmem [shape: bf16[32,128], index: 5, kind: input, shape index: {}]   ;;  %s5736_s6 = inlined_call_operand.vmem [shape: f32[1,128], index: 6, kind: input, shape index: {}]   ;;  %s5737_s7 = inlined_call_operand.vmem [shape: bf16[64,128], index: 7, kind: input, shape index: {}]   ;;  %s5738_s8 = inlined_call_operand.vmem [shape: f32[1,128], index: 8, kind: input, shape index: {}]   ;;  %s5739_s9 = inlined_call_operand.vmem [shape: bf16[32,8], index: 9, kind: input, shape index: {}]   ;;  %s5740_s10 = inlined_call_operand.vmem [shape: f32[1,8], index: 10, kind: input, shape index: {}]   ;;  %s5741_s11 = inlined_call_operand.hbm [shape: f32[8,8], index: 11, kind: output, shape index: {}]  }
   0x1   :  { %v4364_v0 = vld [vmem:[%s5730_s0 + $0x78] sm:$0xff]  ;;  %v4369_v1 = vld [vmem:[%s5730_s0 + $0x70] sm:$0xff]  ;;  %v4376_v2 = vld [vmem:[%s5730_s0 + $0x68] sm:$0xff] }
   0x2   :  { %3620 = vmatprep.subr.mxu0 %v4364_v0  ;;  %v4383_v3 = vld [vmem:[%s5730_s0 + $0x60] sm:$0xff]  ;;  %v4393_v5 = vld [vmem:[%s5730_s0 + $0x58] sm:$0xff]  ;;  %v4400_v6 = vld [vmem:[%s5730_s0 + $0x50] sm:$0xff] }
   0x3   :  { %3621 = vmatpush3.msra.mxu0 %v4364_v0  ;;  %v56_v4 = vld [vmem:[%s5731_s1] sm:$0xff]  ;;  %v4407_v7 = vld [vmem:[%s5730_s0 + $0x48] sm:$0xff]  ;;  %v4419_v9 = vld [vmem:[%s5730_s0 + $0x38] sm:$0xff] }
   0x4   :  { %3622 = vmatprep.subr.mxu0 %v4369_v1  ;;  %3652 = vmatprep.mubr.f32.mxu0 %v56_v4  ;;  %v4412_v8 = vld [vmem:[%s5730_s0 + $0x40] sm:$0xff]  ;;  %v4428_v10 = vld [vmem:[%s5730_s0 + $0x30] sm:$0xff] }
   0x5   :  { %3623 = vmatpush3.msra.mxu0 %v4369_v1  ;;  %3708 = vmatprep.mubr.f32.mxu1 %v56_v4 }
   0x6   :  { %3624 = vmatprep.subr.mxu0 %v4376_v2 }
   0x7   :  { %3625 = vmatpush3.msra.mxu0 %v4376_v2 }
   0x8   :  { %3626 = vmatprep.subr.mxu0 %v4383_v3 }
   0x9   :  { %3627 = vmatpush3.msra.mxu0 %v4383_v3 }
   0xa   :  { %3628 = vmatprep.subr.mxu0 %v4393_v5 }
   0xb   :  { %3629 = vmatpush3.msra.mxu0 %v4393_v5 }
   0xc   :  { %3630 = vmatprep.subr.mxu0 %v4400_v6 }
   0xd   :  { %3631 = vmatpush3.msra.mxu0 %v4400_v6 }
   0xe   :  { %3632 = vmatprep.subr.mxu0 %v4407_v7 }
   0xf   :  { %3633 = vmatpush3.msra.mxu0 %v4407_v7 }
  0x10   :  { %3634 = vmatprep.subr.mxu0 %v4412_v8 }
  0x11   :  { %3635 = vmatpush3.msra.mxu0 %v4412_v8 }
  0x12   :  { %16 = vsyncpa [#allocation4], 0  ;;  %3636 = vmatprep.subr.mxu0 %v4419_v9  ;;  %v4435_v11 = vld [vmem:[%s5730_s0 + $0x28] sm:$0xff]  ;;  %v4442_v12 = vld [vmem:[%s5730_s0 + $0x20] sm:$0xff]  ;;  %vm217_vm0 = vcmask 64512   ;;  %vm803_vm1 = vcmask 1043456  }
  0x13   :  { %3637 = vmatpush3.msra.mxu0 %v4419_v9  ;;  %v4449_v13 = vld [vmem:[%s5730_s0 + $0x18] sm:$0xff]  ;;  %v4456_v14 = vld [vmem:[%s5730_s0 + $0x10] sm:$0xff]  ;;  %v4463_v15 = vld [vmem:[%s5730_s0 + $0x8] sm:$0xff]  ;;  %vm4296_vm2 = vmmov 0   ;;  %s4298_s23 = smov 64   ;;  %vm959_vm6 = vcmask 261120  }
  0x14   :  { %3638 = vmatprep.subr.mxu0 %v4428_v10  ;;  %v4470_v16 = vld [vmem:[%s5730_s0] sm:$0xff]  ;;  %v4477_v17 = vld [vmem:[%s5731_s1 + $0x8] sm:$0xff]  ;;  %v4483_v18 = vld [vmem:[%s5731_s1 + $0x10] sm:$0xff]  ;;  %vm1055_vm7 = vcmask 523264   ;;  %s4300_s13 = smov [#allocation3]  }
  0x15   :  { %3639 = vmatpush3.msra.mxu0 %v4428_v10  ;;  %v4491_v19 = vld [vmem:[%s5731_s1 + $0x18] sm:$0xff]  ;;  %v4496_v20 = vld [vmem:[%s5731_s1 + $0x20] sm:$0xff]  ;;  %v4503_v21 = vld [vmem:[%s5731_s1 + $0x28] sm:$0xff] }
  0x16   :  { %3640 = vmatprep.subr.mxu0 %v4435_v11  ;;  %v4508_v22 = vld [vmem:[%s5731_s1 + $0x30] sm:$0xff]  ;;  %v4515_v23 = vld [vmem:[%s5731_s1 + $0x38] sm:$0xff]  ;;  %v4520_v24 = vld [vmem:[%s5731_s1 + $0x40] sm:$0xff] }
  0x17   :  { %3641 = vmatpush3.msra.mxu0 %v4435_v11  ;;  %v4527_v25 = vld [vmem:[%s5731_s1 + $0x48] sm:$0xff]  ;;  %v4532_v26 = vld [vmem:[%s5731_s1 + $0x50] sm:$0xff]  ;;  %v4539_v27 = vld [vmem:[%s5731_s1 + $0x58] sm:$0xff] }
  0x18   :  { %3642 = vmatprep.subr.mxu0 %v4442_v12  ;;  %v4544_v28 = vld [vmem:[%s5731_s1 + $0x60] sm:$0xff]  ;;  %v4551_v29 = vld [vmem:[%s5731_s1 + $0x68] sm:$0xff]  ;;  %v4556_v30 = vld [vmem:[%s5731_s1 + $0x70] sm:$0xff] }
  0x19   :  { %3643 = vmatpush3.msra.mxu0 %v4442_v12  ;;  %v4563_v31 = vld [vmem:[%s5731_s1 + $0x78] sm:$0xff] }
  0x1a   :  { %3644 = vmatprep.subr.mxu0 %v4449_v13 }
  0x1b   :  { %3645 = vmatpush3.msra.mxu0 %v4449_v13 }
  0x1c   :  { %3646 = vmatprep.subr.mxu0 %v4456_v14 }
  0x1d   :  { %3647 = vmatpush3.msra.mxu0 %v4456_v14 }
  0x1e   :  { %3648 = vmatprep.subr.mxu0 %v4463_v15 }
  0x1f   :  { %3649 = vmatpush3.msra.mxu0 %v4463_v15 }
  0x20   :  { %3650 = vmatprep.subr.mxu0 %v4470_v16 }
  0x21   :  { %3651 = vmatpush3.msra.mxu0 %v4470_v16 }
  0x22   :  { %3653 = vmatmul.mubr.f32.vlgmr.msra.gmra.mxu0 %v4477_v17 }
  0x23   :  { %3655 = vmatprep.mubr.f32.mxu0 %v4483_v18 }
  0x26   :  { %3656 = vmatmul.mubr.f32.gmra.mxu0 %v4491_v19 }
  0x27   :  { %3658 = vmatprep.mubr.f32.mxu0 %v4496_v20 }
  0x2a   :  { %3659 = vmatmul.mubr.f32.gmra.mxu0 %v4503_v21 }
  0x2b   :  { %3661 = vmatprep.mubr.f32.mxu0 %v4508_v22 }
  0x2e   :  { %3662 = vmatmul.mubr.f32.gmra.mxu0 %v4515_v23 }
  0x2f   :  { %3664 = vmatprep.mubr.f32.mxu0 %v4520_v24 }
  0x32   :  { %3665 = vmatmul.mubr.f32.gmra.mxu0 %v4527_v25 }
  0x33   :  { %3667 = vmatprep.mubr.f32.mxu0 %v4532_v26 }
  0x36   :  { %3668 = vmatmul.mubr.f32.gmra.mxu0 %v4539_v27 }
  0x37   :  { %3670 = vmatprep.mubr.f32.mxu0 %v4544_v28 }
  0x3a   :  { %3671 = vmatmul.mubr.f32.gmra.mxu0 %v4551_v29 }
  0x3b   :  { %3673 = vmatprep.mubr.f32.mxu0 %v4556_v30 }
  0x3e   :  { %3674 = vmatmul.mubr.f32.gmra.mxu0 %v4563_v31 }
  0xe2   :  { %v3654_v32 = vpop.f32.mrf.mxu0 }
  0xe3   :  { %v221_v63 = vsel %vm217_vm0, %v3654_v32, 0.0 }
  0xe4   :  { %v138_v33 = vpop.f32.mrf.mxu0 }
  0xe5   :  { %v218_v61 = vsel %vm217_vm0, %v138_v33, 0.0 }
  0xe6   :  { %v3657_v34 = vpop.f32.mrf.mxu0 }
  0xe7   :  { %v227_v62 = vsel %vm217_vm0, %v3657_v34, 0.0 }
  0xe8   :  { %v148_v35 = vpop.f32.mrf.mxu0 }
  0xe9   :  { %v224_v59 = vsel %vm217_vm0, %v148_v35, 0.0 }
  0xea   :  { %v3660_v36 = vpop.f32.mrf.mxu0 }
  0xeb   :  { %v233_v60 = vsel %vm217_vm0, %v3660_v36, 0.0 }
  0xec   :  { %v158_v37 = vpop.f32.mrf.mxu0 }
  0xed   :  { %v230_v57 = vsel %vm217_vm0, %v158_v37, 0.0 }
  0xee   :  { %v3663_v38 = vpop.f32.mrf.mxu0 }
  0xef   :  { %v239_v58 = vsel %vm217_vm0, %v3663_v38, 0.0 }
  0xf0   :  { %v168_v39 = vpop.f32.mrf.mxu0 }
  0xf1   :  { %v236_v55 = vsel %vm217_vm0, %v168_v39, 0.0 }
  0xf2   :  { %v3666_v40 = vpop.f32.mrf.mxu0 }
  0xf3   :  { %v245_v56 = vsel %vm217_vm0, %v3666_v40, 0.0 }
  0xf4   :  { %v178_v41 = vpop.f32.mrf.mxu0 }
  0xf5   :  { %v242_v53 = vsel %vm217_vm0, %v178_v41, 0.0 }
  0xf6   :  { %v3669_v42 = vpop.f32.mrf.mxu0 }
  0xf7   :  { %v251_v54 = vsel %vm217_vm0, %v3669_v42, 0.0 }
  0xf8   :  { %v188_v43 = vpop.f32.mrf.mxu0 }
  0xf9   :  { %v248_v51 = vsel %vm217_vm0, %v188_v43, 0.0 }
  0xfa   :  { %v3672_v44 = vpop.f32.mrf.mxu0 }
  0xfb   :  { %v257_v45 = vsel %vm217_vm0, %v3672_v44, 0.0 }
  0xfc   :  { %258 = vadd.xlane.f32.xlu1 %v257_v45  ;;  %v198_v46 = vpop.f32.mrf.mxu0 }
  0xfd   :  { %v254_v48 = vsel %vm217_vm0, %v198_v46, 0.0 }
  0xfe   :  { %v3675_v47 = vpop.f32.mrf.mxu0 }
  0xff   :  { %v263_v49 = vsel %vm217_vm0, %v3675_v47, 0.0 }
 0x100   :  { %255 = vadd.xlane.f32.xlu1 %v254_v48  ;;  %264 = vadd.xlane.f32.xlu0 %v263_v49  ;;  %v208_v50 = vpop.f32.mrf.mxu0 }
 0x101   :  { %v260_v52 = vsel %vm217_vm0, %v208_v50, 0.0 }
 0x104   :  { %249 = vadd.xlane.f32.xlu1 %v248_v51  ;;  %261 = vadd.xlane.f32.xlu0 %v260_v52 }
 0x108   :  { %243 = vadd.xlane.f32.xlu1 %v242_v53  ;;  %252 = vadd.xlane.f32.xlu0 %v251_v54 }
 0x10c   :  { %237 = vadd.xlane.f32.xlu1 %v236_v55  ;;  %246 = vadd.xlane.f32.xlu0 %v245_v56 }
 0x110   :  { %231 = vadd.xlane.f32.xlu1 %v230_v57  ;;  %240 = vadd.xlane.f32.xlu0 %v239_v58 }
 0x114   :  { %225 = vadd.xlane.f32.xlu1 %v224_v59  ;;  %234 = vadd.xlane.f32.xlu0 %v233_v60 }
 0x118   :  { %219 = vadd.xlane.f32.xlu1 %v218_v61  ;;  %228 = vadd.xlane.f32.xlu0 %v227_v62 }
 0x11c   :  { %222 = vadd.xlane.f32.xlu0 %v221_v63 }
 0x185   :  { %v259_v4 = vpop.xlane.xlu1 %258 }
 0x186   :  { %v4588_v33 = vsub.f32 %v4376_v2, %v259_v4 }
 0x188   :  { %v295_v43 = vmul.f32 %v4588_v33, %v4588_v33 }
 0x189   :  { %v256_v37 = vpop.xlane.xlu1 %255  ;;  %v265_v38 = vpop.xlane.xlu0 %264 }
 0x18a   :  { %v4583_v39 = vsub.f32 %v4364_v0, %v265_v38  ;;  %v4594_v32 = vsub.f32 %v4383_v3, %v256_v37 }
 0x18c   :  { %v297_v35 = vmul.f32 %v4583_v39, %v4583_v39 }
 0x18d   :  { %v250_v36 = vpop.xlane.xlu1 %249  ;;  %v262_v40 = vpop.xlane.xlu0 %261 }
 0x18e   :  { %v4591_v34 = vsub.f32 %v4369_v1, %v262_v40  ;;  %3676 = vmatprep.subr.mxu1 %v297_v35  ;;  %v294_v1 = vmul.f32 %v4594_v32, %v4594_v32  ;;  %v4606_v2 = vsub.f32 %v4400_v6, %v250_v36  ;;  %v4692_v36 = vld [vmem:[%s5735_s5 + $0x8] sm:$0xff]  }
 0x18f   :  { %3677 = vmatpush3.msra.mxu1 %v297_v35  ;;  %v524_v35 = vld [vmem:[%s5732_s2 + $0x8] sm:$0xff] }
 0x190   :  { %v296_v0 = vmul.f32 %v4591_v34, %v4591_v34 }
 0x191   :  { %v244_v41 = vpop.xlane.xlu1 %243  ;;  %v253_v42 = vpop.xlane.xlu0 %252 }
 0x192   :  { %v4601_v44 = vsub.f32 %v4393_v5, %v253_v42  ;;  %3678 = vmatprep.subr.mxu1 %v296_v0  ;;  %v292_v5 = vmul.f32 %v4606_v2, %v4606_v2  ;;  %v4616_v48 = vsub.f32 %v4412_v8, %v244_v41 }
 0x193   :  { %3679 = vmatpush3.msra.mxu1 %v296_v0  ;;  %v523_v0 = vld [vmem:[%s5732_s2] sm:$0xff] }
 0x194   :  { %3680 = vmatprep.subr.mxu1 %v295_v43  ;;  %v293_v46 = vmul.f32 %v4601_v44, %v4601_v44 }
 0x195   :  { %v238_v3 = vpop.xlane.xlu1 %237  ;;  %3681 = vmatpush3.msra.mxu1 %v295_v43  ;;  %v247_v45 = vpop.xlane.xlu0 %246 }
 0x196   :  { %v4611_v47 = vsub.f32 %v4407_v7, %v247_v45  ;;  %3682 = vmatprep.subr.mxu1 %v294_v1  ;;  %v290_v7 = vmul.f32 %v4616_v48, %v4616_v48  ;;  %v4626_v52 = vsub.f32 %v4428_v10, %v238_v3  ;;  %v651_v3 = vld [vmem:[%s5733_s3] sm:$0xff]  ;;  %v652_v45 = vld [vmem:[%s5733_s3 + $0x8] sm:$0xff] }
 0x197   :  { %3683 = vmatpush3.msra.mxu1 %v294_v1 }
 0x198   :  { %3684 = vmatprep.subr.mxu1 %v293_v46  ;;  %v291_v50 = vmul.f32 %v4611_v47, %v4611_v47  ;;  %v288_v55 = vmul.f32 %v4626_v52, %v4626_v52 }
 0x199   :  { %v232_v6 = vpop.xlane.xlu1 %231  ;;  %3685 = vmatpush3.msra.mxu1 %v293_v46  ;;  %v241_v49 = vpop.xlane.xlu0 %240 }
 0x19a   :  { %v4621_v51 = vsub.f32 %v4419_v9, %v241_v49  ;;  %3686 = vmatprep.subr.mxu1 %v292_v5  ;;  %v4636_v56 = vsub.f32 %v4442_v12, %v232_v6  ;;  %v526_v6 = vld [vmem:[%s5732_s2 + $0x18] sm:$0xff] }
 0x19b   :  { %3687 = vmatpush3.msra.mxu1 %v292_v5  ;;  %v653_v5 = vld [vmem:[%s5733_s3 + $0x10] sm:$0xff] }
 0x19c   :  { %3688 = vmatprep.subr.mxu1 %v291_v50  ;;  %v289_v53 = vmul.f32 %v4621_v51, %v4621_v51 }
 0x19d   :  { %3689 = vmatpush3.msra.mxu1 %v291_v50  ;;  %v235_v8 = vpop.xlane.xlu0 %234  ;;  %v226_v9 = vpop.xlane.xlu1 %225  ;;  %v4714_v50 = vld [vmem:[%s5735_s5] sm:$0xff]  }
 0x19e   :  { %v4631_v54 = vsub.f32 %v4435_v11, %v235_v8  ;;  %3690 = vmatprep.subr.mxu1 %v290_v7  ;;  %v286_v11 = vmul.f32 %v4636_v56, %v4636_v56  ;;  %v4646_v59 = vsub.f32 %v4456_v14, %v226_v9  ;;  %v525_v8 = vld [vmem:[%s5732_s2 + $0x10] sm:$0xff]  ;;  %v654_v9 = vld [vmem:[%s5733_s3 + $0x18] sm:$0xff] }
 0x19f   :  { %3691 = vmatpush3.msra.mxu1 %v290_v7 }
 0x1a0   :  { %3692 = vmatprep.subr.mxu1 %v289_v53  ;;  %v287_v57 = vmul.f32 %v4631_v54, %v4631_v54 }
 0x1a1   :  { %3693 = vmatpush3.msra.mxu1 %v289_v53  ;;  %v229_v10 = vpop.xlane.xlu0 %228  ;;  %v220_v12 = vpop.xlane.xlu1 %219 }
 0x1a2   :  { %v4641_v58 = vsub.f32 %v4449_v13, %v229_v10  ;;  %3694 = vmatprep.subr.mxu1 %v288_v55  ;;  %v284_v13 = vmul.f32 %v4646_v59, %v4646_v59  ;;  %v4656_v63 = vsub.f32 %v4470_v16, %v220_v12 }
 0x1a3   :  { %3695 = vmatpush3.msra.mxu1 %v288_v55 }
 0x1a4   :  { %3696 = vmatprep.subr.mxu1 %v287_v57  ;;  %v285_v61 = vmul.f32 %v4641_v58, %v4641_v58  ;;  %v282_v4 = vmul.f32 %v4656_v63, %v4656_v63 }
 0x1a5   :  { %3697 = vmatpush3.msra.mxu1 %v287_v57  ;;  %v223_v60 = vpop.xlane.xlu0 %222 }
 0x1a6   :  { %v4651_v62 = vsub.f32 %v4463_v15, %v223_v60  ;;  %3698 = vmatprep.subr.mxu1 %v286_v11 }
 0x1a7   :  { %3699 = vmatpush3.msra.mxu1 %v286_v11 }
 0x1a8   :  { %3700 = vmatprep.subr.mxu1 %v285_v61  ;;  %v283_v14 = vmul.f32 %v4651_v62, %v4651_v62 }
 0x1a9   :  { %3701 = vmatpush3.msra.mxu1 %v285_v61 }
 0x1aa   :  { %3702 = vmatprep.subr.mxu1 %v284_v13 }
 0x1ab   :  { %3703 = vmatpush3.msra.mxu1 %v284_v13 }
 0x1ac   :  { %3704 = vmatprep.subr.mxu1 %v283_v14 }
 0x1ad   :  { %3705 = vmatpush3.msra.mxu1 %v283_v14 }
 0x1ae   :  { %3706 = vmatprep.subr.mxu1 %v282_v4 }
 0x1af   :  { %3707 = vmatpush3.msra.mxu1 %v282_v4 }
 0x1b0   :  { %3709 = vmatmul.mubr.f32.vlgmr.msra.gmra.mxu1 %v4477_v17 }
 0x1b1   :  { %3711 = vmatprep.mubr.f32.mxu1 %v4483_v18 }
 0x1b4   :  { %3712 = vmatmul.mubr.f32.gmra.mxu1 %v4491_v19 }
 0x1b5   :  { %3714 = vmatprep.mubr.f32.mxu1 %v4496_v20 }
 0x1b8   :  { %3715 = vmatmul.mubr.f32.gmra.mxu1 %v4503_v21 }
 0x1b9   :  { %3717 = vmatprep.mubr.f32.mxu1 %v4508_v22 }
 0x1bc   :  { %3718 = vmatmul.mubr.f32.gmra.mxu1 %v4515_v23  ;;  %v4294_v23 = vmov 0  }
 0x1bd   :  { %3720 = vmatprep.mubr.f32.mxu1 %v4520_v24  ;;  %4087 = vset.pattern.permute.xlu1 %v4294_v23  ;;  %v771_v24 = vld [vmem:[%s5734_s4] sm:$0xf]  ;;  %s4299_s4 = smov 32  }
 0x1be   :  { %4086 = vset.pattern.permute.xlu0 %v4294_v23  ;;  %4078 = vmatprep.subr.msk.bf16.mxu0 %vm803_vm1, %v771_v24 }
 0x1c0   :  { %3721 = vmatmul.mubr.f32.gmra.mxu1 %v4527_v25  ;;  %v805_v25 = vsel %vm803_vm1, %v771_v24, 0 }
 0x1c1   :  { %3723 = vmatprep.mubr.f32.mxu1 %v4532_v26  ;;  %v4295_v26 = vmov 0.0   ;;  %3733 = vmatpush3.bf16.msra.mxu0 %v805_v25 }
 0x1c2   :  { %3750 = vmatprep.subr.bf16.mxu1 %v4295_v26  ;;  %3778 = vmatprep.subr.bf16.mxu0 %v4295_v26 }
 0x1c3   :  { %3751 = vmatpush3.bf16.msra.mxu1 %v4692_v36 }
 0x1c4   :  { %3724 = vmatmul.mubr.f32.gmra.mxu1 %v4539_v27  ;;  %3752 = vmatprep.subr.bf16.mxu1 %v4295_v26 }
 0x1c5   :  { %3726 = vmatprep.mubr.f32.mxu1 %v4544_v28 }
 0x1c7   :  { %3753 = vmatpush3.bf16.msra.mxu1 %v4714_v50 }
 0x1c8   :  { %3727 = vmatmul.mubr.f32.gmra.mxu1 %v4551_v29  ;;  %3758 = vmatprep.subr.bf16.mxu1 %v4295_v26 }
 0x1c9   :  { %3729 = vmatprep.mubr.f32.mxu1 %v4556_v30 }
 0x1cc   :  { %3730 = vmatmul.mubr.f32.gmra.mxu1 %v4563_v31 }
 0x1cd   :  { %3754 = vmatprep.mubr.msk.bf16.mxu1 %vm4296_vm2, %v4295_v26 }
 0x1d0   :  { %3755 = vmatmul.mubr.bf16.vlgmr.msra.gmra.mxu1 %v4294_v23 }
 0x1d1   :  { %3766 = vmatprep.mubr.msk.bf16.mxu1 %vm4296_vm2, %v4295_v26 }
 0x270   :  { %v3710_v15 = vpop.f32.mrf.mxu1 }
 0x271   :  { %v446_v16 = vsel %vm217_vm0, %v3710_v15, 0.0 }
 0x272   :  { %447 = vadd.xlane.f32.xlu1 %v446_v16  ;;  %v364_v17 = vpop.f32.mrf.mxu1 }
 0x273   :  { %v443_v18 = vsel %vm217_vm0, %v364_v17, 0.0 }
 0x274   :  { %444 = vadd.xlane.f32.xlu0 %v443_v18  ;;  %v3713_v19 = vpop.f32.mrf.mxu1 }
 0x275   :  { %v452_v20 = vsel %vm217_vm0, %v3713_v19, 0.0 }
 0x276   :  { %v374_v21 = vpop.f32.mrf.mxu1  ;;  %453 = vadd.xlane.f32.xlu1 %v452_v20 }
 0x277   :  { %v449_v22 = vsel %vm217_vm0, %v374_v21, 0.0 }
 0x278   :  { %450 = vadd.xlane.f32.xlu0 %v449_v22 }
 0x2fb   :  { %v448_v27 = vpop.xlane.xlu1 %447 }
 0x2fc   :  { %v492_v28 = vadd.f32 1e-05, %v448_v27 }
 0x2fd   :  { %v445_v29 = vpop.xlane.xlu0 %444 }
 0x2fe   :  { %4096 = vrsqrt.f32 %v492_v28  ;;  %v491_v30 = vadd.f32 1e-05, %v445_v29 }
 0x2ff   :  { %v454_v31 = vpop.xlane.xlu1 %453 }
 0x300   :  { %4098 = vrsqrt.f32 %v491_v30  ;;  %v494_v37 = vadd.f32 1e-05, %v454_v31 }
 0x301   :  { %v451_v38 = vpop.xlane.xlu0 %450 }
 0x302   :  { %4100 = vrsqrt.f32 %v494_v37  ;;  %v493_v41 = vadd.f32 1e-05, %v451_v38 }
 0x304   :  { %4102 = vrsqrt.f32 %v493_v41 }
 0x30b   :  { %v4097_v40 = vpop.eup %4096 }
 0x30c   :  { %v540_v42 = vmul.f32 %v4097_v40, %v524_v35 }
 0x30d   :  { %v4099_v43 = vpop.eup %4098 }
 0x30e   :  { %562 = vperm.xlu1 %4087, %v540_v42   ;;  %v539_v1 = vmul.f32 %v4099_v43, %v523_v0  ;;  %v920_v0 = vlaneseq  ;;  %v4763_v43 = vld [vmem:[%s5736_s6] ss:$0 sm:$0xff] }
 0x30f   :  { %v4101_v46 = vpop.eup %4100 }
 0x310   :  { %557 = vperm.xlu0 %4086, %v539_v1   ;;  %v542_v49 = vmul.f32 %v4101_v46, %v526_v6  ;;  %v921_v41 = vand.u32 127, %v920_v0 }
 0x311   :  { %v4103_v7 = vpop.eup %4102 }
 0x312   :  { %669 = vperm.xlu1 %4087, %v651_v3   ;;  %v541_v53 = vmul.f32 %v4103_v7, %v525_v8  ;;  %vm922_vm3 = vcmp.ge.s32.totalorder %v921_v41, 64  ;;  %vm923_vm4 = vcmp.lt.s32.totalorder %v921_v41, 96 }
 0x313   :  { %vm924_vm5 = vmand %vm922_vm3, %vm923_vm4 }
 0x316   :  { %674 = vperm.xlu1 %4087, %v652_v45   ;;  %v4297_v45 = vmov 0.5  }
 0x317   :  { %v4766_v46 = vsel %vm924_vm5, 1.0, %v4297_v45  ;;  %v4769_v7 = vsel %vm924_vm5, 0.0, %v4297_v45 }
 0x31a   :  { %679 = vperm.xlu1 %4087, %v653_v5  }
 0x31e   :  { %572 = vperm.xlu1 %4087, %v542_v49  }
 0x322   :  { %567 = vperm.xlu1 %4087, %v541_v53  }
 0x326   :  { %684 = vperm.xlu1 %4087, %v654_v9  }
 0x389   :  { %v563_v55 = vpop.permute.xlu1 %562 }
 0x38a   :  { %v636_v12 = vmul.f32 %v563_v55, %v4651_v62  ;;  %v4734_v62 = vpop.f32.mrf.mxu1 }
 0x38b   :  { %v558_v10 = vpop.permute.xlu0 %557 }
 0x38c   :  { %v635_v11 = vmul.f32 %v558_v10, %v4656_v63  ;;  %v4736_v63 = vpop.f32.mrf.mxu1 }
 0x38d   :  { %v670_v57 = vpop.permute.xlu1 %669 }
 0x38e   :  { %v747_v61 = vadd.f32 %v670_v57, %v635_v11  ;;  %v4738_v23 = vpop.f32.mrf.mxu1 }
 0x390   :  { %v4740_v24 = vpop.f32.mrf.mxu1 }
 0x391   :  { %v675_v60 = vpop.permute.xlu1 %674 }
 0x392   :  { %v748_v13 = vadd.f32 %v675_v60, %v636_v12  ;;  %v4742_v25 = vpop.f32.mrf.mxu1  ;;  %v4781_v12 = vld [vmem:[%s5737_s7 + $0x18] sm:$0xff]   ;;  %v4787_v60 = vld [vmem:[%s5737_s7 + $0x10] sm:$0xff]  }
 0x393   :  { %3759 = vmatpush3.bf16.msra.mxu1 %v4781_v12 }
 0x394   :  { %v763_v14 = vpack.c.bf16 %v748_v13, %v747_v61  ;;  %v4744_v27 = vpop.f32.mrf.mxu1  ;;  %3760 = vmatprep.subr.bf16.mxu1 %v4295_v26  ;;  %v4796_v61 = vld [vmem:[%s5737_s7 + $0x8] sm:$0xff]  }
 0x395   :  { %v680_v4 = vpop.permute.xlu1 %679 }
 0x396   :  { %3734 = vmatprep.mubr.msk.bf16.mxu0 %vm217_vm0, %v763_v14  ;;  %v4806_v14 = vld [vmem:[%s5737_s7] sm:$0xff]  }
 0x397   :  { %3761 = vmatpush3.bf16.msra.mxu1 %v4787_v60 }
 0x398   :  { %3762 = vmatprep.subr.bf16.mxu1 %v4295_v26 }
 0x399   :  { %v573_v15 = vpop.permute.xlu1 %572 }
 0x39a   :  { %v638_v18 = vmul.f32 %v573_v15, %v4641_v58 }
 0x39b   :  { %3763 = vmatpush3.bf16.msra.mxu1 %v4796_v61 }
 0x39c   :  { %3764 = vmatprep.subr.bf16.mxu1 %v4295_v26 }
 0x39d   :  { %v568_v16 = vpop.permute.xlu1 %567 }
 0x39e   :  { %v637_v17 = vmul.f32 %v568_v16, %v4646_v59  ;;  %v4746_v59 = vpop.f32.mrf.mxu1 }
 0x39f   :  { %3765 = vmatpush3.bf16.msra.mxu1 %v4806_v14 }
 0x3a0   :  { %v749_v20 = vadd.f32 %v680_v4, %v637_v17  ;;  %v4748_v58 = vpop.f32.mrf.mxu1  ;;  %3770 = vmatprep.subr.bf16.mxu1 %v4295_v26 }
 0x3a1   :  { %v685_v19 = vpop.permute.xlu1 %684 }
 0x3a2   :  { %v750_v21 = vadd.f32 %v685_v19, %v638_v18  ;;  %v4750_v28 = vpop.f32.mrf.mxu1 }
 0x3a4   :  { %v764_v22 = vpack.c.bf16 %v750_v21, %v749_v20  ;;  %v4752_v29 = vpop.f32.mrf.mxu1  ;;  %v4835_v21 = vld [vmem:[%s5738_s8] ss:$0 sm:$0xff] }
 0x3a6   :  { %3735 = vmatmul.mubr.msk.bf16.vlgmr.msra.gmra.mxu0 %vm217_vm0, %v764_v22  ;;  %v4754_v30 = vpop.f32.mrf.mxu1 }
 0x3a7   :  { %3779 = vmatpush3.bf16.msra.mxu0 %v4781_v12 }
 0x3a8   :  { %v4756_v31 = vpop.f32.mrf.mxu1  ;;  %3780 = vmatprep.subr.bf16.mxu0 %v4295_v26 }
 0x3aa   :  { %v997_v37 = vpop.f32.mrf.mxu1 }
 0x3ab   :  { %3781 = vmatpush3.bf16.msra.mxu0 %v4787_v60 }
 0x3ac   :  { %v3756_v38 = vpop.f32.mrf.mxu1  ;;  %3782 = vmatprep.subr.bf16.mxu0 %v4295_v26 }
 0x3ae   :  { %v1000_v35 = vpop.f32.mrf.mxu1 }
 0x3af   :  { %3783 = vmatpush3.bf16.msra.mxu0 %v4796_v61 }
 0x3b0   :  { %v3757_v40 = vpop.f32.mrf.mxu1  ;;  %3784 = vmatprep.subr.bf16.mxu0 %v4295_v26 }
 0x3b3   :  { %3785 = vmatpush3.bf16.msra.mxu0 %v4806_v14 }
 0x3b4   :  { %3798 = vmatprep.subr.bf16.mxu0 %v4295_v26 }
 0x466   :  { %v4758_v42 = vpop.f32.mrf.mxu0 }
 0x468   :  { %v841_v1 = vpop.f32.mrf.mxu0 }
 0x469   :  { %v842_v3 = vadd.f32 %v4763_v43, %v841_v1 }
 0x46a   :  { %v4837_v22 = vpop.f32.mrf.mxu0 }
 0x46b   :  { %v1003_v5 = vadd.f32 %v997_v37, %v842_v3 }
 0x46c   :  { %v844_v0 = vpop.f32.mrf.mxu0 }
 0x46d   :  { %v1004_v6 = vmul.f32 %v1003_v5, %v4766_v46  ;;  %v845_v3 = vadd.f32 %v4763_v43, %v844_v0 }
 0x46f   :  { %4104 = vtanh.f32 %v1004_v6 }
 0x47c   :  { %v4105_v49 = vpop.eup %4104 }
 0x47d   :  { %v1006_v8 = vmul.f32 %v4105_v49, %v4766_v46 }
 0x47f   :  { %v1007_v53 = vadd.f32 %v1006_v8, %v4769_v7 }
 0x481   :  { %1010 = vrot.lane.b32.xlu1 %v1007_v53, %s4298_s23  ;;  %v1008_v10 = vmul.f32 0.0, %v1007_v53 }
 0x4f3   :  { %v1011_v9 = vpop.permute.xlu1 %1010 }
 0x4f4   :  { %v1013_v55 = vmul.f32 %v1011_v9, %v1007_v53 }
 0x4f6   :  { %1015 = vrot.lane.b32.xlu0 %v1013_v55, %s4299_s4 }
 0x568   :  { %v1016_v57 = vpop.permute.xlu0 %1015 }
 0x569   :  { %v4775_v11 = vadd.f32 %v1016_v57, %v1008_v10 }
 0x56b   :  { %4106 = vtanh.f32 %v4775_v11 }
 0x578   :  { %v4107_v13 = vpop.eup %4106 }
 0x579   :  { %1021 = vrot.lane.b32.xlu1 %v4107_v13, %s4298_s23 }
 0x5eb   :  { %v1022_v4 = vpop.permute.xlu1 %1021 }
 0x5ec   :  { %v1024_v15 = vmul.f32 %v1022_v4, %v1007_v53 }
 0x5ee   :  { %v1121_v16 = vpack.c.bf16 %v1024_v15, %v1024_v15  ;;  %1026 = vrot.lane.b32.xlu0 %v1024_v15, %s4299_s4  ;;  %v455_v15 = vsel %vm217_vm0, %v4736_v63, 0.0  ;;  %v470_v63 = vsel %vm217_vm0, %v4742_v25, 0.0  ;;  %v488_v25 = vsel %vm217_vm0, %v4754_v30, 0.0 }
 0x5f0   :  { %1123 = vrot.lane.b32.xlu1 %v1121_v16, %s4299_s4 }
 0x660   :  { %v1027_v17 = vpop.permute.xlu0 %1026 }
 0x661   :  { %v1029_v18 = vsel %vm959_vm6, %v1027_v17, 0.0 }
 0x662   :  { %v1030_v19 = vpack.c.bf16 %v1029_v18, %v1029_v18  ;;  %v1124_v20 = vpop.permute.xlu1 %1123 }
 0x664   :  { %3767 = vmatmul.mubr.msk.bf16.vlgmr.msra.gmra.mxu1 %vm1055_vm7, %v1030_v19 }
 0x665   :  { %3771 = vmatpush3.bf16.msra.mxu1 %v4692_v36  ;;  %3774 = vmatprep.mubr.msk.bf16.mxu1 %vm4296_vm2, %v4295_v26 }
 0x666   :  { %3772 = vmatprep.subr.bf16.mxu1 %v4295_v26 }
 0x669   :  { %3773 = vmatpush3.bf16.msra.mxu1 %v4714_v50 }
 0x66a   :  { %3790 = vmatprep.subr.bf16.mxu1 %v4295_v26 }
 0x66c   :  { %3775 = vmatmul.mubr.msk.bf16.vlgmr.msra.gmra.mxu1 %vm959_vm6, %v1124_v20  ;;  %v461_v20 = vsel %vm217_vm0, %v4740_v24, 0.0  ;;  %v482_v24 = vsel %vm217_vm0, %v4750_v28, 0.0  ;;  %v485_v28 = vsel %vm217_vm0, %v4756_v31, 0.0 }
 0x66d   :  { %3791 = vmatpush3.bf16.msra.mxu1 %v4692_v36  ;;  %3794 = vmatprep.mubr.msk.bf16.mxu1 %vm4296_vm2, %v4295_v26 }
 0x66e   :  { %3792 = vmatprep.subr.bf16.mxu1 %v4295_v26 }
 0x671   :  { %3793 = vmatpush3.bf16.msra.mxu1 %v4714_v50 }
 0x672   :  { %3810 = vmatprep.subr.bf16.mxu1 %v4295_v26 }
 0x724   :  { %v1093_v37 = vpop.f32.mrf.mxu1 }
 0x725   :  { %v1094_v38 = vadd.f32 %v4835_v21, %v1093_v37  ;;  %v464_v37 = vsel %vm217_vm0, %v4738_v23, 0.0  ;;  %v467_v23 = vsel %vm217_vm0, %v4744_v27, 0.0 }
 0x726   :  { %v3768_v35 = vpop.f32.mrf.mxu1 }
 0x727   :  { %v1099_v40 = vmul.f32 %v1094_v38, %v4766_v46  ;;  %v476_v38 = vsel %vm217_vm0, %v4746_v59, 0.0  ;;  %v458_v35 = vsel %vm217_vm0, %v4734_v62, 0.0  ;;  %v473_v59 = vsel %vm217_vm0, %v4748_v58, 0.0 }
 0x728   :  { %v1096_v41 = vpop.f32.mrf.mxu1  ;;  %v479_v62 = vsel %vm217_vm0, %v4752_v29, 0.0 }
 0x729   :  { %4108 = vtanh.f32 %v1099_v40 }
 0x72a   :  { %v3769_v1 = vpop.f32.mrf.mxu1 }
 0x72c   :  { %v1162_v45 = vpop.f32.mrf.mxu1 }
 0x72d   :  { %v1168_v5 = vadd.f32 %v1162_v45, %v845_v3  ;;  %v527_v45 = vld [vmem:[%s5732_s2 + $0x20] sm:$0xff] }
 0x72e   :  { %v3776_v6 = vpop.f32.mrf.mxu1 }
 0x72f   :  { %v1169_v49 = vmul.f32 %v1168_v5, %v4766_v46 }
 0x730   :  { %v1165_v8 = vpop.f32.mrf.mxu1 }
 0x731   :  { %4110 = vtanh.f32 %v1169_v49 }
 0x732   :  { %v3777_v53 = vpop.f32.mrf.mxu1 }
 0x736   :  { %v4109_v9 = vpop.eup %4108 }
 0x737   :  { %v1101_v55 = vmul.f32 %v4109_v9, %v4766_v46 }
 0x739   :  { %v4845_v10 = vadd.f32 %v1101_v55, %v4769_v7 }
 0x73b   :  { %1105 = vrot.lane.b32.xlu0 %v4845_v10, %s4298_s23  ;;  %v1103_v27 = vmul.f32 0.0, %v4845_v10 }
 0x73e   :  { %v4111_v57 = vpop.eup %4110 }
 0x73f   :  { %v1171_v13 = vmul.f32 %v4111_v57, %v4766_v46  ;;  %v529_v57 = vld [vmem:[%s5732_s2 + $0x30] sm:$0xff] }
 0x741   :  { %v4851_v4 = vadd.f32 %v1171_v13, %v4769_v7 }
 0x743   :  { %1175 = vrot.lane.b32.xlu1 %v4851_v4, %s4298_s23  ;;  %v1173_v58 = vmul.f32 %v4851_v4, %v4775_v11 }
 0x75a   :  { %456 = vadd.xlane.f32.xlu0 %v455_v15 }
 0x7ad   :  { %v1106_v16 = vpop.permute.xlu0 %1105 }
 0x7ae   :  { %v1108_v17 = vmul.f32 %v1106_v16, %v4845_v10 }
 0x7b0   :  { %1110 = vrot.lane.b32.xlu0 %v1108_v17, %s4299_s4 }
 0x7b5   :  { %v1176_v18 = vpop.permute.xlu1 %1175 }
 0x7b6   :  { %v1178_v19 = vmul.f32 %v1176_v18, %v4851_v4 }
 0x7b8   :  { %1180 = vrot.lane.b32.xlu1 %v1178_v19, %s4299_s4  ;;  %v655_v19 = vld [vmem:[%s5733_s3 + $0x20] sm:$0xff] }
 0x7cf   :  { %462 = vadd.xlane.f32.xlu0 %v461_v20 }
 0x7d3   :  { %465 = vadd.xlane.f32.xlu0 %v464_v37 }
 0x7d7   :  { %471 = vadd.xlane.f32.xlu0 %v470_v63  ;;  %v657_v63 = vld [vmem:[%s5733_s3 + $0x30] sm:$0xff] }
 0x7db   :  { %477 = vadd.xlane.f32.xlu0 %v476_v38 }
 0x7dc   :  { %459 = vadd.xlane.f32.xlu1 %v458_v35 }
 0x7df   :  { %483 = vadd.xlane.f32.xlu0 %v482_v24 }
 0x7e0   :  { %468 = vadd.xlane.f32.xlu1 %v467_v23  ;;  %v528_v23 = vld [vmem:[%s5732_s2 + $0x28] sm:$0xff] }
 0x7e3   :  { %489 = vadd.xlane.f32.xlu0 %v488_v25  ;;  %v457_v40 = vpop.xlane.xlu0 %456 }
 0x7e4   :  { %474 = vadd.xlane.f32.xlu1 %v473_v59  ;;  %v495_v0 = vadd.f32 1e-05, %v457_v40 }
 0x7e6   :  { %4112 = vrsqrt.f32 %v495_v0 }
 0x7e8   :  { %480 = vadd.xlane.f32.xlu1 %v479_v62 }
 0x7ec   :  { %486 = vadd.xlane.f32.xlu1 %v485_v28 }
 0x7f3   :  { %v4113_v31 = vpop.eup %4112 }
 0x7f4   :  { %v543_v5 = vmul.f32 %v4113_v31, %v527_v45  ;;  %v533_v45 = vld [vmem:[%s5732_s2 + $0x50] sm:$0xff] }
 0x822   :  { %v1111_v41 = vpop.permute.xlu0 %1110 }
 0x823   :  { %v4884_v1 = vadd.f32 %v1111_v41, %v1103_v27  ;;  %v531_v27 = vld [vmem:[%s5732_s2 + $0x40] sm:$0xff]  ;;  %v530_v41 = vld [vmem:[%s5732_s2 + $0x38] sm:$0xff] }
 0x825   :  { %4114 = vtanh.f32 %v4884_v1 }
 0x82a   :  { %v1181_v30 = vpop.permute.xlu1 %1180 }
 0x82b   :  { %v4889_v29 = vadd.f32 %v1181_v30, %v1173_v58 }
 0x82d   :  { %4116 = vtanh.f32 %v4889_v29 }
 0x832   :  { %v4115_v3 = vpop.eup %4114 }
 0x833   :  { %1116 = vrot.lane.b32.xlu1 %v4115_v3, %s4298_s23 }
 0x837   :  { %577 = vperm.xlu1 %4087, %v543_v5  }
 0x83a   :  { %v4117_v6 = vpop.eup %4116 }
 0x83b   :  { %1186 = vrot.lane.b32.xlu0 %v4117_v6, %s4298_s23 }
 0x858   :  { %v463_v49 = vpop.xlane.xlu0 %462 }
 0x859   :  { %v497_v11 = vadd.f32 1e-05, %v463_v49  ;;  %v656_v49 = vld [vmem:[%s5733_s3 + $0x28] sm:$0xff] }
 0x85b   :  { %4118 = vrsqrt.f32 %v497_v11 }
 0x85c   :  { %v466_v8 = vpop.xlane.xlu0 %465 }
 0x85d   :  { %v498_v9 = vadd.f32 1e-05, %v466_v8  ;;  %v659_v8 = vld [vmem:[%s5733_s3 + $0x40] sm:$0xff] }
 0x860   :  { %v472_v18 = vpop.xlane.xlu0 %471 }
 0x861   :  { %v500_v35 = vadd.f32 1e-05, %v472_v18 }
 0x864   :  { %v478_v24 = vpop.xlane.xlu0 %477 }
 0x865   :  { %v460_v53 = vpop.xlane.xlu1 %459  ;;  %v502_v59 = vadd.f32 1e-05, %v478_v24  ;;  %v537_v24 = vld [vmem:[%s5732_s2 + $0x70] sm:$0xff] }
 0x866   :  { %v496_v55 = vadd.f32 1e-05, %v460_v53  ;;  %v658_v53 = vld [vmem:[%s5733_s3 + $0x38] sm:$0xff] }
 0x868   :  { %v4119_v13 = vpop.eup %4118  ;;  %4120 = vrsqrt.f32 %v496_v55  ;;  %v484_v6 = vpop.xlane.xlu0 %483 }
 0x869   :  { %v469_v15 = vpop.xlane.xlu1 %468  ;;  %v545_v16 = vmul.f32 %v4119_v13, %v529_v57  ;;  %4122 = vrsqrt.f32 %v498_v9  ;;  %v504_v9 = vadd.f32 1e-05, %v484_v6  ;;  %v532_v13 = vld [vmem:[%s5732_s2 + $0x48] sm:$0xff] }
 0x86a   :  { %v499_v17 = vadd.f32 1e-05, %v469_v15  ;;  %v661_v15 = vld [vmem:[%s5733_s3 + $0x50] sm:$0xff] }
 0x86b   :  { %587 = vperm.xlu0 %4086, %v545_v16  }
 0x86c   :  { %4124 = vrsqrt.f32 %v499_v17  ;;  %v490_v57 = vpop.xlane.xlu0 %489 }
 0x86d   :  { %v475_v20 = vpop.xlane.xlu1 %474  ;;  %v506_v17 = vadd.f32 1e-05, %v490_v57 }
 0x86e   :  { %v501_v37 = vadd.f32 1e-05, %v475_v20  ;;  %v535_v20 = vld [vmem:[%s5732_s2 + $0x60] sm:$0xff] }
 0x86f   :  { %689 = vperm.xlu0 %4086, %v655_v19  }
 0x870   :  { %4126 = vrsqrt.f32 %v501_v37  ;;  %v534_v37 = vld [vmem:[%s5732_s2 + $0x58] sm:$0xff] }
 0x871   :  { %v481_v38 = vpop.xlane.xlu1 %480  ;;  %4128 = vrsqrt.f32 %v500_v35 }
 0x872   :  { %v503_v62 = vadd.f32 1e-05, %v481_v38  ;;  %4130 = vrsqrt.f32 %v502_v59  ;;  %v662_v59 = vld [vmem:[%s5733_s3 + $0x58] sm:$0xff] }
 0x873   :  { %699 = vperm.xlu0 %4086, %v657_v63  }
 0x874   :  { %4132 = vrsqrt.f32 %v503_v62  ;;  %v663_v62 = vld [vmem:[%s5733_s3 + $0x60] sm:$0xff] }
 0x875   :  { %v4121_v25 = vpop.eup %4120  ;;  %v487_v0 = vpop.xlane.xlu1 %486 }
 0x876   :  { %v544_v28 = vmul.f32 %v4121_v25, %v528_v23  ;;  %v4123_v40 = vpop.eup %4122  ;;  %v505_v30 = vadd.f32 1e-05, %v487_v0  ;;  %v660_v23 = vld [vmem:[%s5733_s3 + $0x48] sm:$0xff]  ;;  %v665_v0 = vld [vmem:[%s5733_s3 + $0x70] sm:$0xff] }
 0x877   :  { %v546_v3 = vmul.f32 %v4123_v40, %v530_v41  ;;  %v536_v40 = vld [vmem:[%s5732_s2 + $0x68] sm:$0xff] }
 0x878   :  { %582 = vperm.xlu1 %4087, %v544_v28   ;;  %4134 = vrsqrt.f32 %v505_v30 }
 0x879   :  { %v4125_v58 = vpop.eup %4124  ;;  %4136 = vrsqrt.f32 %v504_v9 }
 0x87a   :  { %v547_v31 = vmul.f32 %v4125_v58, %v531_v27  ;;  %4138 = vrsqrt.f32 %v506_v17  ;;  %v538_v58 = vld [vmem:[%s5732_s2 + $0x78] sm:$0xff] }
 0x87c   :  { %597 = vperm.xlu0 %4086, %v547_v31   ;;  %592 = vperm.xlu1 %4087, %v546_v3   ;;  %v664_v31 = vld [vmem:[%s5733_s3 + $0x68] sm:$0xff]  ;;  %v666_v3 = vld [vmem:[%s5733_s3 + $0x78] sm:$0xff] }
 0x87d   :  { %v4127_v5 = vpop.eup %4126 }
 0x87e   :  { %v549_v11 = vmul.f32 %v4127_v5, %v533_v45  ;;  %v4129_v55 = vpop.eup %4128 }
 0x87f   :  { %v4131_v16 = vpop.eup %4130  ;;  %v548_v18 = vmul.f32 %v4129_v55, %v532_v13 }
 0x880   :  { %607 = vperm.xlu0 %4086, %v549_v11   ;;  %694 = vperm.xlu1 %4087, %v656_v49   ;;  %v550_v38 = vmul.f32 %v4131_v16, %v534_v37 }
 0x881   :  { %v4133_v19 = vpop.eup %4132 }
 0x882   :  { %v551_v63 = vmul.f32 %v4133_v19, %v535_v20 }
 0x884   :  { %709 = vperm.xlu0 %4086, %v659_v8   ;;  %704 = vperm.xlu1 %4087, %v658_v53  }
 0x885   :  { %v4135_v35 = vpop.eup %4134 }
 0x886   :  { %v553_v25 = vmul.f32 %v4135_v35, %v537_v24  ;;  %v4137_v28 = vpop.eup %4136 }
 0x887   :  { %v552_v27 = vmul.f32 %v4137_v28, %v536_v40  ;;  %v4139_v41 = vpop.eup %4138 }
 0x888   :  { %719 = vperm.xlu0 %4086, %v661_v15   ;;  %602 = vperm.xlu1 %4087, %v548_v18   ;;  %v554_v30 = vmul.f32 %v4139_v41, %v538_v58 }
 0x88c   :  { %617 = vperm.xlu0 %4086, %v551_v63   ;;  %612 = vperm.xlu1 %4087, %v550_v38  }
 0x890   :  { %714 = vperm.xlu1 %4087, %v660_v23   ;;  %627 = vperm.xlu0 %4086, %v553_v25  }
 0x894   :  { %724 = vperm.xlu1 %4087, %v662_v59   ;;  %729 = vperm.xlu0 %4086, %v663_v62  }
 0x898   :  { %622 = vperm.xlu1 %4087, %v552_v27   ;;  %739 = vperm.xlu0 %4086, %v665_v0  }
 0x89c   :  { %632 = vperm.xlu1 %4087, %v554_v30  }
 0x8a0   :  { %734 = vperm.xlu1 %4087, %v664_v31  }
 0x8a4   :  { %744 = vperm.xlu1 %4087, %v666_v3  }
 0x8a5   :  { %v1117_v45 = vpop.permute.xlu1 %1116 }
 0x8a6   :  { %v1119_v5 = vmul.f32 %v1117_v45, %v4845_v10 }
 0x8a8   :  { %1195 = vrot.lane.b32.xlu1 %v1119_v5, %s4298_s23 }
 0x8ad   :  { %v1187_v6 = vpop.permute.xlu0 %1186 }
 0x8ae   :  { %v1189_v49 = vmul.f32 %v1187_v6, %v4851_v4 }
 0x8b0   :  { %1191 = vrot.lane.b32.xlu0 %v1189_v49, %s4299_s4  ;;  %v1265_v11 = vpack.c.bf16 %v1189_v49, %v1189_v49 }
 0x8b2   :  { %v578_v9 = vpop.permute.xlu1 %577 }
 0x8b3   :  { %v639_v16 = vmul.f32 %v578_v9, %v4636_v56 }
 0x8b4   :  { %1267 = vrot.lane.b32.xlu0 %v1265_v11, %s4299_s4 }
 0x8e6   :  { %v588_v8 = vpop.permute.xlu0 %587 }
 0x8e7   :  { %v641_v20 = vmul.f32 %v588_v8, %v4626_v52 }
 0x8ea   :  { %v690_v53 = vpop.permute.xlu0 %689 }
 0x8eb   :  { %v751_v19 = vadd.f32 %v690_v53, %v639_v16 }
 0x8ee   :  { %v700_v55 = vpop.permute.xlu0 %699 }
 0x8ef   :  { %v753_v24 = vadd.f32 %v700_v55, %v641_v20 }
 0x8f3   :  { %v583_v57 = vpop.permute.xlu1 %582 }
 0x8f4   :  { %v640_v10 = vmul.f32 %v583_v57, %v4631_v54 }
 0x8f7   :  { %v598_v13 = vpop.permute.xlu0 %597  ;;  %v593_v15 = vpop.permute.xlu1 %592 }
 0x8f8   :  { %v642_v37 = vmul.f32 %v593_v15, %v4621_v51  ;;  %v643_v62 = vmul.f32 %v598_v13, %v4616_v48 }
 0x8fb   :  { %v608_v17 = vpop.permute.xlu0 %607  ;;  %v695_v18 = vpop.permute.xlu1 %694 }
 0x8fc   :  { %v752_v4 = vadd.f32 %v695_v18, %v640_v10  ;;  %v645_v27 = vmul.f32 %v608_v17, %v4606_v2 }
 0x8fe   :  { %v765_v63 = vpack.c.bf16 %v752_v4, %v751_v19 }
 0x8ff   :  { %v710_v38 = vpop.permute.xlu0 %709  ;;  %v705_v35 = vpop.permute.xlu1 %704 }
 0x900   :  { %v754_v23 = vadd.f32 %v705_v35, %v642_v37  ;;  %3738 = vmatprep.mubr.msk.bf16.mxu0 %vm217_vm0, %v765_v63  ;;  %v755_v51 = vadd.f32 %v710_v38, %v643_v62 }
 0x902   :  { %v766_v25 = vpack.c.bf16 %v754_v23, %v753_v24  ;;  %v850_v23 = vadd.f32 %v4758_v42, %v4763_v43 }
 0x903   :  { %v603_v59 = vpop.permute.xlu1 %602  ;;  %v720_v54 = vpop.permute.xlu0 %719 }
 0x904   :  { %3739 = vmatmul.mubr.msk.bf16.gmra.mxu0 %vm217_vm0, %v766_v25  ;;  %v644_v28 = vmul.f32 %v603_v59, %v4611_v47  ;;  %v757_v31 = vadd.f32 %v720_v54, %v645_v27 }
 0x907   :  { %v613_v56 = vpop.permute.xlu1 %612  ;;  %v618_v52 = vpop.permute.xlu0 %617 }
 0x908   :  { %v646_v41 = vmul.f32 %v613_v56, %v4601_v44  ;;  %v647_v49 = vmul.f32 %v618_v52, %v4594_v32 }
 0x90b   :  { %v715_v40 = vpop.permute.xlu1 %714  ;;  %v628_v45 = vpop.permute.xlu0 %627 }
 0x90c   :  { %v756_v0 = vadd.f32 %v715_v40, %v644_v28  ;;  %v649_v9 = vmul.f32 %v628_v45, %v4591_v34 }
 0x90e   :  { %v767_v58 = vpack.c.bf16 %v756_v0, %v755_v51 }
 0x90f   :  { %v725_v30 = vpop.permute.xlu1 %724  ;;  %v730_v47 = vpop.permute.xlu0 %729 }
 0x910   :  { %v758_v3 = vadd.f32 %v725_v30, %v646_v41  ;;  %3742 = vmatprep.mubr.msk.bf16.mxu0 %vm217_vm0, %v767_v58  ;;  %v759_v8 = vadd.f32 %v730_v47, %v647_v49 }
 0x912   :  { %v768_v5 = vpack.c.bf16 %v758_v3, %v757_v31 }
 0x913   :  { %v623_v6 = vpop.permute.xlu1 %622  ;;  %v740_v53 = vpop.permute.xlu0 %739 }
 0x914   :  { %3743 = vmatmul.mubr.msk.bf16.gmra.mxu0 %vm217_vm0, %v768_v5  ;;  %v648_v11 = vmul.f32 %v623_v6, %v4588_v33  ;;  %v761_v15 = vadd.f32 %v740_v53, %v649_v9 }
 0x917   :  { %v633_v48 = vpop.permute.xlu1 %632 }
 0x918   :  { %v650_v55 = vmul.f32 %v633_v48, %v4583_v39 }
 0x91b   :  { %v735_v2 = vpop.permute.xlu1 %734 }
 0x91c   :  { %v760_v44 = vadd.f32 %v735_v2, %v648_v11 }
 0x91e   :  { %v769_v57 = vpack.c.bf16 %v760_v44, %v759_v8 }
 0x91f   :  { %v745_v13 = vpop.permute.xlu1 %744 }
 0x920   :  { %v762_v16 = vadd.f32 %v745_v13, %v650_v55  ;;  %3746 = vmatprep.mubr.msk.bf16.mxu0 %vm217_vm0, %v769_v57 }
 0x922   :  { %v770_v10 = vpack.c.bf16 %v762_v16, %v761_v15  ;;  %v1192_v17 = vpop.permute.xlu0 %1191 }
 0x923   :  { %v1196_v18 = vpop.permute.xlu1 %1195 }
 0x924   :  { %3747 = vmatmul.mubr.msk.bf16.gmra.mxu0 %vm217_vm0, %v770_v10  ;;  %v1198_v32 = vsel %vm959_vm6, %v1192_v17, %v1196_v18 }
 0x925   :  { %3786 = vmatprep.mubr.msk.bf16.mxu0 %vm4296_vm2, %v4295_v26  ;;  %v1199_v39 = vpack.c.bf16 %v1198_v32, %v1198_v32 }
 0x926   :  { %v1268_v33 = vpop.permute.xlu0 %1267 }
 0x927   :  { %3795 = vmatmul.mubr.msk.bf16.vlgmr.msra.gmra.mxu1 %vm959_vm6, %v1268_v33 }
 0x928   :  { %3811 = vmatpush3.bf16.msra.mxu1 %v4692_v36  ;;  %3814 = vmatprep.mubr.msk.bf16.mxu1 %vm4296_vm2, %v4295_v26 }
 0x929   :  { %3812 = vmatprep.subr.bf16.mxu1 %v4295_v26 }
 0x92c   :  { %3787 = vmatmul.mubr.msk.bf16.vlgmr.msra.gmra.mxu0 %vm1055_vm7, %v1199_v39  ;;  %3813 = vmatpush3.bf16.msra.mxu1 %v4714_v50 }
 0x92d   :  { %3799 = vmatpush3.bf16.msra.mxu0 %v4781_v12  ;;  %3806 = vmatprep.mubr.msk.bf16.mxu0 %vm4296_vm2, %v4295_v26 }
 0x92e   :  { %3800 = vmatprep.subr.bf16.mxu0 %v4295_v26  ;;  %3818 = vmatprep.subr.bf16.mxu1 %v4295_v26 }
 0x931   :  { %3801 = vmatpush3.bf16.msra.mxu0 %v4787_v60 }
 0x932   :  { %3802 = vmatprep.subr.bf16.mxu0 %v4295_v26 }
 0x935   :  { %3803 = vmatpush3.bf16.msra.mxu0 %v4796_v61 }
 0x936   :  { %3804 = vmatprep.subr.bf16.mxu0 %v4295_v26 }
 0x939   :  { %3805 = vmatpush3.bf16.msra.mxu0 %v4806_v14 }
 0x93a   :  { %3830 = vmatprep.subr.bf16.mxu0 %v4295_v26 }
 0x9c4   :  { %v5010_v34 = vpop.f32.mrf.mxu0 }
 0x9c6   :  { %v5012_v19 = vpop.f32.mrf.mxu0 }
 0x9c8   :  { %v5014_v4 = vpop.f32.mrf.mxu0 }
 0x9ca   :  { %v5016_v20 = vpop.f32.mrf.mxu0 }
 0x9d4   :  { %v5018_v37 = vpop.f32.mrf.mxu0 }
 0x9d6   :  { %v5020_v63 = vpop.f32.mrf.mxu0 }
 0x9d8   :  { %v5022_v38 = vpop.f32.mrf.mxu0 }
 0x9da   :  { %v5024_v35 = vpop.f32.mrf.mxu0 }
 0x9e4   :  { %v5026_v24 = vpop.f32.mrf.mxu0 }
 0x9e6   :  { %v5030_v25 = vpop.f32.mrf.mxu0 }
 0x9e7   :  { %v1306_v59 = vpop.f32.mrf.mxu1 }
 0x9e8   :  { %v1312_v54 = vadd.f32 %v1306_v59, %v850_v23  ;;  %v5032_v56 = vpop.f32.mrf.mxu0 }
 0x9e9   :  { %v3796_v62 = vpop.f32.mrf.mxu1 }
 0x9ea   :  { %v1313_v28 = vmul.f32 %v1312_v54, %v4766_v46  ;;  %v5035_v52 = vpop.f32.mrf.mxu0 }
 0x9eb   :  { %v1309_v40 = vpop.f32.mrf.mxu1 }
 0x9ec   :  { %4140 = vtanh.f32 %v1313_v28  ;;  %v1237_v51 = vpop.f32.mrf.mxu0 }
 0x9ed   :  { %v1238_v0 = vadd.f32 %v4835_v21, %v1237_v51  ;;  %v3797_v27 = vpop.f32.mrf.mxu1 }
 0x9ee   :  { %v3788_v41 = vpop.f32.mrf.mxu0 }
 0x9ef   :  { %v1243_v42 = vmul.f32 %v1238_v0, %v4766_v46 }
 0x9f0   :  { %v1240_v58 = vpop.f32.mrf.mxu0 }
 0x9f1   :  { %4142 = vtanh.f32 %v1243_v42 }
 0x9f2   :  { %v3789_v30 = vpop.f32.mrf.mxu0 }
 0x9f9   :  { %v4141_v31 = vpop.eup %4140 }
 0x9fa   :  { %v1315_v3 = vmul.f32 %v4141_v31, %v4766_v46 }
 0x9fc   :  { %v1316_v45 = vadd.f32 %v1315_v3, %v4769_v7 }
 0x9fe   :  { %v4143_v5 = vpop.eup %4142  ;;  %1319 = vrot.lane.b32.xlu0 %v1316_v45, %s4298_s23  ;;  %v1317_v8 = vmul.f32 %v1316_v45, %v4889_v29 }
 0x9ff   :  { %v1245_v6 = vmul.f32 %v4143_v5, %v4766_v46 }
 0xa01   :  { %v1246_v47 = vadd.f32 %v1245_v6, %v4769_v7 }
 0xa03   :  { %1249 = vrot.lane.b32.xlu1 %v1246_v47, %s4298_s23  ;;  %v1247_v9 = vmul.f32 %v1246_v47, %v4884_v1 }
 0xa70   :  { %v1320_v48 = vpop.permute.xlu0 %1319 }
 0xa71   :  { %v1322_v49 = vmul.f32 %v1320_v48, %v1316_v45 }
 0xa73   :  { %1324 = vrot.lane.b32.xlu0 %v1322_v49, %s4299_s4 }
 0xa75   :  { %v1250_v11 = vpop.permute.xlu1 %1249 }
 0xa76   :  { %v1252_v2 = vmul.f32 %v1250_v11, %v1246_v47 }
 0xa78   :  { %1254 = vrot.lane.b32.xlu1 %v1252_v2, %s4299_s4 }
 0xae5   :  { %v1325_v44 = vpop.permute.xlu0 %1324 }
 0xae6   :  { %v5048_v53 = vadd.f32 %v1325_v44, %v1317_v8 }
 0xae8   :  { %4144 = vtanh.f32 %v5048_v53 }
 0xaea   :  { %v1255_v55 = vpop.permute.xlu1 %1254 }
 0xaeb   :  { %v5052_v57 = vadd.f32 %v1255_v55, %v1247_v9 }
 0xaed   :  { %4146 = vtanh.f32 %v5052_v57 }
 0xaf5   :  { %v4145_v13 = vpop.eup %4144 }
 0xaf6   :  { %1330 = vrot.lane.b32.xlu0 %v4145_v13, %s4298_s23 }
 0xafa   :  { %v4147_v15 = vpop.eup %4146 }
 0xafb   :  { %1260 = vrot.lane.b32.xlu1 %v4147_v15, %s4298_s23 }
 0xb68   :  { %v1331_v16 = vpop.permute.xlu0 %1330 }
 0xb69   :  { %v1333_v29 = vmul.f32 %v1331_v16, %v1316_v45 }
 0xb6b   :  { %1335 = vrot.lane.b32.xlu1 %v1333_v29, %s4299_s4  ;;  %v1409_v10 = vpack.c.bf16 %v1333_v29, %v1333_v29 }
 0xb6d   :  { %v1261_v17 = vpop.permute.xlu1 %1260 }
 0xb6e   :  { %v1263_v18 = vmul.f32 %v1261_v17, %v1246_v47 }
 0xb6f   :  { %1411 = vrot.lane.b32.xlu1 %v1409_v10, %s4299_s4 }
 0xb70   :  { %1339 = vrot.lane.b32.xlu0 %v1263_v18, %s4298_s23 }
 0xbdd   :  { %v1336_v1 = vpop.permute.xlu1 %1335 }
 0xbe1   :  { %v1412_v33 = vpop.permute.xlu1 %1411 }
 0xbe2   :  { %v1340_v32 = vpop.permute.xlu0 %1339  ;;  %3815 = vmatmul.mubr.msk.bf16.vlgmr.msra.gmra.mxu1 %vm959_vm6, %v1412_v33 }
 0xbe3   :  { %v1342_v39 = vsel %vm959_vm6, %v1336_v1, %v1340_v32  ;;  %3819 = vmatpush3.bf16.msra.mxu1 %v4781_v12  ;;  %3826 = vmatprep.mubr.msk.bf16.mxu1 %vm4296_vm2, %v4295_v26 }
 0xbe4   :  { %v1343_v23 = vpack.c.bf16 %v1342_v39, %v1342_v39  ;;  %3820 = vmatprep.subr.bf16.mxu1 %v4295_v26  ;;  %v5115_v39 = vld [vmem:[%s5735_s5 + $0x8] sm:$0xff]  }
 0xbe6   :  { %3807 = vmatmul.mubr.msk.bf16.vlgmr.msra.gmra.mxu0 %vm1055_vm7, %v1343_v23 }
 0xbe7   :  { %3821 = vmatpush3.bf16.msra.mxu1 %v4787_v60  ;;  %3831 = vmatpush3.bf16.msra.mxu0 %v4692_v36  ;;  %v853_v36 = vadd.f32 %v4837_v22, %v4763_v43 }
 0xbe8   :  { %3822 = vmatprep.subr.bf16.mxu1 %v4295_v26  ;;  %3832 = vmatprep.subr.bf16.mxu0 %v4295_v26 }
 0xbe9   :  { %3834 = vmatprep.mubr.msk.bf16.mxu0 %vm4296_vm2, %v4295_v26 }
 0xbeb   :  { %3823 = vmatpush3.bf16.msra.mxu1 %v4796_v61  ;;  %3833 = vmatpush3.bf16.msra.mxu0 %v4714_v50 }
 0xbec   :  { %3824 = vmatprep.subr.bf16.mxu1 %v4295_v26  ;;  %3838 = vmatprep.subr.bf16.mxu0 %v4295_v26 }
 0xbef   :  { %3825 = vmatpush3.bf16.msra.mxu1 %v4806_v14 }
 0xbf0   :  { %3850 = vmatprep.subr.bf16.mxu1 %v4295_v26 }
 0xca2   :  { %v1450_v59 = vpop.f32.mrf.mxu1 }
 0xca3   :  { %v1456_v54 = vadd.f32 %v1450_v59, %v853_v36 }
 0xca4   :  { %v3816_v62 = vpop.f32.mrf.mxu1 }
 0xca5   :  { %v1457_v28 = vmul.f32 %v1456_v54, %v4766_v46 }
 0xca6   :  { %v1381_v40 = vpop.f32.mrf.mxu0  ;;  %v1453_v51 = vpop.f32.mrf.mxu1 }
 0xca7   :  { %4148 = vtanh.f32 %v1457_v28  ;;  %v1382_v50 = vadd.f32 %v4835_v21, %v1381_v40 }
 0xca8   :  { %v3808_v0 = vpop.f32.mrf.mxu0  ;;  %v3817_v27 = vpop.f32.mrf.mxu1 }
 0xca9   :  { %v1387_v41 = vmul.f32 %v1382_v50, %v4766_v46 }
 0xcaa   :  { %v1384_v42 = vpop.f32.mrf.mxu0 }
 0xcab   :  { %4150 = vtanh.f32 %v1387_v41 }
 0xcac   :  { %v3809_v58 = vpop.f32.mrf.mxu0 }
 0xcb4   :  { %v4149_v30 = vpop.eup %4148 }
 0xcb5   :  { %v1459_v22 = vmul.f32 %v4149_v30, %v4766_v46 }
 0xcb7   :  { %v1460_v31 = vadd.f32 %v1459_v22, %v4769_v7 }
 0xcb8   :  { %v4151_v3 = vpop.eup %4150 }
 0xcb9   :  { %1463 = vrot.lane.b32.xlu1 %v1460_v31, %s4298_s23  ;;  %v1389_v45 = vmul.f32 %v4151_v3, %v4766_v46  ;;  %v1461_v11 = vmul.f32 %v1460_v31, %v5048_v53 }
 0xcbb   :  { %v1390_v5 = vadd.f32 %v1389_v45, %v4769_v7 }
 0xcbd   :  { %1393 = vrot.lane.b32.xlu0 %v1390_v5, %s4298_s23  ;;  %v1391_v44 = vmul.f32 %v1390_v5, %v5052_v57 }
 0xd2b   :  { %v1464_v6 = vpop.permute.xlu1 %1463 }
 0xd2c   :  { %v1466_v47 = vmul.f32 %v1464_v6, %v1460_v31 }
 0xd2e   :  { %1468 = vrot.lane.b32.xlu1 %v1466_v47, %s4299_s4 }
 0xd2f   :  { %v1394_v48 = vpop.permute.xlu0 %1393 }
 0xd30   :  { %v1396_v49 = vmul.f32 %v1394_v48, %v1390_v5 }
 0xd32   :  { %1398 = vrot.lane.b32.xlu0 %v1396_v49, %s4299_s4 }
 0xda0   :  { %v1469_v2 = vpop.permute.xlu1 %1468 }
 0xda1   :  { %v5093_v8 = vadd.f32 %v1469_v2, %v1461_v11 }
 0xda3   :  { %4152 = vtanh.f32 %v5093_v8 }
 0xda4   :  { %v1399_v9 = vpop.permute.xlu0 %1398 }
 0xda5   :  { %v5097_v55 = vadd.f32 %v1399_v9, %v1391_v44 }
 0xda7   :  { %4154 = vtanh.f32 %v5097_v55 }
 0xdb0   :  { %v4153_v13 = vpop.eup %4152 }
 0xdb1   :  { %1474 = vrot.lane.b32.xlu1 %v4153_v13, %s4298_s23 }
 0xdb4   :  { %v4155_v15 = vpop.eup %4154 }
 0xdb5   :  { %1404 = vrot.lane.b32.xlu0 %v4155_v15, %s4298_s23 }
 0xe23   :  { %v1475_v16 = vpop.permute.xlu1 %1474 }
 0xe24   :  { %v1477_v53 = vmul.f32 %v1475_v16, %v1460_v31 }
 0xe26   :  { %1479 = vrot.lane.b32.xlu0 %v1477_v53, %s4299_s4  ;;  %v1553_v10 = vpack.c.bf16 %v1477_v53, %v1477_v53 }
 0xe27   :  { %v1405_v29 = vpop.permute.xlu0 %1404 }
 0xe28   :  { %v1407_v17 = vmul.f32 %v1405_v29, %v1390_v5 }
 0xe2a   :  { %1555 = vrot.lane.b32.xlu0 %v1553_v10, %s4299_s4  ;;  %1483 = vrot.lane.b32.xlu1 %v1407_v17, %s4298_s23  ;;  %v5165_v17 = vld [vmem:[%s5737_s7 + $0x18] sm:$0xff]  }
 0xe98   :  { %v1480_v57 = vpop.permute.xlu0 %1479 }
 0xe9c   :  { %v1484_v18 = vpop.permute.xlu1 %1483  ;;  %v1556_v1 = vpop.permute.xlu0 %1555 }
 0xe9d   :  { %v1486_v33 = vsel %vm959_vm6, %v1480_v57, %v1484_v18  ;;  %3835 = vmatmul.mubr.msk.bf16.vlgmr.msra.gmra.mxu0 %vm959_vm6, %v1556_v1  ;;  %v5179_v57 = vld [vmem:[%s5737_s7 + $0x10] sm:$0xff]   ;;  %v5188_v18 = vld [vmem:[%s5737_s7 + $0x8] sm:$0xff]   ;;  %v5195_v1 = vld [vmem:[%s5737_s7] sm:$0xff]  }
 0xe9e   :  { %v1487_v32 = vpack.c.bf16 %v1486_v33, %v1486_v33  ;;  %3839 = vmatpush3.bf16.msra.mxu0 %v4781_v12  ;;  %3846 = vmatprep.mubr.msk.bf16.mxu0 %vm4296_vm2, %v4295_v26  ;;  %v5126_v12 = vld [vmem:[%s5735_s5] sm:$0xff]  }
 0xe9f   :  { %3840 = vmatprep.subr.bf16.mxu0 %v4295_v26  ;;  %v5202_v33 = vld [vmem:[%s5736_s6] ss:$0 sm:$0xff] }
 0xea0   :  { %3827 = vmatmul.mubr.msk.bf16.vlgmr.msra.gmra.mxu1 %vm1055_vm7, %v1487_v32  ;;  %v861_v32 = vadd.f32 %v5202_v33, %v5016_v20 }
 0xea1   :  { %3851 = vmatpush3.bf16.msra.mxu1 %v5115_v39  ;;  %3854 = vmatprep.mubr.msk.bf16.mxu1 %vm4296_vm2, %v4295_v26 }
 0xea2   :  { %3841 = vmatpush3.bf16.msra.mxu0 %v4787_v60  ;;  %3852 = vmatprep.subr.bf16.mxu1 %v4295_v26  ;;  %v858_v60 = vadd.f32 %v4763_v43, %v5012_v19 }
 0xea3   :  { %3842 = vmatprep.subr.bf16.mxu0 %v4295_v26 }
 0xea5   :  { %3853 = vmatpush3.bf16.msra.mxu1 %v5126_v12 }
 0xea6   :  { %3843 = vmatpush3.bf16.msra.mxu0 %v4796_v61  ;;  %3858 = vmatprep.subr.bf16.mxu1 %v4295_v26 }
 0xea7   :  { %3844 = vmatprep.subr.bf16.mxu0 %v4295_v26 }
 0xeaa   :  { %3845 = vmatpush3.bf16.msra.mxu0 %v4806_v14 }
 0xeab   :  { %3870 = vmatprep.subr.bf16.mxu0 %v4295_v26 }
 0xf5d   :  { %v1594_v23 = vpop.f32.mrf.mxu0 }
 0xf5e   :  { %v1600_v36 = vadd.f32 %v1594_v23, %v858_v60 }
 0xf5f   :  { %v3836_v59 = vpop.f32.mrf.mxu0 }
 0xf60   :  { %v1601_v54 = vmul.f32 %v1600_v36, %v4766_v46  ;;  %v1525_v62 = vpop.f32.mrf.mxu1 }
 0xf61   :  { %v1526_v28 = vadd.f32 %v4835_v21, %v1525_v62  ;;  %v1597_v61 = vpop.f32.mrf.mxu0 }
 0xf62   :  { %4156 = vtanh.f32 %v1601_v54  ;;  %v3828_v40 = vpop.f32.mrf.mxu1 }
 0xf63   :  { %v1531_v51 = vmul.f32 %v1526_v28, %v4766_v46  ;;  %v3837_v50 = vpop.f32.mrf.mxu0 }
 0xf64   :  { %v1528_v14 = vpop.f32.mrf.mxu1 }
 0xf65   :  { %4158 = vtanh.f32 %v1531_v51 }
 0xf66   :  { %v3829_v0 = vpop.f32.mrf.mxu1 }
 0xf6f   :  { %v4157_v27 = vpop.eup %4156 }
 0xf70   :  { %v1603_v43 = vmul.f32 %v4157_v27, %v4766_v46 }
 0xf72   :  { %v4159_v19 = vpop.eup %4158  ;;  %v1604_v41 = vadd.f32 %v1603_v43, %v4769_v7 }
 0xf73   :  { %v1533_v42 = vmul.f32 %v4159_v19, %v4766_v46 }
 0xf74   :  { %1607 = vrot.lane.b32.xlu0 %v1604_v41, %s4298_s23  ;;  %v1605_v45 = vmul.f32 %v1604_v41, %v5093_v8 }
 0xf75   :  { %v1534_v58 = vadd.f32 %v1533_v42, %v4769_v7 }
 0xf77   :  { %1537 = vrot.lane.b32.xlu1 %v1534_v58, %s4298_s23  ;;  %v1535_v47 = vmul.f32 %v1534_v58, %v5097_v55 }
 0xfe6   :  { %v1608_v30 = vpop.permute.xlu0 %1607 }
 0xfe7   :  { %v1610_v22 = vmul.f32 %v1608_v30, %v1604_v41 }
 0xfe9   :  { %v1538_v31 = vpop.permute.xlu1 %1537  ;;  %1612 = vrot.lane.b32.xlu0 %v1610_v22, %s4299_s4 }
 0xfea   :  { %v1540_v3 = vmul.f32 %v1538_v31, %v1534_v58 }
 0xfec   :  { %1542 = vrot.lane.b32.xlu1 %v1540_v3, %s4299_s4 }
0x105b   :  { %v1613_v5 = vpop.permute.xlu0 %1612 }
0x105c   :  { %v5148_v6 = vadd.f32 %v1613_v5, %v1605_v45 }
0x105e   :  { %4160 = vtanh.f32 %v5148_v6  ;;  %v1543_v48 = vpop.permute.xlu1 %1542 }
0x105f   :  { %v5152_v49 = vadd.f32 %v1543_v48, %v1535_v47 }
0x1061   :  { %4162 = vtanh.f32 %v5152_v49 }
0x106b   :  { %v4161_v11 = vpop.eup %4160 }
0x106c   :  { %1618 = vrot.lane.b32.xlu0 %v4161_v11, %s4298_s23 }
0x106e   :  { %v4163_v2 = vpop.eup %4162 }
0x106f   :  { %1548 = vrot.lane.b32.xlu1 %v4163_v2, %s4298_s23 }
0x10de   :  { %v1619_v44 = vpop.permute.xlu0 %1618 }
0x10df   :  { %v1621_v8 = vmul.f32 %v1619_v44, %v1604_v41 }
0x10e1   :  { %v1549_v9 = vpop.permute.xlu1 %1548  ;;  %1623 = vrot.lane.b32.xlu1 %v1621_v8, %s4299_s4  ;;  %v1697_v55 = vpack.c.bf16 %v1621_v8, %v1621_v8 }
0x10e2   :  { %v1551_v13 = vmul.f32 %v1549_v9, %v1534_v58 }
0x10e4   :  { %1627 = vrot.lane.b32.xlu0 %v1551_v13, %s4298_s23 }
0x10e5   :  { %1699 = vrot.lane.b32.xlu1 %v1697_v55, %s4299_s4 }
0x1153   :  { %v1624_v15 = vpop.permute.xlu1 %1623 }
0x1156   :  { %v1628_v16 = vpop.permute.xlu0 %1627 }
0x1157   :  { %v1630_v53 = vsel %vm959_vm6, %v1624_v15, %v1628_v16  ;;  %v1700_v29 = vpop.permute.xlu1 %1699 }
0x1158   :  { %v1631_v10 = vpack.c.bf16 %v1630_v53, %v1630_v53  ;;  %3855 = vmatmul.mubr.msk.bf16.vlgmr.msra.gmra.mxu1 %vm959_vm6, %v1700_v29  ;;  %v866_v53 = vadd.f32 %v5202_v33, %v5010_v34 }
0x1159   :  { %3859 = vmatpush3.bf16.msra.mxu1 %v5165_v17  ;;  %3866 = vmatprep.mubr.msk.bf16.mxu1 %vm4296_vm2, %v4295_v26 }
0x115a   :  { %3847 = vmatmul.mubr.msk.bf16.vlgmr.msra.gmra.mxu0 %vm1055_vm7, %v1631_v10  ;;  %3860 = vmatprep.subr.bf16.mxu1 %v4295_v26 }
0x115b   :  { %3871 = vmatpush3.bf16.msra.mxu0 %v5115_v39  ;;  %3874 = vmatprep.mubr.msk.bf16.mxu0 %vm4296_vm2, %v4295_v26 }
0x115c   :  { %3872 = vmatprep.subr.bf16.mxu0 %v4295_v26 }
0x115d   :  { %3861 = vmatpush3.bf16.msra.mxu1 %v5179_v57 }
0x115e   :  { %3862 = vmatprep.subr.bf16.mxu1 %v4295_v26 }
0x115f   :  { %3873 = vmatpush3.bf16.msra.mxu0 %v5126_v12 }
0x1160   :  { %3878 = vmatprep.subr.bf16.mxu0 %v4295_v26 }
0x1161   :  { %3863 = vmatpush3.bf16.msra.mxu1 %v5188_v18 }
0x1162   :  { %3864 = vmatprep.subr.bf16.mxu1 %v4295_v26 }
0x1165   :  { %3865 = vmatpush3.bf16.msra.mxu1 %v5195_v1 }
0x1166   :  { %3890 = vmatprep.subr.bf16.mxu1 %v4295_v26 }
0x1218   :  { %v1738_v60 = vpop.f32.mrf.mxu1 }
0x1219   :  { %v1744_v23 = vadd.f32 %v1738_v60, %v861_v32  ;;  %v5254_v60 = vld [vmem:[%s5738_s8] ss:$0 sm:$0xff] }
0x121a   :  { %v1669_v36 = vpop.f32.mrf.mxu0  ;;  %v3856_v59 = vpop.f32.mrf.mxu1 }
0x121b   :  { %v1745_v54 = vmul.f32 %v1744_v23, %v4766_v46  ;;  %v1670_v62 = vadd.f32 %v4835_v21, %v1669_v36 }
0x121c   :  { %v3848_v28 = vpop.f32.mrf.mxu0  ;;  %v1741_v61 = vpop.f32.mrf.mxu1 }
0x121d   :  { %4164 = vtanh.f32 %v1745_v54  ;;  %v1675_v40 = vmul.f32 %v1670_v62, %v4766_v46 }
0x121e   :  { %v1672_v51 = vpop.f32.mrf.mxu0  ;;  %v3857_v50 = vpop.f32.mrf.mxu1 }
0x121f   :  { %4166 = vtanh.f32 %v1675_v40 }
0x1220   :  { %v3849_v14 = vpop.f32.mrf.mxu0 }
0x122a   :  { %v4165_v0 = vpop.eup %4164 }
0x122b   :  { %v1747_v20 = vmul.f32 %v4165_v0, %v4766_v46 }
0x122c   :  { %v4167_v27 = vpop.eup %4166 }
0x122d   :  { %v1748_v43 = vadd.f32 %v1747_v20, %v4769_v7  ;;  %v1677_v19 = vmul.f32 %v4167_v27, %v4766_v46 }
0x122f   :  { %1751 = vrot.lane.b32.xlu1 %v1748_v43, %s4298_s23  ;;  %v1678_v21 = vadd.f32 %v1677_v19, %v4769_v7  ;;  %v1749_v22 = vmul.f32 %v1748_v43, %v5148_v6 }
0x1231   :  { %1681 = vrot.lane.b32.xlu0 %v1678_v21, %s4298_s23  ;;  %v1679_v45 = vmul.f32 %v1678_v21, %v5152_v49 }
0x12a1   :  { %v1752_v41 = vpop.permute.xlu1 %1751 }
0x12a2   :  { %v1754_v42 = vmul.f32 %v1752_v41, %v1748_v43 }
0x12a3   :  { %v1682_v58 = vpop.permute.xlu0 %1681 }
0x12a4   :  { %v1684_v30 = vmul.f32 %v1682_v58, %v1678_v21  ;;  %1756 = vrot.lane.b32.xlu1 %v1754_v42, %s4299_s4 }
0x12a6   :  { %1686 = vrot.lane.b32.xlu0 %v1684_v30, %s4299_s4 }
0x1316   :  { %v1757_v31 = vpop.permute.xlu1 %1756 }
0x1317   :  { %v5218_v3 = vadd.f32 %v1757_v31, %v1749_v22 }
0x1318   :  { %v1687_v5 = vpop.permute.xlu0 %1686 }
0x1319   :  { %4168 = vtanh.f32 %v5218_v3  ;;  %v5222_v47 = vadd.f32 %v1687_v5, %v1679_v45 }
0x131b   :  { %4170 = vtanh.f32 %v5222_v47 }
0x1326   :  { %v4169_v48 = vpop.eup %4168 }
0x1327   :  { %1762 = vrot.lane.b32.xlu1 %v4169_v48, %s4298_s23 }
0x1328   :  { %v4171_v11 = vpop.eup %4170 }
0x1329   :  { %1692 = vrot.lane.b32.xlu0 %v4171_v11, %s4298_s23 }
0x1399   :  { %v1763_v2 = vpop.permute.xlu1 %1762 }
0x139a   :  { %v1765_v6 = vmul.f32 %v1763_v2, %v1748_v43 }
0x139b   :  { %v1693_v44 = vpop.permute.xlu0 %1692 }
0x139c   :  { %v1695_v8 = vmul.f32 %v1693_v44, %v1678_v21  ;;  %1767 = vrot.lane.b32.xlu0 %v1765_v6, %s4299_s4  ;;  %v1841_v49 = vpack.c.bf16 %v1765_v6, %v1765_v6 }
0x139e   :  { %1771 = vrot.lane.b32.xlu1 %v1695_v8, %s4298_s23 }
0x13a0   :  { %1843 = vrot.lane.b32.xlu0 %v1841_v49, %s4299_s4 }
0x140e   :  { %v1768_v9 = vpop.permute.xlu0 %1767 }
0x1410   :  { %v1772_v13 = vpop.permute.xlu1 %1771 }
0x1411   :  { %v1774_v55 = vsel %vm959_vm6, %v1768_v9, %v1772_v13 }
0x1412   :  { %v1775_v15 = vpack.c.bf16 %v1774_v55, %v1774_v55  ;;  %v1844_v16 = vpop.permute.xlu0 %1843  ;;  %v869_v55 = vadd.f32 %v5202_v33, %v5014_v4 }
0x1413   :  { %3875 = vmatmul.mubr.msk.bf16.vlgmr.msra.gmra.mxu0 %vm959_vm6, %v1844_v16 }
0x1414   :  { %3867 = vmatmul.mubr.msk.bf16.vlgmr.msra.gmra.mxu1 %vm1055_vm7, %v1775_v15  ;;  %3879 = vmatpush3.bf16.msra.mxu0 %v5165_v17 }
0x1415   :  { %3880 = vmatprep.subr.bf16.mxu0 %v4295_v26  ;;  %3891 = vmatpush3.bf16.msra.mxu1 %v5115_v39 }
0x1416   :  { %3892 = vmatprep.subr.bf16.mxu1 %v4295_v26  ;;  %3886 = vmatprep.mubr.msk.bf16.mxu0 %vm4296_vm2, %v4295_v26 }
0x1417   :  { %3894 = vmatprep.mubr.msk.bf16.mxu1 %vm4296_vm2, %v4295_v26 }
0x1418   :  { %3881 = vmatpush3.bf16.msra.mxu0 %v5179_v57 }
0x1419   :  { %3882 = vmatprep.subr.bf16.mxu0 %v4295_v26  ;;  %3893 = vmatpush3.bf16.msra.mxu1 %v5126_v12 }
0x141a   :  { %3898 = vmatprep.subr.bf16.mxu1 %v4295_v26 }
0x141c   :  { %3883 = vmatpush3.bf16.msra.mxu0 %v5188_v18 }
0x141d   :  { %3884 = vmatprep.subr.bf16.mxu0 %v4295_v26 }
0x1420   :  { %3885 = vmatpush3.bf16.msra.mxu0 %v5195_v1 }
0x1421   :  { %3910 = vmatprep.subr.bf16.mxu0 %v4295_v26 }
0x14d3   :  { %v1882_v29 = vpop.f32.mrf.mxu0 }
0x14d4   :  { %v1888_v10 = vadd.f32 %v1882_v29, %v866_v53  ;;  %v1813_v32 = vpop.f32.mrf.mxu1 }
0x14d5   :  { %v1814_v23 = vadd.f32 %v5254_v60, %v1813_v32  ;;  %v3876_v36 = vpop.f32.mrf.mxu0 }
0x14d6   :  { %v1889_v59 = vmul.f32 %v1888_v10, %v4766_v46  ;;  %v3868_v54 = vpop.f32.mrf.mxu1 }
0x14d7   :  { %v1819_v62 = vmul.f32 %v1814_v23, %v4766_v46  ;;  %v1885_v28 = vpop.f32.mrf.mxu0 }
0x14d8   :  { %4172 = vtanh.f32 %v1889_v59  ;;  %v1816_v61 = vpop.f32.mrf.mxu1 }
0x14d9   :  { %4174 = vtanh.f32 %v1819_v62  ;;  %v3877_v34 = vpop.f32.mrf.mxu0 }
0x14da   :  { %v3869_v40 = vpop.f32.mrf.mxu1 }
0x14e5   :  { %v4173_v51 = vpop.eup %4172 }
0x14e6   :  { %v4175_v50 = vpop.eup %4174  ;;  %v1891_v14 = vmul.f32 %v4173_v51, %v4766_v46 }
0x14e7   :  { %v1821_v0 = vmul.f32 %v4175_v50, %v4766_v46 }
0x14e8   :  { %v1892_v20 = vadd.f32 %v1891_v14, %v4769_v7 }
0x14e9   :  { %v1822_v27 = vadd.f32 %v1821_v0, %v4769_v7 }
0x14ea   :  { %1895 = vrot.lane.b32.xlu0 %v1892_v20, %s4298_s23  ;;  %v1893_v42 = vmul.f32 %v1892_v20, %v5218_v3 }
0x14eb   :  { %1825 = vrot.lane.b32.xlu1 %v1822_v27, %s4298_s23  ;;  %v1823_v30 = vmul.f32 %v1822_v27, %v5222_v47 }
0x155c   :  { %v1896_v43 = vpop.permute.xlu0 %1895 }
0x155d   :  { %v1898_v19 = vmul.f32 %v1896_v43, %v1892_v20  ;;  %v1826_v21 = vpop.permute.xlu1 %1825 }
0x155e   :  { %v1828_v41 = vmul.f32 %v1826_v21, %v1822_v27 }
0x155f   :  { %1900 = vrot.lane.b32.xlu0 %v1898_v19, %s4299_s4 }
0x1560   :  { %1830 = vrot.lane.b32.xlu1 %v1828_v41, %s4299_s4 }
0x15d1   :  { %v1901_v58 = vpop.permute.xlu0 %1900 }
0x15d2   :  { %v5269_v22 = vadd.f32 %v1901_v58, %v1893_v42  ;;  %v1831_v31 = vpop.permute.xlu1 %1830 }
0x15d3   :  { %v5271_v45 = vadd.f32 %v1831_v31, %v1823_v30 }
0x15d4   :  { %4176 = vtanh.f32 %v5269_v22 }
0x15d5   :  { %4178 = vtanh.f32 %v5271_v45 }
0x15e1   :  { %v4177_v5 = vpop.eup %4176 }
0x15e2   :  { %v4179_v48 = vpop.eup %4178  ;;  %1906 = vrot.lane.b32.xlu0 %v4177_v5, %s4298_s23 }
0x15e3   :  { %1836 = vrot.lane.b32.xlu1 %v4179_v48, %s4298_s23 }
0x1654   :  { %v1907_v11 = vpop.permute.xlu0 %1906 }
0x1655   :  { %v1909_v3 = vmul.f32 %v1907_v11, %v1892_v20  ;;  %v1837_v2 = vpop.permute.xlu1 %1836 }
0x1656   :  { %v1839_v6 = vmul.f32 %v1837_v2, %v1822_v27 }
0x1657   :  { %1911 = vrot.lane.b32.xlu1 %v1909_v3, %s4299_s4  ;;  %v1985_v47 = vpack.c.bf16 %v1909_v3, %v1909_v3 }
0x1658   :  { %1915 = vrot.lane.b32.xlu0 %v1839_v6, %s4298_s23 }
0x165b   :  { %1987 = vrot.lane.b32.xlu1 %v1985_v47, %s4299_s4 }
0x16c9   :  { %v1912_v44 = vpop.permute.xlu1 %1911 }
0x16ca   :  { %v1916_v8 = vpop.permute.xlu0 %1915 }
0x16cb   :  { %v1918_v49 = vsel %vm959_vm6, %v1912_v44, %v1916_v8  ;;  %v874_v8 = vadd.f32 %v5202_v33, %v5020_v63 }
0x16cc   :  { %v1919_v9 = vpack.c.bf16 %v1918_v49, %v1918_v49 }
0x16cd   :  { %v1988_v13 = vpop.permute.xlu1 %1987 }
0x16ce   :  { %3887 = vmatmul.mubr.msk.bf16.vlgmr.msra.gmra.mxu0 %vm1055_vm7, %v1919_v9  ;;  %3895 = vmatmul.mubr.msk.bf16.vlgmr.msra.gmra.mxu1 %vm959_vm6, %v1988_v13 }
0x16cf   :  { %3899 = vmatpush3.bf16.msra.mxu1 %v5165_v17  ;;  %3911 = vmatpush3.bf16.msra.mxu0 %v5115_v39 }
0x16d0   :  { %3900 = vmatprep.subr.bf16.mxu1 %v4295_v26  ;;  %3912 = vmatprep.subr.bf16.mxu0 %v4295_v26 }
0x16d1   :  { %3906 = vmatprep.mubr.msk.bf16.mxu1 %vm4296_vm2, %v4295_v26  ;;  %3914 = vmatprep.mubr.msk.bf16.mxu0 %vm4296_vm2, %v4295_v26 }
0x16d3   :  { %3901 = vmatpush3.bf16.msra.mxu1 %v5179_v57  ;;  %3913 = vmatpush3.bf16.msra.mxu0 %v5126_v12 }
0x16d4   :  { %3902 = vmatprep.subr.bf16.mxu1 %v4295_v26  ;;  %3918 = vmatprep.subr.bf16.mxu0 %v4295_v26 }
0x16d7   :  { %3903 = vmatpush3.bf16.msra.mxu1 %v5188_v18 }
0x16d8   :  { %3904 = vmatprep.subr.bf16.mxu1 %v4295_v26 }
0x16db   :  { %3905 = vmatpush3.bf16.msra.mxu1 %v5195_v1 }
0x16dc   :  { %3930 = vmatprep.subr.bf16.mxu1 %v4295_v26 }
0x178e   :  { %v1957_v15 = vpop.f32.mrf.mxu0  ;;  %v2026_v16 = vpop.f32.mrf.mxu1 }
0x178f   :  { %v1958_v53 = vadd.f32 %v5254_v60, %v1957_v15  ;;  %v2032_v29 = vadd.f32 %v2026_v16, %v869_v55 }
0x1790   :  { %v3888_v10 = vpop.f32.mrf.mxu0  ;;  %v3896_v32 = vpop.f32.mrf.mxu1 }
0x1791   :  { %v1963_v23 = vmul.f32 %v1958_v53, %v4766_v46  ;;  %v2033_v36 = vmul.f32 %v2032_v29, %v4766_v46 }
0x1792   :  { %v1960_v59 = vpop.f32.mrf.mxu0  ;;  %v2029_v54 = vpop.f32.mrf.mxu1 }
0x1793   :  { %4180 = vtanh.f32 %v1963_v23 }
0x1794   :  { %4182 = vtanh.f32 %v2033_v36  ;;  %v3889_v62 = vpop.f32.mrf.mxu0  ;;  %v3897_v28 = vpop.f32.mrf.mxu1 }
0x17a0   :  { %v4181_v61 = vpop.eup %4180 }
0x17a1   :  { %v4183_v34 = vpop.eup %4182  ;;  %v1965_v4 = vmul.f32 %v4181_v61, %v4766_v46 }
0x17a2   :  { %v2035_v40 = vmul.f32 %v4183_v34, %v4766_v46 }
0x17a3   :  { %v1966_v51 = vadd.f32 %v1965_v4, %v4769_v7 }
0x17a4   :  { %v2036_v50 = vadd.f32 %v2035_v40, %v4769_v7 }
0x17a5   :  { %1969 = vrot.lane.b32.xlu0 %v1966_v51, %s4298_s23  ;;  %v1967_v43 = vmul.f32 %v1966_v51, %v5271_v45 }
0x17a6   :  { %2039 = vrot.lane.b32.xlu1 %v2036_v50, %s4298_s23  ;;  %v2037_v19 = vmul.f32 %v2036_v50, %v5269_v22 }
0x1817   :  { %v1970_v14 = vpop.permute.xlu0 %1969 }
0x1818   :  { %v2040_v0 = vpop.permute.xlu1 %2039  ;;  %v1972_v20 = vmul.f32 %v1970_v14, %v1966_v51 }
0x1819   :  { %v2042_v27 = vmul.f32 %v2040_v0, %v2036_v50 }
0x181a   :  { %1974 = vrot.lane.b32.xlu0 %v1972_v20, %s4299_s4 }
0x181b   :  { %2044 = vrot.lane.b32.xlu1 %v2042_v27, %s4299_s4 }
0x188c   :  { %v1975_v21 = vpop.permute.xlu0 %1974 }
0x188d   :  { %v2045_v41 = vpop.permute.xlu1 %2044  ;;  %v5314_v42 = vadd.f32 %v1975_v21, %v1967_v43 }
0x188e   :  { %v5316_v58 = vadd.f32 %v2045_v41, %v2037_v19 }
0x188f   :  { %4184 = vtanh.f32 %v5314_v42 }
0x1890   :  { %4186 = vtanh.f32 %v5316_v58 }
0x189c   :  { %v4185_v30 = vpop.eup %4184 }
0x189d   :  { %v4187_v31 = vpop.eup %4186  ;;  %1980 = vrot.lane.b32.xlu0 %v4185_v30, %s4298_s23 }
0x189e   :  { %2050 = vrot.lane.b32.xlu1 %v4187_v31, %s4298_s23 }
0x190f   :  { %v1981_v5 = vpop.permute.xlu0 %1980 }
0x1910   :  { %v2051_v45 = vpop.permute.xlu1 %2050  ;;  %v1983_v48 = vmul.f32 %v1981_v5, %v1966_v51 }
0x1911   :  { %v2053_v22 = vmul.f32 %v2051_v45, %v2036_v50 }
0x1912   :  { %2059 = vrot.lane.b32.xlu1 %v1983_v48, %s4298_s23 }
0x1913   :  { %2055 = vrot.lane.b32.xlu0 %v2053_v22, %s4299_s4  ;;  %v2129_v11 = vpack.c.bf16 %v2053_v22, %v2053_v22 }
0x1917   :  { %2131 = vrot.lane.b32.xlu0 %v2129_v11, %s4299_s4 }
0x1984   :  { %v2060_v3 = vpop.permute.xlu1 %2059 }
0x1985   :  { %v2056_v2 = vpop.permute.xlu0 %2055 }
0x1986   :  { %v2062_v6 = vsel %vm959_vm6, %v2056_v2, %v2060_v3  ;;  %v877_v3 = vadd.f32 %v5202_v33, %v5024_v35 }
0x1987   :  { %v2063_v47 = vpack.c.bf16 %v2062_v6, %v2062_v6 }
0x1989   :  { %3907 = vmatmul.mubr.msk.bf16.vlgmr.msra.gmra.mxu1 %vm1055_vm7, %v2063_v47  ;;  %v2132_v44 = vpop.permute.xlu0 %2131 }
0x198a   :  { %3915 = vmatmul.mubr.msk.bf16.vlgmr.msra.gmra.mxu0 %vm959_vm6, %v2132_v44  ;;  %3931 = vmatpush3.bf16.msra.mxu1 %v5115_v39 }
0x198b   :  { %3919 = vmatpush3.bf16.msra.mxu0 %v5165_v17  ;;  %3932 = vmatprep.subr.bf16.mxu1 %v4295_v26 }
0x198c   :  { %3920 = vmatprep.subr.bf16.mxu0 %v4295_v26  ;;  %3926 = vmatprep.mubr.msk.bf16.mxu0 %vm4296_vm2, %v4295_v26 }
0x198d   :  { %3934 = vmatprep.mubr.msk.bf16.mxu1 %vm4296_vm2, %v4295_v26 }
0x198e   :  { %3933 = vmatpush3.bf16.msra.mxu1 %v5126_v12 }
0x198f   :  { %3921 = vmatpush3.bf16.msra.mxu0 %v5179_v57  ;;  %3938 = vmatprep.subr.bf16.mxu1 %v4295_v26 }
0x1990   :  { %3922 = vmatprep.subr.bf16.mxu0 %v4295_v26 }
0x1993   :  { %3923 = vmatpush3.bf16.msra.mxu0 %v5188_v18 }
0x1994   :  { %3924 = vmatprep.subr.bf16.mxu0 %v4295_v26 }
0x1997   :  { %3925 = vmatpush3.bf16.msra.mxu0 %v5195_v1 }
0x1998   :  { %3950 = vmatprep.subr.bf16.mxu0 %v4295_v26 }
0x1a49   :  { %v2101_v49 = vpop.f32.mrf.mxu1 }
0x1a4a   :  { %v2102_v9 = vadd.f32 %v5254_v60, %v2101_v49  ;;  %v2170_v13 = vpop.f32.mrf.mxu0 }
0x1a4b   :  { %v2176_v55 = vadd.f32 %v2170_v13, %v874_v8  ;;  %v3908_v15 = vpop.f32.mrf.mxu1 }
0x1a4c   :  { %v2107_v16 = vmul.f32 %v2102_v9, %v4766_v46  ;;  %v3916_v53 = vpop.f32.mrf.mxu0 }
0x1a4d   :  { %v2177_v29 = vmul.f32 %v2176_v55, %v4766_v46  ;;  %v2104_v10 = vpop.f32.mrf.mxu1 }
0x1a4e   :  { %4188 = vtanh.f32 %v2107_v16  ;;  %v2173_v32 = vpop.f32.mrf.mxu0 }
0x1a4f   :  { %4190 = vtanh.f32 %v2177_v29  ;;  %v3909_v23 = vpop.f32.mrf.mxu1 }
0x1a50   :  { %v3917_v36 = vpop.f32.mrf.mxu0 }
0x1a5b   :  { %v4189_v59 = vpop.eup %4188 }
0x1a5c   :  { %v4191_v54 = vpop.eup %4190  ;;  %v2109_v63 = vmul.f32 %v4189_v59, %v4766_v46 }
0x1a5d   :  { %v2179_v62 = vmul.f32 %v4191_v54, %v4766_v46 }
0x1a5e   :  { %v2110_v28 = vadd.f32 %v2109_v63, %v4769_v7 }
0x1a5f   :  { %v2180_v61 = vadd.f32 %v2179_v62, %v4769_v7 }
0x1a60   :  { %2113 = vrot.lane.b32.xlu1 %v2110_v28, %s4298_s23  ;;  %v2111_v50 = vmul.f32 %v2110_v28, %v5314_v42 }
0x1a61   :  { %2183 = vrot.lane.b32.xlu0 %v2180_v61, %s4298_s23  ;;  %v2181_v0 = vmul.f32 %v2180_v61, %v5316_v58 }
0x1ad2   :  { %v2114_v34 = vpop.permute.xlu1 %2113 }
0x1ad3   :  { %v2116_v4 = vmul.f32 %v2114_v34, %v2110_v28  ;;  %v2184_v40 = vpop.permute.xlu0 %2183 }
0x1ad4   :  { %v2186_v51 = vmul.f32 %v2184_v40, %v2180_v61 }
0x1ad5   :  { %2118 = vrot.lane.b32.xlu1 %v2116_v4, %s4299_s4 }
0x1ad6   :  { %2188 = vrot.lane.b32.xlu0 %v2186_v51, %s4299_s4 }
0x1b47   :  { %v2119_v14 = vpop.permute.xlu1 %2118 }
0x1b48   :  { %v5359_v20 = vadd.f32 %v2119_v14, %v2111_v50  ;;  %v2189_v27 = vpop.permute.xlu0 %2188 }
0x1b49   :  { %v5361_v43 = vadd.f32 %v2189_v27, %v2181_v0 }
0x1b4a   :  { %4192 = vtanh.f32 %v5359_v20 }
0x1b4b   :  { %4194 = vtanh.f32 %v5361_v43 }
0x1b57   :  { %v4193_v19 = vpop.eup %4192 }
0x1b58   :  { %v4195_v21 = vpop.eup %4194  ;;  %2124 = vrot.lane.b32.xlu1 %v4193_v19, %s4298_s23 }
0x1b59   :  { %2194 = vrot.lane.b32.xlu0 %v4195_v21, %s4298_s23 }
0x1bca   :  { %v2125_v41 = vpop.permute.xlu1 %2124 }
0x1bcb   :  { %v2127_v42 = vmul.f32 %v2125_v41, %v2110_v28  ;;  %v2195_v30 = vpop.permute.xlu0 %2194 }
0x1bcc   :  { %v2197_v31 = vmul.f32 %v2195_v30, %v2180_v61 }
0x1bcd   :  { %2203 = vrot.lane.b32.xlu0 %v2127_v42, %s4298_s23 }
0x1bce   :  { %2199 = vrot.lane.b32.xlu1 %v2197_v31, %s4299_s4  ;;  %v2273_v58 = vpack.c.bf16 %v2197_v31, %v2197_v31 }
0x1bd2   :  { %2275 = vrot.lane.b32.xlu1 %v2273_v58, %s4299_s4  ;;  %v882_v58 = vadd.f32 %v5202_v33, %v5018_v37 }
0x1c3f   :  { %v2204_v5 = vpop.permute.xlu0 %2203 }
0x1c40   :  { %v2200_v45 = vpop.permute.xlu1 %2199 }
0x1c41   :  { %v2206_v48 = vsel %vm959_vm6, %v2200_v45, %v2204_v5 }
0x1c42   :  { %v2207_v22 = vpack.c.bf16 %v2206_v48, %v2206_v48 }
0x1c44   :  { %v2276_v11 = vpop.permute.xlu1 %2275  ;;  %3927 = vmatmul.mubr.msk.bf16.vlgmr.msra.gmra.mxu0 %vm1055_vm7, %v2207_v22 }
0x1c45   :  { %3935 = vmatmul.mubr.msk.bf16.vlgmr.msra.gmra.mxu1 %vm959_vm6, %v2276_v11  ;;  %3951 = vmatpush3.bf16.msra.mxu0 %v5115_v39 }
0x1c46   :  { %3939 = vmatpush3.bf16.msra.mxu1 %v5165_v17  ;;  %3952 = vmatprep.subr.bf16.mxu0 %v4295_v26 }
0x1c47   :  { %3940 = vmatprep.subr.bf16.mxu1 %v4295_v26  ;;  %3946 = vmatprep.mubr.msk.bf16.mxu1 %vm4296_vm2, %v4295_v26 }
0x1c48   :  { %3954 = vmatprep.mubr.msk.bf16.mxu0 %vm4296_vm2, %v4295_v26 }
0x1c49   :  { %3953 = vmatpush3.bf16.msra.mxu0 %v5126_v12 }
0x1c4a   :  { %3941 = vmatpush3.bf16.msra.mxu1 %v5179_v57  ;;  %3958 = vmatprep.subr.bf16.mxu0 %v4295_v26 }
0x1c4b   :  { %3942 = vmatprep.subr.bf16.mxu1 %v4295_v26 }
0x1c4e   :  { %3943 = vmatpush3.bf16.msra.mxu1 %v5188_v18 }
0x1c4f   :  { %3944 = vmatprep.subr.bf16.mxu1 %v4295_v26 }
0x1c52   :  { %3945 = vmatpush3.bf16.msra.mxu1 %v5195_v1 }
0x1c53   :  { %3970 = vmatprep.subr.bf16.mxu1 %v4295_v26 }
0x1d04   :  { %v2245_v2 = vpop.f32.mrf.mxu0 }
0x1d05   :  { %v2246_v6 = vadd.f32 %v5254_v60, %v2245_v2  ;;  %v2314_v47 = vpop.f32.mrf.mxu1 }
0x1d06   :  { %v2320_v44 = vadd.f32 %v2314_v47, %v877_v3  ;;  %v3928_v8 = vpop.f32.mrf.mxu0 }
0x1d07   :  { %v2251_v49 = vmul.f32 %v2246_v6, %v4766_v46  ;;  %v3936_v9 = vpop.f32.mrf.mxu1 }
0x1d08   :  { %v2321_v13 = vmul.f32 %v2320_v44, %v4766_v46  ;;  %v2248_v55 = vpop.f32.mrf.mxu0 }
0x1d09   :  { %4196 = vtanh.f32 %v2251_v49  ;;  %v2317_v15 = vpop.f32.mrf.mxu1 }
0x1d0a   :  { %4198 = vtanh.f32 %v2321_v13  ;;  %v3929_v16 = vpop.f32.mrf.mxu0 }
0x1d0b   :  { %v3937_v53 = vpop.f32.mrf.mxu1 }
0x1d16   :  { %v4197_v29 = vpop.eup %4196 }
0x1d17   :  { %v4199_v10 = vpop.eup %4198  ;;  %v2253_v35 = vmul.f32 %v4197_v29, %v4766_v46 }
0x1d18   :  { %v2323_v32 = vmul.f32 %v4199_v10, %v4766_v46 }
0x1d19   :  { %v2254_v23 = vadd.f32 %v2253_v35, %v4769_v7 }
0x1d1a   :  { %v2324_v36 = vadd.f32 %v2323_v32, %v4769_v7 }
0x1d1b   :  { %2257 = vrot.lane.b32.xlu0 %v2254_v23, %s4298_s23  ;;  %v2255_v28 = vmul.f32 %v2254_v23, %v5359_v20 }
0x1d1c   :  { %2327 = vrot.lane.b32.xlu1 %v2324_v36, %s4298_s23  ;;  %v2325_v34 = vmul.f32 %v2324_v36, %v5361_v43 }
0x1d8d   :  { %v2258_v59 = vpop.permute.xlu0 %2257 }
0x1d8e   :  { %v2260_v54 = vmul.f32 %v2258_v59, %v2254_v23  ;;  %v2328_v63 = vpop.permute.xlu1 %2327 }
0x1d8f   :  { %v2330_v62 = vmul.f32 %v2328_v63, %v2324_v36 }
0x1d90   :  { %2262 = vrot.lane.b32.xlu0 %v2260_v54, %s4299_s4 }
0x1d91   :  { %2332 = vrot.lane.b32.xlu1 %v2330_v62, %s4299_s4 }
0x1e02   :  { %v2263_v61 = vpop.permute.xlu0 %2262 }
0x1e03   :  { %v5404_v4 = vadd.f32 %v2263_v61, %v2255_v28  ;;  %v2333_v40 = vpop.permute.xlu1 %2332 }
0x1e04   :  { %v5406_v51 = vadd.f32 %v2333_v40, %v2325_v34 }
0x1e05   :  { %4200 = vtanh.f32 %v5404_v4 }
0x1e06   :  { %4202 = vtanh.f32 %v5406_v51 }
0x1e12   :  { %v4201_v50 = vpop.eup %4200 }
0x1e13   :  { %v4203_v14 = vpop.eup %4202  ;;  %2268 = vrot.lane.b32.xlu0 %v4201_v50, %s4298_s23 }
0x1e14   :  { %2338 = vrot.lane.b32.xlu1 %v4203_v14, %s4298_s23 }
0x1e85   :  { %v2269_v0 = vpop.permute.xlu0 %2268 }
0x1e86   :  { %v2271_v20 = vmul.f32 %v2269_v0, %v2254_v23  ;;  %v2339_v27 = vpop.permute.xlu1 %2338 }
0x1e87   :  { %v2341_v19 = vmul.f32 %v2339_v27, %v2324_v36 }
0x1e88   :  { %2347 = vrot.lane.b32.xlu1 %v2271_v20, %s4298_s23 }
0x1e89   :  { %2343 = vrot.lane.b32.xlu0 %v2341_v19, %s4299_s4  ;;  %v2417_v43 = vpack.c.bf16 %v2341_v19, %v2341_v19 }
0x1e8d   :  { %2419 = vrot.lane.b32.xlu0 %v2417_v43, %s4299_s4 }
0x1efa   :  { %v2348_v21 = vpop.permute.xlu1 %2347 }
0x1efb   :  { %v2344_v41 = vpop.permute.xlu0 %2343 }
0x1efc   :  { %v2350_v42 = vsel %vm959_vm6, %v2344_v41, %v2348_v21 }
0x1efd   :  { %v2351_v30 = vpack.c.bf16 %v2350_v42, %v2350_v42 }
0x1eff   :  { %3947 = vmatmul.mubr.msk.bf16.vlgmr.msra.gmra.mxu1 %vm1055_vm7, %v2351_v30  ;;  %v2420_v31 = vpop.permute.xlu0 %2419 }
0x1f00   :  { %3955 = vmatmul.mubr.msk.bf16.vlgmr.msra.gmra.mxu0 %vm959_vm6, %v2420_v31  ;;  %3971 = vmatpush3.bf16.msra.mxu1 %v5115_v39 }
0x1f01   :  { %3959 = vmatpush3.bf16.msra.mxu0 %v5165_v17  ;;  %3972 = vmatprep.subr.bf16.mxu1 %v4295_v26 }
0x1f02   :  { %3960 = vmatprep.subr.bf16.mxu0 %v4295_v26  ;;  %3966 = vmatprep.mubr.msk.bf16.mxu0 %vm4296_vm2, %v4295_v26 }
0x1f03   :  { %3974 = vmatprep.mubr.msk.bf16.mxu1 %vm4296_vm2, %v4295_v26 }
0x1f04   :  { %3973 = vmatpush3.bf16.msra.mxu1 %v5126_v12 }
0x1f05   :  { %3961 = vmatpush3.bf16.msra.mxu0 %v5179_v57  ;;  %3978 = vmatprep.subr.bf16.mxu1 %v4295_v26 }
0x1f06   :  { %3962 = vmatprep.subr.bf16.mxu0 %v4295_v26 }
0x1f09   :  { %3963 = vmatpush3.bf16.msra.mxu0 %v5188_v18 }
0x1f0a   :  { %3964 = vmatprep.subr.bf16.mxu0 %v4295_v26 }
0x1f0d   :  { %3965 = vmatpush3.bf16.msra.mxu0 %v5195_v1 }
0x1f0e   :  { %3990 = vmatprep.subr.bf16.mxu0 %v4295_v26 }
0x1fbf   :  { %v2389_v5 = vpop.f32.mrf.mxu1 }
0x1fc0   :  { %v2390_v45 = vadd.f32 %v5254_v60, %v2389_v5  ;;  %v2458_v48 = vpop.f32.mrf.mxu0 }
0x1fc1   :  { %v2464_v22 = vadd.f32 %v2458_v48, %v882_v58  ;;  %v3948_v11 = vpop.f32.mrf.mxu1 }
0x1fc2   :  { %v2395_v3 = vmul.f32 %v2390_v45, %v4766_v46  ;;  %v3956_v2 = vpop.f32.mrf.mxu0 }
0x1fc3   :  { %v2465_v6 = vmul.f32 %v2464_v22, %v4766_v46  ;;  %v2392_v47 = vpop.f32.mrf.mxu1 }
0x1fc4   :  { %4204 = vtanh.f32 %v2395_v3  ;;  %v2461_v44 = vpop.f32.mrf.mxu0 }
0x1fc5   :  { %4206 = vtanh.f32 %v2465_v6  ;;  %v3949_v8 = vpop.f32.mrf.mxu1 }
0x1fc6   :  { %v3957_v49 = vpop.f32.mrf.mxu0 }
0x1fd1   :  { %v4205_v9 = vpop.eup %4204 }
0x1fd2   :  { %v4207_v13 = vpop.eup %4206  ;;  %v2397_v37 = vmul.f32 %v4205_v9, %v4766_v46 }
0x1fd3   :  { %v2467_v55 = vmul.f32 %v4207_v13, %v4766_v46 }
0x1fd4   :  { %v2398_v15 = vadd.f32 %v2397_v37, %v4769_v7 }
0x1fd5   :  { %v2468_v16 = vadd.f32 %v2467_v55, %v4769_v7 }
0x1fd6   :  { %2401 = vrot.lane.b32.xlu1 %v2398_v15, %s4298_s23  ;;  %v2399_v32 = vmul.f32 %v2398_v15, %v5404_v4 }
0x1fd7   :  { %2471 = vrot.lane.b32.xlu0 %v2468_v16, %s4298_s23  ;;  %v2469_v36 = vmul.f32 %v2468_v16, %v5406_v51 }
0x2048   :  { %v2402_v53 = vpop.permute.xlu1 %2401 }
0x2049   :  { %v2404_v29 = vmul.f32 %v2402_v53, %v2398_v15  ;;  %v2472_v10 = vpop.permute.xlu0 %2471 }
0x204a   :  { %v2474_v35 = vmul.f32 %v2472_v10, %v2468_v16 }
0x204b   :  { %2406 = vrot.lane.b32.xlu1 %v2404_v29, %s4299_s4 }
0x204c   :  { %2476 = vrot.lane.b32.xlu0 %v2474_v35, %s4299_s4 }
0x20bd   :  { %v2407_v23 = vpop.permute.xlu1 %2406 }
0x20be   :  { %v5449_v59 = vadd.f32 %v2407_v23, %v2399_v32  ;;  %v2477_v54 = vpop.permute.xlu0 %2476 }
0x20bf   :  { %v5451_v63 = vadd.f32 %v2477_v54, %v2469_v36 }
0x20c0   :  { %4208 = vtanh.f32 %v5449_v59 }
0x20c1   :  { %4210 = vtanh.f32 %v5451_v63 }
0x20cd   :  { %v4209_v62 = vpop.eup %4208 }
0x20ce   :  { %v4211_v28 = vpop.eup %4210  ;;  %2412 = vrot.lane.b32.xlu1 %v4209_v62, %s4298_s23 }
0x20cf   :  { %2482 = vrot.lane.b32.xlu0 %v4211_v28, %s4298_s23 }
0x2140   :  { %v2413_v61 = vpop.permute.xlu1 %2412 }
0x2141   :  { %v2415_v34 = vmul.f32 %v2413_v61, %v2398_v15  ;;  %v2483_v4 = vpop.permute.xlu0 %2482  ;;  %v5511_v61 = vld [vmem:[%s5735_s5 + $0x8] sm:$0xff]  }
0x2142   :  { %v2485_v40 = vmul.f32 %v2483_v4, %v2468_v16 }
0x2143   :  { %2491 = vrot.lane.b32.xlu0 %v2415_v34, %s4298_s23  ;;  %v5524_v34 = vld [vmem:[%s5735_s5] sm:$0xff]  }
0x2144   :  { %2487 = vrot.lane.b32.xlu1 %v2485_v40, %s4299_s4  ;;  %v2561_v51 = vpack.c.bf16 %v2485_v40, %v2485_v40 }
0x2148   :  { %2563 = vrot.lane.b32.xlu1 %v2561_v51, %s4299_s4 }
0x21b5   :  { %v2492_v50 = vpop.permute.xlu0 %2491 }
0x21b6   :  { %v2488_v14 = vpop.permute.xlu1 %2487 }
0x21b7   :  { %v2494_v0 = vsel %vm959_vm6, %v2488_v14, %v2492_v50 }
0x21b8   :  { %v2495_v20 = vpack.c.bf16 %v2494_v0, %v2494_v0 }
0x21ba   :  { %v2564_v27 = vpop.permute.xlu1 %2563  ;;  %3967 = vmatmul.mubr.msk.bf16.vlgmr.msra.gmra.mxu0 %vm1055_vm7, %v2495_v20 }
0x21bb   :  { %3975 = vmatmul.mubr.msk.bf16.vlgmr.msra.gmra.mxu1 %vm959_vm6, %v2564_v27  ;;  %3991 = vmatpush3.bf16.msra.mxu0 %v5115_v39  ;;  %v885_v39 = vadd.f32 %v5202_v33, %v5022_v38 }
0x21bc   :  { %3979 = vmatpush3.bf16.msra.mxu1 %v5165_v17  ;;  %3992 = vmatprep.subr.bf16.mxu0 %v4295_v26 }
0x21bd   :  { %3980 = vmatprep.subr.bf16.mxu1 %v4295_v26  ;;  %3986 = vmatprep.mubr.msk.bf16.mxu1 %vm4296_vm2, %v4295_v26 }
0x21be   :  { %3994 = vmatprep.mubr.msk.bf16.mxu0 %vm4296_vm2, %v4295_v26 }
0x21bf   :  { %3993 = vmatpush3.bf16.msra.mxu0 %v5126_v12 }
0x21c0   :  { %3981 = vmatpush3.bf16.msra.mxu1 %v5179_v57  ;;  %3998 = vmatprep.subr.bf16.mxu0 %v4295_v26 }
0x21c1   :  { %3982 = vmatprep.subr.bf16.mxu1 %v4295_v26 }
0x21c4   :  { %3983 = vmatpush3.bf16.msra.mxu1 %v5188_v18 }
0x21c5   :  { %3984 = vmatprep.subr.bf16.mxu1 %v4295_v26 }
0x21c8   :  { %3985 = vmatpush3.bf16.msra.mxu1 %v5195_v1 }
0x21c9   :  { %4010 = vmatprep.subr.bf16.mxu1 %v4295_v26 }
0x227a   :  { %v2533_v19 = vpop.f32.mrf.mxu0 }
0x227b   :  { %v2534_v12 = vadd.f32 %v5254_v60, %v2533_v19  ;;  %v2602_v43 = vpop.f32.mrf.mxu1 }
0x227c   :  { %v2608_v21 = vadd.f32 %v2602_v43, %v885_v39  ;;  %v3968_v41 = vpop.f32.mrf.mxu0 }
0x227d   :  { %v2539_v42 = vmul.f32 %v2534_v12, %v4766_v46  ;;  %v3976_v30 = vpop.f32.mrf.mxu1 }
0x227e   :  { %v2609_v31 = vmul.f32 %v2608_v21, %v4766_v46  ;;  %v2536_v58 = vpop.f32.mrf.mxu0 }
0x227f   :  { %4212 = vtanh.f32 %v2539_v42  ;;  %v2605_v5 = vpop.f32.mrf.mxu1 }
0x2280   :  { %4214 = vtanh.f32 %v2609_v31  ;;  %v3969_v45 = vpop.f32.mrf.mxu0 }
0x2281   :  { %v3977_v48 = vpop.f32.mrf.mxu1 }
0x228c   :  { %v4213_v22 = vpop.eup %4212 }
0x228d   :  { %v4215_v11 = vpop.eup %4214  ;;  %v2541_v38 = vmul.f32 %v4213_v22, %v4766_v46 }
0x228e   :  { %v2611_v3 = vmul.f32 %v4215_v11, %v4766_v46 }
0x228f   :  { %v2542_v2 = vadd.f32 %v2541_v38, %v4769_v7 }
0x2290   :  { %v2612_v6 = vadd.f32 %v2611_v3, %v4769_v7 }
0x2291   :  { %2545 = vrot.lane.b32.xlu0 %v2542_v2, %s4298_s23  ;;  %v2543_v9 = vmul.f32 %v2542_v2, %v5449_v59 }
0x2292   :  { %2615 = vrot.lane.b32.xlu1 %v2612_v6, %s4298_s23  ;;  %v2613_v37 = vmul.f32 %v2612_v6, %v5451_v63 }
0x2303   :  { %v2546_v47 = vpop.permute.xlu0 %2545 }
0x2304   :  { %v2548_v44 = vmul.f32 %v2546_v47, %v2542_v2  ;;  %v2616_v8 = vpop.permute.xlu1 %2615 }
0x2305   :  { %v2618_v49 = vmul.f32 %v2616_v8, %v2612_v6 }
0x2306   :  { %2550 = vrot.lane.b32.xlu0 %v2548_v44, %s4299_s4 }
0x2307   :  { %2620 = vrot.lane.b32.xlu1 %v2618_v49, %s4299_s4 }
0x2378   :  { %v2551_v13 = vpop.permute.xlu0 %2550 }
0x2379   :  { %v5494_v55 = vadd.f32 %v2551_v13, %v2543_v9  ;;  %v2621_v15 = vpop.permute.xlu1 %2620 }
0x237a   :  { %v5496_v16 = vadd.f32 %v2621_v15, %v2613_v37  ;;  %v5567_v15 = vld [vmem:[%s5737_s7 + $0x18] sm:$0xff]  }
0x237b   :  { %4216 = vtanh.f32 %v5494_v55 }
0x237c   :  { %4218 = vtanh.f32 %v5496_v16 }
0x2388   :  { %v4217_v53 = vpop.eup %4216 }
0x2389   :  { %v4219_v29 = vpop.eup %4218  ;;  %2556 = vrot.lane.b32.xlu0 %v4217_v53, %s4298_s23  ;;  %v5588_v53 = vld [vmem:[%s5737_s7 + $0x8] sm:$0xff]  }
0x238a   :  { %2626 = vrot.lane.b32.xlu1 %v4219_v29, %s4298_s23  ;;  %v5595_v29 = vld [vmem:[%s5737_s7] sm:$0xff]  }
0x23fb   :  { %v2557_v10 = vpop.permute.xlu0 %2556 }
0x23fc   :  { %v2559_v35 = vmul.f32 %v2557_v10, %v2542_v2  ;;  %v2627_v32 = vpop.permute.xlu1 %2626  ;;  %v5602_v10 = vld [vmem:[%s5736_s6] ss:$0 sm:$0xff] }
0x23fd   :  { %v2629_v23 = vmul.f32 %v2627_v32, %v2612_v6 }
0x23fe   :  { %2635 = vrot.lane.b32.xlu1 %v2559_v35, %s4298_s23  ;;  %v893_v35 = vadd.f32 %v5602_v10, %v5035_v52 }
0x23ff   :  { %2631 = vrot.lane.b32.xlu0 %v2629_v23, %s4299_s4  ;;  %v2705_v36 = vpack.c.bf16 %v2629_v23, %v2629_v23 }
0x2403   :  { %2707 = vrot.lane.b32.xlu0 %v2705_v36, %s4299_s4 }
0x2470   :  { %v2636_v59 = vpop.permute.xlu1 %2635 }
0x2471   :  { %v2632_v54 = vpop.permute.xlu0 %2631 }
0x2472   :  { %v2638_v63 = vsel %vm959_vm6, %v2632_v54, %v2636_v59 }
0x2473   :  { %v2639_v62 = vpack.c.bf16 %v2638_v63, %v2638_v63 }
0x2475   :  { %3987 = vmatmul.mubr.msk.bf16.vlgmr.msra.gmra.mxu1 %vm1055_vm7, %v2639_v62  ;;  %v2708_v28 = vpop.permute.xlu0 %2707 }
0x2476   :  { %3995 = vmatmul.mubr.msk.bf16.vlgmr.msra.gmra.mxu0 %vm959_vm6, %v2708_v28  ;;  %4011 = vmatpush3.bf16.msra.mxu1 %v5511_v61 }
0x2477   :  { %3999 = vmatpush3.bf16.msra.mxu0 %v5165_v17  ;;  %4012 = vmatprep.subr.bf16.mxu1 %v4295_v26  ;;  %v890_v17 = vadd.f32 %v5202_v33, %v5030_v25 }
0x2478   :  { %4000 = vmatprep.subr.bf16.mxu0 %v4295_v26  ;;  %4006 = vmatprep.mubr.msk.bf16.mxu0 %vm4296_vm2, %v4295_v26 }
0x2479   :  { %4014 = vmatprep.mubr.msk.bf16.mxu1 %vm4296_vm2, %v4295_v26 }
0x247a   :  { %4013 = vmatpush3.bf16.msra.mxu1 %v5524_v34 }
0x247b   :  { %4001 = vmatpush3.bf16.msra.mxu0 %v5179_v57  ;;  %4018 = vmatprep.subr.bf16.mxu1 %v4295_v26 }
0x247c   :  { %4002 = vmatprep.subr.bf16.mxu0 %v4295_v26 }
0x247f   :  { %4003 = vmatpush3.bf16.msra.mxu0 %v5188_v18 }
0x2480   :  { %4004 = vmatprep.subr.bf16.mxu0 %v4295_v26 }
0x2483   :  { %4005 = vmatpush3.bf16.msra.mxu0 %v5195_v1 }
0x2484   :  { %4030 = vmatprep.subr.bf16.mxu0 %v4295_v26 }
0x2535   :  { %v2677_v4 = vpop.f32.mrf.mxu1 }
0x2536   :  { %v2678_v40 = vadd.f32 %v5254_v60, %v2677_v4  ;;  %v2746_v51 = vpop.f32.mrf.mxu0 }
0x2537   :  { %v2752_v57 = vadd.f32 %v2746_v51, %v890_v17  ;;  %v3988_v50 = vpop.f32.mrf.mxu1 }
0x2538   :  { %v2683_v14 = vmul.f32 %v2678_v40, %v4766_v46  ;;  %v3996_v0 = vpop.f32.mrf.mxu0 }
0x2539   :  { %v2753_v18 = vmul.f32 %v2752_v57, %v4766_v46  ;;  %v2680_v20 = vpop.f32.mrf.mxu1 }
0x253a   :  { %4220 = vtanh.f32 %v2683_v14  ;;  %v2749_v27 = vpop.f32.mrf.mxu0 }
0x253b   :  { %4222 = vtanh.f32 %v2753_v18  ;;  %v3989_v1 = vpop.f32.mrf.mxu1 }
0x253c   :  { %v3997_v39 = vpop.f32.mrf.mxu0 }
0x2547   :  { %v4221_v19 = vpop.eup %4220 }
0x2548   :  { %v4223_v12 = vpop.eup %4222  ;;  %v2685_v25 = vmul.f32 %v4221_v19, %v4766_v46 }
0x2549   :  { %v2755_v33 = vmul.f32 %v4223_v12, %v4766_v46 }
0x254a   :  { %v2686_v43 = vadd.f32 %v2685_v25, %v4769_v7 }
0x254b   :  { %v2756_v21 = vadd.f32 %v2755_v33, %v4769_v7 }
0x254c   :  { %2689 = vrot.lane.b32.xlu1 %v2686_v43, %s4298_s23  ;;  %v2687_v58 = vmul.f32 %v2686_v43, %v5494_v55 }
0x254d   :  { %2759 = vrot.lane.b32.xlu0 %v2756_v21, %s4298_s23  ;;  %v2757_v45 = vmul.f32 %v2756_v21, %v5496_v16  ;;  %v5580_v16 = vld [vmem:[%s5737_s7 + $0x10] sm:$0xff]  }
0x25be   :  { %v2690_v41 = vpop.permute.xlu1 %2689 }
0x25bf   :  { %v2692_v42 = vmul.f32 %v2690_v41, %v2686_v43  ;;  %v2760_v30 = vpop.permute.xlu0 %2759 }
0x25c0   :  { %v2762_v31 = vmul.f32 %v2760_v30, %v2756_v21 }
0x25c1   :  { %2694 = vrot.lane.b32.xlu1 %v2692_v42, %s4299_s4 }
0x25c2   :  { %2764 = vrot.lane.b32.xlu0 %v2762_v31, %s4299_s4 }
0x2633   :  { %v2695_v5 = vpop.permute.xlu1 %2694 }
0x2634   :  { %v5549_v48 = vadd.f32 %v2695_v5, %v2687_v58  ;;  %v2765_v22 = vpop.permute.xlu0 %2764 }
0x2635   :  { %v5551_v11 = vadd.f32 %v2765_v22, %v2757_v45 }
0x2636   :  { %4224 = vtanh.f32 %v5549_v48 }
0x2637   :  { %4226 = vtanh.f32 %v5551_v11 }
0x2643   :  { %v4225_v38 = vpop.eup %4224 }
0x2644   :  { %v4227_v3 = vpop.eup %4226  ;;  %2700 = vrot.lane.b32.xlu1 %v4225_v38, %s4298_s23 }
0x2645   :  { %2770 = vrot.lane.b32.xlu0 %v4227_v3, %s4298_s23 }
0x26b6   :  { %v2701_v2 = vpop.permute.xlu1 %2700 }
0x26b7   :  { %v2703_v6 = vmul.f32 %v2701_v2, %v2686_v43  ;;  %v2771_v47 = vpop.permute.xlu0 %2770 }
0x26b8   :  { %v2773_v44 = vmul.f32 %v2771_v47, %v2756_v21 }
0x26b9   :  { %2779 = vrot.lane.b32.xlu0 %v2703_v6, %s4298_s23 }
0x26ba   :  { %2775 = vrot.lane.b32.xlu1 %v2773_v44, %s4299_s4  ;;  %v2849_v8 = vpack.c.bf16 %v2773_v44, %v2773_v44 }
0x26be   :  { %2851 = vrot.lane.b32.xlu1 %v2849_v8, %s4299_s4 }
0x272b   :  { %v2780_v49 = vpop.permute.xlu0 %2779 }
0x272c   :  { %v2776_v9 = vpop.permute.xlu1 %2775 }
0x272d   :  { %v2782_v13 = vsel %vm959_vm6, %v2776_v9, %v2780_v49 }
0x272e   :  { %v2783_v37 = vpack.c.bf16 %v2782_v13, %v2782_v13 }
0x2730   :  { %v2852_v55 = vpop.permute.xlu1 %2851  ;;  %4007 = vmatmul.mubr.msk.bf16.vlgmr.msra.gmra.mxu0 %vm1055_vm7, %v2783_v37 }
0x2731   :  { %4015 = vmatmul.mubr.msk.bf16.vlgmr.msra.gmra.mxu1 %vm959_vm6, %v2852_v55  ;;  %4031 = vmatpush3.bf16.msra.mxu0 %v5511_v61 }
0x2732   :  { %4019 = vmatpush3.bf16.msra.mxu1 %v5567_v15  ;;  %4032 = vmatprep.subr.bf16.mxu0 %v4295_v26 }
0x2733   :  { %4020 = vmatprep.subr.bf16.mxu1 %v4295_v26  ;;  %4026 = vmatprep.mubr.msk.bf16.mxu1 %vm4296_vm2, %v4295_v26 }
0x2734   :  { %4034 = vmatprep.mubr.msk.bf16.mxu0 %vm4296_vm2, %v4295_v26 }
0x2735   :  { %4033 = vmatpush3.bf16.msra.mxu0 %v5524_v34 }
0x2736   :  { %4021 = vmatpush3.bf16.msra.mxu1 %v5580_v16  ;;  %4038 = vmatprep.subr.bf16.mxu0 %v4295_v26 }
0x2737   :  { %4022 = vmatprep.subr.bf16.mxu1 %v4295_v26 }
0x273a   :  { %4023 = vmatpush3.bf16.msra.mxu1 %v5588_v53 }
0x273b   :  { %4024 = vmatprep.subr.bf16.mxu1 %v4295_v26 }
0x273e   :  { %4025 = vmatpush3.bf16.msra.mxu1 %v5595_v29 }
0x273f   :  { %4050 = vmatprep.subr.bf16.mxu1 %v4295_v26 }
0x27f0   :  { %v2821_v32 = vpop.f32.mrf.mxu0 }
0x27f1   :  { %v2822_v23 = vadd.f32 %v5254_v60, %v2821_v32  ;;  %v2890_v36 = vpop.f32.mrf.mxu1 }
0x27f2   :  { %v2896_v59 = vadd.f32 %v2890_v36, %v893_v35  ;;  %v4008_v54 = vpop.f32.mrf.mxu0 }
0x27f3   :  { %v2827_v63 = vmul.f32 %v2822_v23, %v4766_v46  ;;  %v4016_v62 = vpop.f32.mrf.mxu1 }
0x27f4   :  { %v2897_v28 = vmul.f32 %v2896_v59, %v4766_v46  ;;  %v2824_v17 = vpop.f32.mrf.mxu0 }
0x27f5   :  { %4228 = vtanh.f32 %v2827_v63  ;;  %v2893_v4 = vpop.f32.mrf.mxu1 }
0x27f6   :  { %4230 = vtanh.f32 %v2897_v28  ;;  %v4009_v40 = vpop.f32.mrf.mxu0 }
0x27f7   :  { %v4017_v51 = vpop.f32.mrf.mxu1 }
0x2802   :  { %v4229_v57 = vpop.eup %4228 }
0x2803   :  { %v4231_v50 = vpop.eup %4230  ;;  %v2829_v52 = vmul.f32 %v4229_v57, %v4766_v46 }
0x2804   :  { %v2899_v60 = vmul.f32 %v4231_v50, %v4766_v46 }
0x2805   :  { %v2830_v14 = vadd.f32 %v2829_v52, %v4769_v7 }
0x2806   :  { %v2900_v0 = vadd.f32 %v2899_v60, %v4769_v7 }
0x2807   :  { %2833 = vrot.lane.b32.xlu0 %v2830_v14, %s4298_s23  ;;  %v2831_v39 = vmul.f32 %v2830_v14, %v5549_v48 }
0x2808   :  { %2903 = vrot.lane.b32.xlu1 %v2900_v0, %s4298_s23  ;;  %v2901_v12 = vmul.f32 %v2900_v0, %v5551_v11 }
0x2879   :  { %v2834_v18 = vpop.permute.xlu0 %2833 }
0x287a   :  { %v2836_v20 = vmul.f32 %v2834_v18, %v2830_v14  ;;  %v2904_v27 = vpop.permute.xlu1 %2903 }
0x287b   :  { %v2906_v1 = vmul.f32 %v2904_v27, %v2900_v0 }
0x287c   :  { %2838 = vrot.lane.b32.xlu0 %v2836_v20, %s4299_s4 }
0x287d   :  { %2908 = vrot.lane.b32.xlu1 %v2906_v1, %s4299_s4 }
0x28ee   :  { %v2839_v19 = vpop.permute.xlu0 %2838 }
0x28ef   :  { %v5619_v25 = vadd.f32 %v2839_v19, %v2831_v39  ;;  %v2909_v33 = vpop.permute.xlu1 %2908 }
0x28f0   :  { %v5621_v43 = vadd.f32 %v2909_v33, %v2901_v12 }
0x28f1   :  { %4232 = vtanh.f32 %v5619_v25 }
0x28f2   :  { %4234 = vtanh.f32 %v5621_v43 }
0x28fe   :  { %v4233_v21 = vpop.eup %4232 }
0x28ff   :  { %v4235_v41 = vpop.eup %4234  ;;  %2844 = vrot.lane.b32.xlu0 %v4233_v21, %s4298_s23 }
0x2900   :  { %2914 = vrot.lane.b32.xlu1 %v4235_v41, %s4298_s23 }
0x2971   :  { %v2845_v42 = vpop.permute.xlu0 %2844 }
0x2972   :  { %v2847_v30 = vmul.f32 %v2845_v42, %v2830_v14  ;;  %v2915_v31 = vpop.permute.xlu1 %2914 }
0x2973   :  { %v2917_v58 = vmul.f32 %v2915_v31, %v2900_v0 }
0x2974   :  { %2923 = vrot.lane.b32.xlu1 %v2847_v30, %s4298_s23 }
0x2975   :  { %2919 = vrot.lane.b32.xlu0 %v2917_v58, %s4299_s4  ;;  %v2993_v5 = vpack.c.bf16 %v2917_v58, %v2917_v58 }
0x2979   :  { %2995 = vrot.lane.b32.xlu0 %v2993_v5, %s4299_s4 }
0x29e6   :  { %v2924_v45 = vpop.permute.xlu1 %2923 }
0x29e7   :  { %v2920_v48 = vpop.permute.xlu0 %2919 }
0x29e8   :  { %v2926_v22 = vsel %vm959_vm6, %v2920_v48, %v2924_v45 }
0x29e9   :  { %v2927_v11 = vpack.c.bf16 %v2926_v22, %v2926_v22 }
0x29eb   :  { %4027 = vmatmul.mubr.msk.bf16.vlgmr.msra.gmra.mxu1 %vm1055_vm7, %v2927_v11  ;;  %v2996_v38 = vpop.permute.xlu0 %2995 }
0x29ec   :  { %4035 = vmatmul.mubr.msk.bf16.vlgmr.msra.gmra.mxu0 %vm959_vm6, %v2996_v38  ;;  %4051 = vmatpush3.bf16.msra.mxu1 %v5511_v61  ;;  %v898_v61 = vadd.f32 %v5602_v10, %v5026_v24 }
0x29ed   :  { %4039 = vmatpush3.bf16.msra.mxu0 %v5567_v15  ;;  %4052 = vmatprep.subr.bf16.mxu1 %v4295_v26 }
0x29ee   :  { %4040 = vmatprep.subr.bf16.mxu0 %v4295_v26  ;;  %4046 = vmatprep.mubr.msk.bf16.mxu0 %vm4296_vm2, %v4295_v26 }
0x29ef   :  { %4054 = vmatprep.mubr.msk.bf16.mxu1 %vm4296_vm2, %v4295_v26 }
0x29f0   :  { %4053 = vmatpush3.bf16.msra.mxu1 %v5524_v34  ;;  %v5654_v34 = vld [vmem:[%s5738_s8] ss:$0 sm:$0xff] }
0x29f1   :  { %4041 = vmatpush3.bf16.msra.mxu0 %v5580_v16  ;;  %4058 = vmatprep.subr.bf16.mxu1 %v4295_v26 }
0x29f2   :  { %4042 = vmatprep.subr.bf16.mxu0 %v4295_v26 }
0x29f5   :  { %4043 = vmatpush3.bf16.msra.mxu0 %v5588_v53 }
0x29f6   :  { %4044 = vmatprep.subr.bf16.mxu0 %v4295_v26 }
0x29f9   :  { %4045 = vmatpush3.bf16.msra.mxu0 %v5595_v29 }
0x29fa   :  { %4070 = vmatprep.subr.bf16.mxu0 %v4295_v26 }
0x2aab   :  { %v2965_v3 = vpop.f32.mrf.mxu1 }
0x2aac   :  { %v2966_v2 = vadd.f32 %v5654_v34, %v2965_v3  ;;  %v3034_v6 = vpop.f32.mrf.mxu0 }
0x2aad   :  { %v3040_v47 = vadd.f32 %v3034_v6, %v898_v61  ;;  %v4028_v44 = vpop.f32.mrf.mxu1 }
0x2aae   :  { %v2971_v8 = vmul.f32 %v2966_v2, %v4766_v46  ;;  %v4036_v49 = vpop.f32.mrf.mxu0 }
0x2aaf   :  { %v3041_v9 = vmul.f32 %v3040_v47, %v4766_v46  ;;  %v2968_v13 = vpop.f32.mrf.mxu1 }
0x2ab0   :  { %4236 = vtanh.f32 %v2971_v8  ;;  %v3037_v37 = vpop.f32.mrf.mxu0 }
0x2ab1   :  { %4238 = vtanh.f32 %v3041_v9  ;;  %v4029_v24 = vpop.f32.mrf.mxu1 }
0x2ab2   :  { %v4037_v55 = vpop.f32.mrf.mxu0 }
0x2abd   :  { %v4237_v35 = vpop.eup %4236 }
0x2abe   :  { %v4239_v32 = vpop.eup %4238  ;;  %v2973_v23 = vmul.f32 %v4237_v35, %v4766_v46 }
0x2abf   :  { %v3043_v36 = vmul.f32 %v4239_v32, %v4766_v46 }
0x2ac0   :  { %v2974_v59 = vadd.f32 %v2973_v23, %v4769_v7 }
0x2ac1   :  { %v3044_v54 = vadd.f32 %v3043_v36, %v4769_v7 }
0x2ac2   :  { %2977 = vrot.lane.b32.xlu1 %v2974_v59, %s4298_s23  ;;  %v2975_v4 = vmul.f32 %v2974_v59, %v5619_v25 }
0x2ac3   :  { %3047 = vrot.lane.b32.xlu0 %v3044_v54, %s4298_s23  ;;  %v3045_v51 = vmul.f32 %v3044_v54, %v5621_v43  ;;  %v901_v43 = vadd.f32 %v5602_v10, %v5032_v56 }
0x2b34   :  { %v2978_v63 = vpop.permute.xlu1 %2977 }
0x2b35   :  { %v2980_v62 = vmul.f32 %v2978_v63, %v2974_v59  ;;  %v3048_v28 = vpop.permute.xlu0 %3047 }
0x2b36   :  { %v3050_v17 = vmul.f32 %v3048_v28, %v3044_v54 }
0x2b37   :  { %2982 = vrot.lane.b32.xlu1 %v2980_v62, %s4299_s4 }
0x2b38   :  { %3052 = vrot.lane.b32.xlu0 %v3050_v17, %s4299_s4 }
0x2ba9   :  { %v2983_v40 = vpop.permute.xlu1 %2982 }
0x2baa   :  { %v2985_v57 = vadd.f32 %v2983_v40, %v2975_v4  ;;  %v3053_v50 = vpop.permute.xlu0 %3052 }
0x2bab   :  { %v3055_v52 = vadd.f32 %v3053_v50, %v3045_v51 }
0x2bac   :  { %4240 = vtanh.f32 %v2985_v57 }
0x2bad   :  { %4242 = vtanh.f32 %v3055_v52 }
0x2bb9   :  { %v4241_v60 = vpop.eup %4240 }
0x2bba   :  { %v4243_v14 = vpop.eup %4242  ;;  %2988 = vrot.lane.b32.xlu1 %v4241_v60, %s4298_s23 }
0x2bbb   :  { %3058 = vrot.lane.b32.xlu0 %v4243_v14, %s4298_s23 }
0x2c2c   :  { %v2989_v0 = vpop.permute.xlu1 %2988 }
0x2c2d   :  { %v2991_v18 = vmul.f32 %v2989_v0, %v2974_v59  ;;  %v3059_v20 = vpop.permute.xlu0 %3058 }
0x2c2e   :  { %v3061_v27 = vmul.f32 %v3059_v20, %v3044_v54  ;;  %v4094_v20 = vld [vmem:[%s5739_s9 + $0x8] sm:$0xff]  }
0x2c2f   :  { %3067 = vrot.lane.b32.xlu0 %v2991_v18, %s4298_s23 }
0x2c30   :  { %3063 = vrot.lane.b32.xlu1 %v3061_v27, %s4299_s4  ;;  %v3137_v1 = vpack.c.bf16 %v3061_v27, %v3061_v27 }
0x2c34   :  { %3139 = vrot.lane.b32.xlu1 %v3137_v1, %s4299_s4 }
0x2ca1   :  { %v3068_v39 = vpop.permute.xlu0 %3067 }
0x2ca2   :  { %v3064_v19 = vpop.permute.xlu1 %3063 }
0x2ca3   :  { %v3070_v12 = vsel %vm959_vm6, %v3064_v19, %v3068_v39 }
0x2ca4   :  { %v3071_v25 = vpack.c.bf16 %v3070_v12, %v3070_v12  ;;  %v3412_v12 = vld [vmem:[%s5740_s10] ss:$0 sm:$0xff] }
0x2ca6   :  { %v3140_v33 = vpop.permute.xlu1 %3139  ;;  %4047 = vmatmul.mubr.msk.bf16.vlgmr.msra.gmra.mxu0 %vm1055_vm7, %v3071_v25 }
0x2ca7   :  { %4055 = vmatmul.mubr.msk.bf16.vlgmr.msra.gmra.mxu1 %vm959_vm6, %v3140_v33  ;;  %4074 = vmatprep.mubr.msk.bf16.mxu0 %vm4296_vm2, %v4295_v26 }
0x2ca8   :  { %4059 = vmatpush3.bf16.msra.mxu1 %v5567_v15  ;;  %4066 = vmatprep.mubr.msk.bf16.mxu1 %vm4296_vm2, %v4295_v26 }
0x2ca9   :  { %4060 = vmatprep.subr.bf16.mxu1 %v4295_v26  ;;  %4071 = vmatpush3.bf16.msra.mxu0 %v4094_v20 }
0x2caa   :  { %4072 = vmatprep.subr.bf16.mxu0 %v4295_v26 }
0x2cac   :  { %4061 = vmatpush3.bf16.msra.mxu1 %v5580_v16 }
0x2cad   :  { %4062 = vmatprep.subr.bf16.mxu1 %v4295_v26 }
0x2cb0   :  { %4063 = vmatpush3.bf16.msra.mxu1 %v5588_v53 }
0x2cb1   :  { %4064 = vmatprep.subr.bf16.mxu1 %v4295_v26 }
0x2cb4   :  { %4065 = vmatpush3.bf16.msra.mxu1 %v5595_v29 }
0x2d66   :  { %v3109_v21 = vpop.f32.mrf.mxu0 }
0x2d67   :  { %v3110_v15 = vadd.f32 %v5654_v34, %v3109_v21  ;;  %v3178_v41 = vpop.f32.mrf.mxu1 }
0x2d68   :  { %v3184_v42 = vadd.f32 %v3178_v41, %v901_v43  ;;  %v4048_v30 = vpop.f32.mrf.mxu0 }
0x2d69   :  { %v3115_v31 = vmul.f32 %v3110_v15, %v4766_v46  ;;  %v4056_v16 = vpop.f32.mrf.mxu1 }
0x2d6a   :  { %v3185_v58 = vmul.f32 %v3184_v42, %v4766_v46  ;;  %v3112_v5 = vpop.f32.mrf.mxu0 }
0x2d6b   :  { %4244 = vtanh.f32 %v3115_v31  ;;  %v3181_v53 = vpop.f32.mrf.mxu1 }
0x2d6c   :  { %4246 = vtanh.f32 %v3185_v58  ;;  %v4049_v45 = vpop.f32.mrf.mxu0 }
0x2d6d   :  { %v4057_v29 = vpop.f32.mrf.mxu1 }
0x2d78   :  { %v4245_v48 = vpop.eup %4244 }
0x2d79   :  { %v4247_v22 = vpop.eup %4246  ;;  %v3117_v56 = vmul.f32 %v4245_v48, %v4766_v46 }
0x2d7a   :  { %v3187_v10 = vmul.f32 %v4247_v22, %v4766_v46 }
0x2d7b   :  { %v3118_v11 = vadd.f32 %v3117_v56, %v4769_v7 }
0x2d7c   :  { %v3188_v38 = vadd.f32 %v3187_v10, %v4769_v7 }
0x2d7d   :  { %3121 = vrot.lane.b32.xlu0 %v3118_v11, %s4298_s23  ;;  %v3119_v47 = vmul.f32 %v3118_v11, %v2985_v57 }
0x2d7e   :  { %3191 = vrot.lane.b32.xlu1 %v3188_v38, %s4298_s23  ;;  %v3189_v8 = vmul.f32 %v3188_v38, %v3055_v52 }
0x2def   :  { %v3122_v61 = vpop.permute.xlu0 %3121 }
0x2df0   :  { %v3124_v3 = vmul.f32 %v3122_v61, %v3118_v11  ;;  %v3192_v2 = vpop.permute.xlu1 %3191 }
0x2df1   :  { %v3194_v6 = vmul.f32 %v3192_v2, %v3188_v38 }
0x2df2   :  { %3126 = vrot.lane.b32.xlu0 %v3124_v3, %s4299_s4 }
0x2df3   :  { %3196 = vrot.lane.b32.xlu1 %v3194_v6, %s4299_s4 }
0x2e64   :  { %v3127_v44 = vpop.permute.xlu0 %3126 }
0x2e65   :  { %v3129_v49 = vadd.f32 %v3127_v44, %v3119_v47  ;;  %v3197_v9 = vpop.permute.xlu1 %3196 }
0x2e66   :  { %v3199_v13 = vadd.f32 %v3197_v9, %v3189_v8 }
0x2e67   :  { %4248 = vtanh.f32 %v3129_v49 }
0x2e68   :  { %4250 = vtanh.f32 %v3199_v13 }
0x2e74   :  { %v4249_v37 = vpop.eup %4248 }
0x2e75   :  { %v4251_v24 = vpop.eup %4250  ;;  %3132 = vrot.lane.b32.xlu0 %v4249_v37, %s4298_s23 }
0x2e76   :  { %3202 = vrot.lane.b32.xlu1 %v4251_v24, %s4298_s23 }
0x2ee7   :  { %v3133_v55 = vpop.permute.xlu0 %3132 }
0x2ee8   :  { %v3135_v35 = vmul.f32 %v3133_v55, %v3118_v11  ;;  %v3203_v32 = vpop.permute.xlu1 %3202 }
0x2ee9   :  { %v3205_v23 = vmul.f32 %v3203_v32, %v3188_v38 }
0x2eea   :  { %3211 = vrot.lane.b32.xlu1 %v3135_v35, %s4298_s23 }
0x2eeb   :  { %3207 = vrot.lane.b32.xlu0 %v3205_v23, %s4299_s4 }
0x2f5c   :  { %v3212_v36 = vpop.permute.xlu1 %3211 }
0x2f5d   :  { %v3208_v59 = vpop.permute.xlu0 %3207 }
0x2f5e   :  { %v3214_v54 = vsel %vm959_vm6, %v3208_v59, %v3212_v36 }
0x2f5f   :  { %v3215_v63 = vpack.c.bf16 %v3214_v54, %v3214_v54 }
0x2f61   :  { %4067 = vmatmul.mubr.msk.bf16.vlgmr.msra.gmra.mxu1 %vm1055_vm7, %v3215_v63 }
0x3021   :  { %v3253_v62 = vpop.f32.mrf.mxu1 }
0x3022   :  { %v3254_v28 = vadd.f32 %v5654_v34, %v3253_v62 }
0x3023   :  { %v4068_v17 = vpop.f32.mrf.mxu1 }
0x3024   :  { %v3259_v4 = vmul.f32 %v3254_v28, %v4766_v46 }
0x3025   :  { %v3256_v40 = vpop.f32.mrf.mxu1 }
0x3026   :  { %4252 = vtanh.f32 %v3259_v4 }
0x3027   :  { %v4069_v51 = vpop.f32.mrf.mxu1 }
0x3033   :  { %v4253_v57 = vpop.eup %4252 }
0x3034   :  { %v3261_v50 = vmul.f32 %v4253_v57, %v4766_v46  ;;  %v4095_v46 = vld [vmem:[%s5739_s9] sm:$0xff]   ;;  %s3357_s9 = sshll.u32 %s4300_s13, 4  ;;  %s3358_s9 = int_to_ptr.vmem [resolvable:$true] %s3357_s9 }
0x3035   :  { %4073 = vmatpush3.bf16.msra.mxu0 %v4095_v46  ;;  %p4277_p1 = scmp.lt.s32.totalorder %s3358_s9, %s3358_s9 }
0x3036   :  { %v3262_v52 = vadd.f32 %v3261_v50, %v4769_v7 }
0x3038   :  { %3265 = vrot.lane.b32.xlu0 %v3262_v52, %s4298_s23  ;;  %v3263_v0 = vmul.f32 %v3262_v52, %v3129_v49 }
0x30aa   :  { %v3266_v60 = vpop.permute.xlu0 %3265 }
0x30ab   :  { %v3268_v14 = vmul.f32 %v3266_v60, %v3262_v52 }
0x30ad   :  { %3270 = vrot.lane.b32.xlu1 %v3268_v14, %s4299_s4 }
0x311f   :  { %v3271_v18 = vpop.permute.xlu1 %3270 }
0x3120   :  { %v3273_v34 = vadd.f32 %v3271_v18, %v3263_v0 }
0x3122   :  { %4254 = vtanh.f32 %v3273_v34 }
0x312f   :  { %v4255_v7 = vpop.eup %4254 }
0x3130   :  { %3276 = vrot.lane.b32.xlu0 %v4255_v7, %s4298_s23  ;;  %s4272_s23 = scalar_lea.vmem %s3358_s9, 128 }
0x3131   :  { %p4273_p0 = scmp.ne.s32.totalorder %s3358_s9, %s4272_s23  ;;  %p4278_p2 = scmp.lt.s32.totalorder %s4272_s23, %s4272_s23 }
0x3133   :  { %p4279_p3 = por %p4278_p2, %p4277_p1 }
0x3135   :  { %p4280_p4 = pnand %p4279_p3, %p4273_p0 }
0x31a2   :  { %v3277_v27 = vpop.permute.xlu0 %3276 }
0x31a3   :  { %v3279_v1 = vmul.f32 %v3277_v27, %v3262_v52 }
0x31a5   :  { %v3280_v39 = vpack.c.bf16 %v3279_v1, %v3279_v1 }
0x31a7   :  { %3293 = vrot.lane.b32.xlu1 %v3280_v39, %s4299_s4 }
0x3219   :  { %v3294_v19 = vpop.permute.xlu1 %3293 }
0x321a   :  { %4075 = vmatmul.mubr.msk.bf16.vlgmr.msra.gmra.mxu0 %vm959_vm6, %v3294_v19 }
0x32da   :  { %v3344_v25 = vpop.f32.mrf.mxu0 }
0x32db   :  { %v3345_v26 = vadd.f32 %v3412_v12, %v3344_v25 }
0x32dc   :  { %v4076_v33 = vpop.f32.mrf.mxu0 }
0x32dd   :  { %3350 = vst.msk [vmem:[#allocation3] sm:$0xff] %vm217_vm0, %v3345_v26 }
0x32de   :  { %v3347_v43 = vpop.f32.mrf.mxu0 }
0x32df   :  { %4283 = shalt.err (!%p4280_p4)
}
0x32e0   :  { %3360 = dma.vmem_to_hbm [thread:$0]  %s3358_s9, 128, %s5741_s11, [#allocation4]   ;;  %v4077_v21 = vpop.f32.mrf.mxu0 }
0x32e1   :  { %4292 = dma.done.wait [#allocation4], 128  }
0x32e2   :  { %4293 = vsyncadd [#allocation4], 4294967168 }
0x32e3   :  { %3364 = vsyncpa [#allocation4], 1 }

</bundles_post_ra>
